<compile_context>
chip_gen: v7x
topology: tpu7x:2x2x1
jax: 0.10.0
libtpu: 0.0.40
codegen_flags: <defaults>
</compile_context>

<pallas_src>
import numpy as np
import jax
import jax.numpy as jnp
from jax import lax
from jax.experimental import pallas as pl
from jax.experimental.pallas import tpu as pltpu


# --------------------------- Fused Pallas kernel -----------------------------


def _spindle_fused_kernel(x_ref, we_ref, wo_ref, bc_ref, w1_ref, b1_ref,
                          w2_ref, b2_ref, o_ref):
    """conv(even/odd matmuls)+pool+bias+ReLU -> fc1+ReLU -> fc2 -> log_softmax.

    x_ref  : (B, C*H*W)   bf16  flattened input
    we_ref : (C*H*W, F)   bf16  conv-as-matrix, even pooled rows, PyTorch order
    wo_ref : (C*H*W, F)   bf16  conv-as-matrix, odd  pooled rows
    bc_ref : (1, F)       f32   conv bias repeated per feature
    w1_ref : (F, 1024)    bf16  fc1 weight, out_l zero-padded 1000 -> 1024
    b1_ref : (1, 1024)    f32
    w2_ref : (1024, nc)   bf16  fc2 weight, rows zero-padded to match
    b2_ref : (1, nc)      f32
    o_ref  : (B, nc)      f32   log-probabilities
    """
    xf = x_ref[...]                                                  # (B, CHW)
    # Conv lowered to two dense matmuls that directly produce the flattened
    # pooled-feature layout (no in-kernel flatten / scratch / row stores).
    conv_e = jnp.dot(xf, we_ref[...], preferred_element_type=jnp.float32)
    conv_o = jnp.dot(xf, wo_ref[...], preferred_element_type=jnp.float32)
    # MaxPool((2,1)) == elementwise max; fold the conv bias in once after it.
    pooled = jnp.maximum(jnp.maximum(conv_e, conv_o) + bc_ref[...], 0.0)

    # fc1 + ReLU + fc2 + LogSoftmax(dim=1), all batched over B on sublanes.
    h = jnp.dot(pooled.astype(jnp.bfloat16), w1_ref[...],
                preferred_element_type=jnp.float32) + b1_ref[...]
    h = jnp.maximum(h, 0.0)                                          # (B, 1024)
    logits = jnp.dot(h.astype(jnp.bfloat16), w2_ref[...],
                     preferred_element_type=jnp.float32) + b2_ref[...]
    m = jnp.max(logits, axis=1, keepdims=True)
    z = logits - m
    lse = jnp.log(jnp.sum(jnp.exp(z), axis=1, keepdims=True))
    o_ref[...] = z - lse                                             # log_softmax


# --------------------------- Weight preprocessing -----------------------------


def _conv_pool_half_as_matrix(wconv_np, C, H, W, row_offset):
    """Dense matrix M of shape (C*H*W, out_chan*maxp_h*conv_w) such that
    x.reshape(B,-1) @ M equals the valid Conv2d output restricted to conv rows
    (row_offset, row_offset+2, ...), flattened in PyTorch view(B,-1) order
    (channel, pooled_row, col)."""
    out_chan, _, kh, kw = wconv_np.shape
    conv_h = H - kh + 1
    conv_w = W - kw + 1
    maxp_h = conv_h // 2
    M = np.zeros((C, H, W, out_chan, maxp_h, conv_w), np.float32)
    w_t = np.transpose(wconv_np, (1, 2, 3, 0))          # (C, kh, kw, out_chan)
    for hp in range(maxp_h):
        i0 = 2 * hp + row_offset
        for wo in range(conv_w):
            M[:, i0:i0 + kh, wo:wo + kw, :, hp, wo] = w_t
    return M.reshape(C * H * W, out_chan * maxp_h * conv_w)


def prepare_params(params, input_dim, out_l_pad=1024):
    """One-time weight preprocessing (run OUTSIDE jit, at model-load time)."""
    wconv, bconv, w1, b1, w2, b2 = params
    C, H, W = input_dim
    wconv_np = np.asarray(wconv, np.float32)
    out_chan, _, kh, kw = wconv_np.shape
    conv_w = W - kw + 1
    maxp_h = (H - kh + 1) // 2
    half = maxp_h * conv_w
    F = out_chan * half
    assert w1.shape[0] == F, (w1.shape, F)               # guards flatten order
    out_l = w1.shape[1]
    assert out_l <= out_l_pad

    we = jnp.asarray(_conv_pool_half_as_matrix(wconv_np, C, H, W, 0),
                     jnp.bfloat16)                        # (CHW, F)
    wo = jnp.asarray(_conv_pool_half_as_matrix(wconv_np, C, H, W, 1),
                     jnp.bfloat16)                        # (CHW, F)
    bc = jnp.asarray(np.repeat(np.asarray(bconv, np.float32), half)[None, :])

    pad = out_l_pad - out_l
    # Zero-padding out_l -> 1024: exact (padded h cols are relu(0)=0, padded
    # w2 rows are 0) and keeps fc1 N / fc2 K 128-lane aligned.
    w1p = jnp.asarray(np.pad(np.asarray(w1, np.float32), ((0, 0), (0, pad))),
                      jnp.bfloat16)                       # (F, 1024)
    b1p = jnp.asarray(np.pad(np.asarray(b1, np.float32), (0, pad))[None, :])
    w2p = jnp.asarray(np.pad(np.asarray(w2, np.float32), ((0, pad), (0, 0))),
                      jnp.bfloat16)                       # (1024, nc)
    b2p = jnp.asarray(np.asarray(b2, np.float32)[None, :])
    return (we, wo, bc, w1p, b1p, w2p, b2p)


# --------------------------- Wrapper (glue) ----------------------------------


def spindle_graph_forward(x, prep):
    """Pallas implementation of SpindleGraph.forward (eval mode)."""
    we, wo, bc, w1p, b1p, w2p, b2p = prep
    B = x.shape[0]
    CHW, F = we.shape
    out_l_pad = w1p.shape[1]
    nb_class = w2p.shape[1]

    # Entire former im2col prologue is now just a 4 KB reshape + bf16 cast.
    xf = x.reshape(B, CHW).astype(jnp.bfloat16)

    out = pl.pallas_call(
        _spindle_fused_kernel,
        out_shape=jax.ShapeDtypeStruct((B, nb_class), jnp.float32),
        grid=(1,),
        in_specs=[
            pl.BlockSpec((B, CHW), lambda i: (0, 0)),
            pl.BlockSpec((CHW, F), lambda i: (0, 0)),
            pl.BlockSpec((CHW, F), lambda i: (0, 0)),
            pl.BlockSpec((1, F), lambda i: (0, 0)),
            pl.BlockSpec((F, out_l_pad), lambda i: (0, 0)),
            pl.BlockSpec((1, out_l_pad), lambda i: (0, 0)),
            pl.BlockSpec((out_l_pad, nb_class), lambda i: (0, 0)),
            pl.BlockSpec((1, nb_class), lambda i: (0, 0)),
        ],
        out_specs=pl.BlockSpec((B, nb_class), lambda i: (0, 0)),
        compiler_params=pltpu.CompilerParams(
            dimension_semantics=("arbitrary",)),
    )(xf, we, wo, bc, w1p, b1p, w2p, b2p)
    return out


# --------------------------- Pure-JAX reference ------------------------------


def reference_forward(x, params):
    wconv, bconv, w1, b1, w2, b2 = params
    conv = lax.conv_general_dilated(
        x, wconv, window_strides=(1, 1), padding="VALID",
        dimension_numbers=("NCHW", "OIHW", "NCHW"))
    conv = jnp.maximum(conv + bconv[None, :, None, None], 0.0)
    pooled = lax.reduce_window(conv, -jnp.inf, lax.max,
                               (1, 1, 2, 1), (1, 1, 2, 1), "VALID")
    feat = pooled.reshape(x.shape[0], -1)
    h = jnp.maximum(feat @ w1 + b1, 0.0)
    logits = h @ w2 + b2
    return jax.nn.log_softmax(logits, axis=1)


# --------------------------- Main --------------------------------------------


if __name__ == "__main__":
    # SpindleGraph(input_dim=(2, 8, 16), nb_class=5, dropout_rate=0.5)
    B, C, H, Wd = 2, 2, 8, 16
    nb_class = 5
    out_chan, out_l = 30, 1000
    kh, kw = 3, H                                  # Conv2d kernel_size=(3, height)
    conv_h, conv_w = H - kh + 1, Wd - kw + 1
    maxp_h, maxp_w = conv_h // 2, conv_w
    F = out_chan * maxp_h * maxp_w

    key = jax.random.PRNGKey(0)
    kx, kwc, kbc, kw1, kb1, kw2, kb2 = jax.random.split(key, 7)
    x = jax.random.normal(kx, (B, C, H, Wd), jnp.float32)

    # Deterministic synthetic parameters (shapes per the module's __init__).
    wconv = 0.1 * jax.random.normal(kwc, (out_chan, C, kh, kw), jnp.float32)
    bconv = 0.1 * jax.random.normal(kbc, (out_chan,), jnp.float32)
    w1 = 0.05 * jax.random.normal(kw1, (F, out_l), jnp.float32)        # fc1 (in, out)
    b1 = 0.05 * jax.random.normal(kb1, (out_l,), jnp.float32)
    w2 = 0.05 * jax.random.normal(kw2, (out_l, nb_class), jnp.float32)  # fc2 (in, out)
    b2 = 0.05 * jax.random.normal(kb2, (nb_class,), jnp.float32)
    params = (wconv, bconv, w1, b1, w2, b2)

    prep = prepare_params(params, (C, H, Wd))      # weight preprocessing, outside jit
    out = jax.jit(spindle_graph_forward)(x, prep)
    out = jax.block_until_ready(out)

    ref = reference_forward(x, params)
    assert out.shape == (B, nb_class), out.shape
    max_err = jnp.max(jnp.abs(out - ref))
    assert jnp.allclose(out, ref, atol=2e-2, rtol=2e-2), (
        f"max abs diff = {max_err}")

    print("KERNEL_OK")
</pallas_src>

<mosaic_0001>
module attributes {stable_mosaic.version = 11 : i64} {
  func.func @_spindle_fused_kernel(%arg0: i32, %arg1: memref<2x256xbf16, #tpu.memory_space<vmem>>, %arg2: memref<256x810xbf16, #tpu.memory_space<vmem>>, %arg3: memref<256x810xbf16, #tpu.memory_space<vmem>>, %arg4: memref<1x810xf32, #tpu.memory_space<vmem>>, %arg5: memref<810x1024xbf16, #tpu.memory_space<vmem>>, %arg6: memref<1x1024xf32, #tpu.memory_space<vmem>>, %arg7: memref<1024x5xbf16, #tpu.memory_space<vmem>>, %arg8: memref<1x5xf32, #tpu.memory_space<vmem>>, %arg9: memref<2x5xf32, #tpu.memory_space<vmem>>) attributes {dimension_semantics = [#tpu.dimension_semantics<arbitrary>], iteration_bounds = array<i64: 1>, scalar_prefetch = 0 : i64, scratch_operands = 0 : i64, tpu.core_type = #tpu.core_type<tc>, window_params = [{pipeline_mode = #tpu.pipeline_mode<synchronous>, transform_indices = @transform_0, window_bounds = array<i64: 2, 256>}, {pipeline_mode = #tpu.pipeline_mode<synchronous>, transform_indices = @transform_1, window_bounds = array<i64: 256, 810>}, {pipeline_mode = #tpu.pipeline_mode<synchronous>, transform_indices = @transform_2, window_bounds = array<i64: 256, 810>}, {pipeline_mode = #tpu.pipeline_mode<synchronous>, transform_indices = @transform_3, window_bounds = array<i64: 1, 810>}, {pipeline_mode = #tpu.pipeline_mode<synchronous>, transform_indices = @transform_4, window_bounds = array<i64: 810, 1024>}, {pipeline_mode = #tpu.pipeline_mode<synchronous>, transform_indices = @transform_5, window_bounds = array<i64: 1, 1024>}, {pipeline_mode = #tpu.pipeline_mode<synchronous>, transform_indices = @transform_6, window_bounds = array<i64: 1024, 5>}, {pipeline_mode = #tpu.pipeline_mode<synchronous>, transform_indices = @transform_7, window_bounds = array<i64: 1, 5>}, {pipeline_mode = #tpu.pipeline_mode<synchronous>, transform_indices = @transform_8, window_bounds = array<i64: 2, 5>}]} {
    %c0 = arith.constant 0 : index
    %c0_0 = arith.constant 0 : index
    %0 = vector.load %arg1[%c0, %c0_0] : memref<2x256xbf16, #tpu.memory_space<vmem>>, vector<2x256xbf16>
    %c0_1 = arith.constant 0 : index
    %c0_2 = arith.constant 0 : index
    %1 = vector.load %arg2[%c0_1, %c0_2] : memref<256x810xbf16, #tpu.memory_space<vmem>>, vector<256x810xbf16>
    %cst = arith.constant dense<0.000000e+00> : vector<2x810xf32>
    %2 = tpu.matmul %0, %1, %cst {dimension_numbers = #tpu.dot_dimension_numbers<[1], [0], [0], [1], [0, 0, 1, 1], [], []>} : vector<2x256xbf16>, vector<256x810xbf16>, vector<2x810xf32> -> vector<2x810xf32>
    %c0_3 = arith.constant 0 : index
    %c0_4 = arith.constant 0 : index
    %3 = vector.load %arg3[%c0_3, %c0_4] : memref<256x810xbf16, #tpu.memory_space<vmem>>, vector<256x810xbf16>
    %cst_5 = arith.constant dense<0.000000e+00> : vector<2x810xf32>
    %4 = tpu.matmul %0, %3, %cst_5 {dimension_numbers = #tpu.dot_dimension_numbers<[1], [0], [0], [1], [0, 0, 1, 1], [], []>} : vector<2x256xbf16>, vector<256x810xbf16>, vector<2x810xf32> -> vector<2x810xf32>
    %5 = arith.maximumf %2, %4 : vector<2x810xf32>
    %c0_6 = arith.constant 0 : index
    %c0_7 = arith.constant 0 : index
    %6 = vector.load %arg4[%c0_6, %c0_7] : memref<1x810xf32, #tpu.memory_space<vmem>>, vector<1x810xf32>
    %7 = vector.broadcast %6 : vector<1x810xf32> to vector<2x810xf32>
    %8 = arith.addf %5, %7 : vector<2x810xf32>
    %cst_8 = arith.constant 0.000000e+00 : f32
    %9 = vector.broadcast %cst_8 : f32 to vector<2x810xf32>
    %10 = arith.maximumf %8, %9 : vector<2x810xf32>
    %11 = arith.truncf %10 : vector<2x810xf32> to vector<2x810xbf16>
    %c0_9 = arith.constant 0 : index
    %c0_10 = arith.constant 0 : index
    %12 = vector.load %arg5[%c0_9, %c0_10] : memref<810x1024xbf16, #tpu.memory_space<vmem>>, vector<810x1024xbf16>
    %cst_11 = arith.constant dense<0.000000e+00> : vector<2x1024xf32>
    %13 = tpu.matmul %11, %12, %cst_11 {dimension_numbers = #tpu.dot_dimension_numbers<[1], [0], [0], [1], [0, 0, 1, 1], [], []>} : vector<2x810xbf16>, vector<810x1024xbf16>, vector<2x1024xf32> -> vector<2x1024xf32>
    %c0_12 = arith.constant 0 : index
    %c0_13 = arith.constant 0 : index
    %14 = vector.load %arg6[%c0_12, %c0_13] : memref<1x1024xf32, #tpu.memory_space<vmem>>, vector<1x1024xf32>
    %15 = vector.broadcast %14 : vector<1x1024xf32> to vector<2x1024xf32>
    %16 = arith.addf %13, %15 : vector<2x1024xf32>
    %cst_14 = arith.constant 0.000000e+00 : f32
    %17 = vector.broadcast %cst_14 : f32 to vector<2x1024xf32>
    %18 = arith.maximumf %16, %17 : vector<2x1024xf32>
    %19 = arith.truncf %18 : vector<2x1024xf32> to vector<2x1024xbf16>
    %c0_15 = arith.constant 0 : index
    %c0_16 = arith.constant 0 : index
    %20 = vector.load %arg7[%c0_15, %c0_16] : memref<1024x5xbf16, #tpu.memory_space<vmem>>, vector<1024x5xbf16>
    %cst_17 = arith.constant dense<0.000000e+00> : vector<2x5xf32>
    %21 = tpu.matmul %19, %20, %cst_17 {dimension_numbers = #tpu.dot_dimension_numbers<[1], [0], [0], [1], [0, 0, 1, 1], [], []>} : vector<2x1024xbf16>, vector<1024x5xbf16>, vector<2x5xf32> -> vector<2x5xf32>
    %c0_18 = arith.constant 0 : index
    %c0_19 = arith.constant 0 : index
    %22 = vector.load %arg8[%c0_18, %c0_19] : memref<1x5xf32, #tpu.memory_space<vmem>>, vector<1x5xf32>
    %23 = vector.broadcast %22 : vector<1x5xf32> to vector<2x5xf32>
    %24 = arith.addf %21, %23 : vector<2x5xf32>
    %cst_20 = arith.constant dense<0xFF800000> : vector<2xf32>
    %25 = vector.multi_reduction <maximumf>, %24, %cst_20 [1] : vector<2x5xf32> to vector<2xf32>
    %26 = vector.shape_cast %25 : vector<2xf32> to vector<2x1xf32>
    %27 = vector.broadcast %26 : vector<2x1xf32> to vector<2x5xf32>
    %28 = arith.subf %24, %27 : vector<2x5xf32>
    %29 = math.exp %28 : vector<2x5xf32>
    %cst_21 = arith.constant dense<0.000000e+00> : vector<2xf32>
    %30 = vector.multi_reduction <add>, %29, %cst_21 [1] : vector<2x5xf32> to vector<2xf32>
    %31 = vector.shape_cast %30 : vector<2xf32> to vector<2x1xf32>
    %32 = math.log %31 : vector<2x1xf32>
    %33 = vector.broadcast %32 : vector<2x1xf32> to vector<2x5xf32>
    %34 = arith.subf %28, %33 : vector<2x5xf32>
    %c0_22 = arith.constant 0 : index
    %c0_23 = arith.constant 0 : index
    %35 = vector.load %arg9[%c0_22, %c0_23] : memref<2x5xf32, #tpu.memory_space<vmem>>, vector<2x5xf32>
    tpu.vector_store %arg9[%c0_22, %c0_23], %34 {strides = array<i32>} : memref<2x5xf32, #tpu.memory_space<vmem>>, vector<2x5xf32>,
    return
  }
  func.func @transform_0(%arg0: i32) -> (i32, i32) {
    %c0_i32 = arith.constant 0 : i32
    %c0_i32_0 = arith.constant 0 : i32
    %c0_i32_1 = arith.constant 0 : i32
    return %c0_i32, %c0_i32_0 : i32, i32
  }
  func.func @transform_1(%arg0: i32) -> (i32, i32) {
    %c0_i32 = arith.constant 0 : i32
    %c0_i32_0 = arith.constant 0 : i32
    %c0_i32_1 = arith.constant 0 : i32
    return %c0_i32, %c0_i32_0 : i32, i32
  }
  func.func @transform_2(%arg0: i32) -> (i32, i32) {
    %c0_i32 = arith.constant 0 : i32
    %c0_i32_0 = arith.constant 0 : i32
    %c0_i32_1 = arith.constant 0 : i32
    return %c0_i32, %c0_i32_0 : i32, i32
  }
  func.func @transform_3(%arg0: i32) -> (i32, i32) {
    %c0_i32 = arith.constant 0 : i32
    %c0_i32_0 = arith.constant 0 : i32
    %c0_i32_1 = arith.constant 0 : i32
    return %c0_i32, %c0_i32_0 : i32, i32
  }
  func.func @transform_4(%arg0: i32) -> (i32, i32) {
    %c0_i32 = arith.constant 0 : i32
    %c0_i32_0 = arith.constant 0 : i32
    %c0_i32_1 = arith.constant 0 : i32
    return %c0_i32, %c0_i32_0 : i32, i32
  }
  func.func @transform_5(%arg0: i32) -> (i32, i32) {
    %c0_i32 = arith.constant 0 : i32
    %c0_i32_0 = arith.constant 0 : i32
    %c0_i32_1 = arith.constant 0 : i32
    return %c0_i32, %c0_i32_0 : i32, i32
  }
  func.func @transform_6(%arg0: i32) -> (i32, i32) {
    %c0_i32 = arith.constant 0 : i32
    %c0_i32_0 = arith.constant 0 : i32
    %c0_i32_1 = arith.constant 0 : i32
    return %c0_i32, %c0_i32_0 : i32, i32
  }
  func.func @transform_7(%arg0: i32) -> (i32, i32) {
    %c0_i32 = arith.constant 0 : i32
    %c0_i32_0 = arith.constant 0 : i32
    %c0_i32_1 = arith.constant 0 : i32
    return %c0_i32, %c0_i32_0 : i32, i32
  }
  func.func @transform_8(%arg0: i32) -> (i32, i32) {
    %c0_i32 = arith.constant 0 : i32
    %c0_i32_0 = arith.constant 0 : i32
    %c0_i32_1 = arith.constant 0 : i32
    return %c0_i32, %c0_i32_0 : i32, i32
  }
}

</mosaic_0001>

<bundles_post_ra>
// kernel: spindle_graph_forward.1
= control target key start
LH: loop header
LB: loop body
LE: loop exit
PB: predicated region body
PF: predicated region fallthrough
CT: control target
= control target key end

     0   :  { %v7055_v38 = vmov 1966171168   ;;  %v172_v40 = vlaneseq  ;;  %s9409_s0 = inlined_call_operand.vmem [shape: bf16[2,256], index: 0, kind: input, shape index: {}]   ;;  %s9410_s1 = inlined_call_operand.vmem [shape: bf16[256,810], index: 1, kind: input, shape index: {}]   ;;  %s9411_s2 = inlined_call_operand.vmem [shape: bf16[256,810], index: 2, kind: input, shape index: {}]   ;;  %s9412_s3 = inlined_call_operand.vmem [shape: f32[1,810], index: 3, kind: input, shape index: {}]   ;;  %s9413_s4 = inlined_call_operand.vmem [shape: bf16[810,1024], index: 4, kind: input, shape index: {}]   ;;  %s9414_s5 = inlined_call_operand.vmem [shape: f32[1,1024], index: 5, kind: input, shape index: {}]   ;;  %s9415_s6 = inlined_call_operand.vmem [shape: bf16[1024,5], index: 6, kind: input, shape index: {}]   ;;  %s9416_s7 = inlined_call_operand.vmem [shape: f32[1,5], index: 7, kind: input, shape index: {}]   ;;  %s9417_s8 = inlined_call_operand.hbm [shape: f32[2,5], index: 8, kind: output, shape index: {}]  }
   0x1   :  { %v6643_v0 = vld [vmem:[%s9410_s1 + $0x4] ss:$28 sps:$4 sm:$0xff]   ;;  %v6645_v1 = vld [vmem:[%s9410_s1 + $0xc] ss:$28 sps:$4 sm:$0xff]   ;;  %v6649_v4 = vld [vmem:[%s9410_s1 + $0x3c] ss:$28 sps:$4 sm:$0xff]   ;;  %v170_v39 = vunpack.c.l.s4 %v7055_v38 }
   0x2   :  { %761 = vmatprep.subr.bf16.mxu0 %v6643_v0  ;;  %v6647_v2 = vld [vmem:[%s9410_s1] ss:$28 sps:$4 sm:$0xff]   ;;  %v6648_v3 = vld [vmem:[%s9410_s1 + $0x8] ss:$28 sps:$4 sm:$0xff]   ;;  %802 = vmatprep.subr.bf16.mxu1 %v6645_v1  ;;  %v6653_v6 = vld [vmem:[%s9410_s1 + $0x38] ss:$28 sps:$4 sm:$0xff]  }
   0x3   :  { %762 = vmatpush1.bf16.msra.mxu0 %v6647_v2  ;;  %803 = vmatpush1.bf16.msra.mxu1 %v6648_v3  ;;  %v6651_v5 = vld [vmem:[%s9410_s1 + $0x44] ss:$28 sps:$4 sm:$0xff]   ;;  %v6655_v8 = vld [vmem:[%s9410_s1 + $0x74] ss:$28 sps:$4 sm:$0xff]   ;;  %v6657_v9 = vld [vmem:[%s9410_s1 + $0x7c] ss:$28 sps:$4 sm:$0xff]   ;;  %v171_v45 = vunpack.c.0.s8 %v170_v39 }
   0x4   :  { %763 = vmatprep.subr.bf16.mxu0 %v6649_v4  ;;  %v6654_v7 = vld [vmem:[%s9410_s1 + $0x40] ss:$28 sps:$4 sm:$0xff]   ;;  %804 = vmatprep.subr.bf16.mxu1 %v6651_v5  ;;  %v6659_v10 = vld [vmem:[%s9410_s1 + $0x70] ss:$28 sps:$4 sm:$0xff]   ;;  %v6660_v11 = vld [vmem:[%s9410_s1 + $0x78] ss:$28 sps:$4 sm:$0xff]  }
   0x5   :  { %v6661_v12 = vld [vmem:[%s9410_s1 + $0xac] ss:$28 sps:$4 sm:$0xff]   ;;  %v6663_v13 = vld [vmem:[%s9410_s1 + $0xb4] ss:$28 sps:$4 sm:$0xff]   ;;  %v6667_v16 = vld [vmem:[%s9410_s1 + $0xe4] ss:$28 sps:$4 sm:$0xff]  }
   0x6   :  { %v6665_v14 = vld [vmem:[%s9410_s1 + $0xa8] ss:$28 sps:$4 sm:$0xff]   ;;  %v6666_v15 = vld [vmem:[%s9410_s1 + $0xb0] ss:$28 sps:$4 sm:$0xff]   ;;  %v6671_v18 = vld [vmem:[%s9410_s1 + $0xe0] ss:$28 sps:$4 sm:$0xff]  }
   0x7   :  { %764 = vmatpush1.bf16.msra.mxu0 %v6653_v6  ;;  %805 = vmatpush1.bf16.msra.mxu1 %v6654_v7  ;;  %v6669_v17 = vld [vmem:[%s9410_s1 + $0xec] ss:$28 sps:$4 sm:$0xff]   ;;  %v6673_v20 = vld [vmem:[%s9410_s1 + $0x11c] ss:$28 sps:$4 sm:$0xff]   ;;  %v6675_v21 = vld [vmem:[%s9410_s1 + $0x124] ss:$28 sps:$4 sm:$0xff]  }
   0x8   :  { %765 = vmatprep.subr.bf16.mxu0 %v6655_v8  ;;  %806 = vmatprep.subr.bf16.mxu1 %v6657_v9  ;;  %v6672_v19 = vld [vmem:[%s9410_s1 + $0xe8] ss:$28 sps:$4 sm:$0xff]   ;;  %v6677_v22 = vld [vmem:[%s9410_s1 + $0x118] ss:$28 sps:$4 sm:$0xff]   ;;  %v6678_v23 = vld [vmem:[%s9410_s1 + $0x120] ss:$28 sps:$4 sm:$0xff]  }
   0x9   :  { %v6679_v24 = vld [vmem:[%s9410_s1 + $0x154] ss:$28 sps:$4 sm:$0xff]   ;;  %v6681_v25 = vld [vmem:[%s9410_s1 + $0x15c] ss:$28 sps:$4 sm:$0xff]   ;;  %v6685_v28 = vld [vmem:[%s9410_s1 + $0x18c] ss:$28 sps:$4 sm:$0xff]  }
   0xa   :  { %v6683_v26 = vld [vmem:[%s9410_s1 + $0x150] ss:$28 sps:$4 sm:$0xff]   ;;  %v6684_v27 = vld [vmem:[%s9410_s1 + $0x158] ss:$28 sps:$4 sm:$0xff]   ;;  %v6689_v30 = vld [vmem:[%s9410_s1 + $0x188] ss:$28 sps:$4 sm:$0xff]  }
   0xb   :  { %766 = vmatpush1.bf16.msra.mxu0 %v6659_v10  ;;  %807 = vmatpush1.bf16.msra.mxu1 %v6660_v11  ;;  %v6687_v29 = vld [vmem:[%s9410_s1 + $0x194] ss:$28 sps:$4 sm:$0xff]   ;;  %v6691_v32 = vld [vmem:[%s9410_s1 + $0x1c4] ss:$28 sps:$4 sm:$0xff]   ;;  %v6693_v33 = vld [vmem:[%s9410_s1 + $0x1cc] ss:$28 sps:$4 sm:$0xff]  }
   0xc   :  { %767 = vmatprep.subr.bf16.mxu0 %v6661_v12  ;;  %808 = vmatprep.subr.bf16.mxu1 %v6663_v13  ;;  %v6690_v31 = vld [vmem:[%s9410_s1 + $0x190] ss:$28 sps:$4 sm:$0xff]   ;;  %v6695_v34 = vld [vmem:[%s9410_s1 + $0x1c0] ss:$28 sps:$4 sm:$0xff]   ;;  %v6696_v35 = vld [vmem:[%s9410_s1 + $0x1c8] ss:$28 sps:$4 sm:$0xff]  }
   0xd   :  { %v6697_v36 = vld [vmem:[%s9410_s1 + $0x1fc] ss:$28 sps:$4 sm:$0xff]   ;;  %v6699_v37 = vld [vmem:[%s9410_s1 + $0x204] ss:$28 sps:$4 sm:$0xff]   ;;  %v6703_v43 = vld [vmem:[%s9410_s1 + $0x234] ss:$28 sps:$4 sm:$0xff]  }
   0xe   :  { %v6701_v41 = vld [vmem:[%s9410_s1 + $0x1f8] ss:$28 sps:$4 sm:$0xff]   ;;  %v6702_v42 = vld [vmem:[%s9410_s1 + $0x200] ss:$28 sps:$4 sm:$0xff]   ;;  %v7229_v46 = vshrl.u32 %v172_v40, 7 }
   0xf   :  { %768 = vmatpush1.bf16.msra.mxu0 %v6665_v14  ;;  %809 = vmatpush1.bf16.msra.mxu1 %v6666_v15  ;;  %v6705_v44 = vld [vmem:[%s9410_s1 + $0x23c] ss:$28 sps:$4 sm:$0xff]   ;;  %v6707_v47 = vld [vmem:[%s9410_s1 + $0x230] ss:$28 sps:$4 sm:$0xff]   ;;  %v6713_v51 = vld [vmem:[%s9410_s1 + $0x268] ss:$28 sps:$4 sm:$0xff]  }
  0x10   :  { %769 = vmatprep.subr.bf16.mxu0 %v6667_v16  ;;  %810 = vmatprep.subr.bf16.mxu1 %v6669_v17  ;;  %v6708_v48 = vld [vmem:[%s9410_s1 + $0x238] ss:$28 sps:$4 sm:$0xff]   ;;  %v6709_v49 = vld [vmem:[%s9410_s1 + $0x26c] ss:$28 sps:$4 sm:$0xff]   ;;  %v174_v52 = vsub.s32 %v171_v45, %v7229_v46  ;;  %v6715_v55 = vld [vmem:[%s9410_s1 + $0x2a4] ss:$28 sps:$4 sm:$0xff]  }
  0x11   :  { %v6711_v50 = vld [vmem:[%s9410_s1 + $0x274] ss:$28 sps:$4 sm:$0xff]   ;;  %v5746_v53 = vld.sshfl [vmem:[%s9409_s0] sm:$0x11 pattern:$0x75316420] }
  0x12   :  { %v6714_v54 = vld [vmem:[%s9410_s1 + $0x270] ss:$28 sps:$4 sm:$0xff]   ;;  %v168_v56 = vcombine.high %v5746_v53, %v5746_v53  ;;  %v6719_v59 = vld [vmem:[%s9410_s1 + $0x2a0] ss:$28 sps:$4 sm:$0xff]   ;;  %v6720_v60 = vld [vmem:[%s9410_s1 + $0x2a8] ss:$28 sps:$4 sm:$0xff]   ;;  %v7314_v12 = vrot.slane %v5746_v53, %v174_v52 }
  0x13   :  { %770 = vmatpush1.bf16.msra.mxu0 %v6671_v18  ;;  %811 = vmatpush1.bf16.msra.mxu1 %v6672_v19  ;;  %v6717_v57 = vld [vmem:[%s9410_s1 + $0x2ac] ss:$28 sps:$4 sm:$0xff]   ;;  %v6721_v61 = vld [vmem:[%s9410_s1 + $0x2dc] ss:$28 sps:$4 sm:$0xff]   ;;  %v6723_v62 = vld [vmem:[%s9410_s1 + $0x2e4] ss:$28 sps:$4 sm:$0xff]  }
  0x14   :  { %771 = vmatprep.subr.bf16.mxu0 %v6673_v20  ;;  %812 = vmatprep.subr.bf16.mxu1 %v6675_v21  ;;  %v7259_v58 = vrot.slane %v168_v56, %v174_v52  ;;  %v6725_v63 = vld [vmem:[%s9410_s1 + $0x2d8] ss:$28 sps:$4 sm:$0xff]   ;;  %v6726_v0 = vld [vmem:[%s9410_s1 + $0x2e0] ss:$28 sps:$4 sm:$0xff]   ;;  %v6731_v3 = vld [vmem:[%s9410_s1 + $0x310] ss:$28 sps:$4 sm:$0xff]  }
  0x15   :  { %v6727_v1 = vld [vmem:[%s9410_s1 + $0x314] ss:$28 sps:$4 sm:$0xff]   ;;  %v6729_v2 = vld [vmem:[%s9410_s1 + $0x31c] ss:$28 sps:$4 sm:$0xff]   ;;  %v6733_v5 = vld [vmem:[%s9410_s1 + $0x34c] ss:$28 sps:$4 sm:$0xff]  }
  0x16   :  { %834 = vmatprep.mubr.bf16.mxu1 %v7259_v58  ;;  %793 = vmatprep.mubr.bf16.mxu0 %v7259_v58  ;;  %v6732_v4 = vld [vmem:[%s9410_s1 + $0x318] ss:$28 sps:$4 sm:$0xff]   ;;  %v6737_v7 = vld [vmem:[%s9410_s1 + $0x348] ss:$28 sps:$4 sm:$0xff]   ;;  %v6738_v8 = vld [vmem:[%s9410_s1 + $0x350] ss:$28 sps:$4 sm:$0xff]  }
  0x17   :  { %772 = vmatpush1.bf16.msra.mxu0 %v6677_v22  ;;  %813 = vmatpush1.bf16.msra.mxu1 %v6678_v23  ;;  %v6735_v6 = vld [vmem:[%s9410_s1 + $0x354] ss:$28 sps:$4 sm:$0xff]   ;;  %v6746_v14 = vld [vmem:[%s9410_s1 + $0x4c] ss:$28 sps:$4 sm:$0xff]   ;;  %v6751_v18 = vld [vmem:[%s9410_s1 + $0x84] ss:$28 sps:$4 sm:$0xff]  }
  0x18   :  { %773 = vmatprep.subr.bf16.mxu0 %v6679_v24  ;;  %814 = vmatprep.subr.bf16.mxu1 %v6681_v25  ;;  %v6741_v9 = vld [vmem:[%s9410_s1 + $0x14] ss:$28 sps:$4 sm:$0xff]   ;;  %v6744_v16 = vld [vmem:[%s9410_s1 + $0x48] ss:$28 sps:$4 sm:$0xff]   ;;  %v6749_v20 = vld [vmem:[%s9410_s1 + $0x80] ss:$28 sps:$4 sm:$0xff]  }
  0x19   :  { %v6742_v10 = vld [vmem:[%s9410_s1 + $0x1d8] ss:$28 sps:$4 sm:$0xff]   ;;  %v6739_v11 = vld [vmem:[%s9410_s1 + $0x10] ss:$28 sps:$4 sm:$0xff]   ;;  %v6752_v19 = vld [vmem:[%s9410_s1 + $0x248] ss:$28 sps:$4 sm:$0xff]  }
  0x1a   :  { %v6743_v13 = vld [vmem:[%s9410_s1 + $0x18] ss:$28 sps:$4 sm:$0xff]   ;;  %v6747_v15 = vld [vmem:[%s9410_s1 + $0x210] ss:$28 sps:$4 sm:$0xff]   ;;  %v6753_v21 = vld [vmem:[%s9410_s1 + $0x88] ss:$28 sps:$4 sm:$0xff]  }
  0x1b   :  { %774 = vmatpush1.bf16.msra.mxu0 %v6683_v26  ;;  %815 = vmatpush1.bf16.msra.mxu1 %v6684_v27  ;;  %v6748_v17 = vld [vmem:[%s9410_s1 + $0x50] ss:$28 sps:$4 sm:$0xff]   ;;  %v6756_v22 = vld [vmem:[%s9410_s1 + $0xbc] ss:$28 sps:$4 sm:$0xff]  }
  0x1c   :  { %775 = vmatprep.subr.bf16.mxu0 %v6685_v28  ;;  %816 = vmatprep.subr.bf16.mxu1 %v6687_v29  ;;  %v6757_v23 = vld [vmem:[%s9410_s1 + $0x280] ss:$28 sps:$4 sm:$0xff]   ;;  %v6754_v24 = vld [vmem:[%s9410_s1 + $0xb8] ss:$28 sps:$4 sm:$0xff]   ;;  %v6759_v28 = vld [vmem:[%s9410_s1 + $0xf0] ss:$28 sps:$4 sm:$0xff]  }
  0x1d   :  { %v6758_v25 = vld [vmem:[%s9410_s1 + $0xc0] ss:$28 sps:$4 sm:$0xff]   ;;  %v6761_v26 = vld [vmem:[%s9410_s1 + $0xf4] ss:$28 sps:$4 sm:$0xff]   ;;  %v6802_v56 = vld [vmem:[%s9411_s2 + $0xac] ss:$28 sps:$4 sm:$0xff]  }
  0x1e   :  { %v6762_v27 = vld [vmem:[%s9410_s1 + $0x2b8] ss:$28 sps:$4 sm:$0xff]   ;;  %v6777_v39 = vld [vmem:[%s9410_s1 + $0x360] ss:$28 sps:$4 sm:$0xff]  }
  0x1f   :  { %776 = vmatpush1.bf16.msra.mxu0 %v6689_v30  ;;  %817 = vmatpush1.bf16.msra.mxu1 %v6690_v31  ;;  %v6763_v29 = vld [vmem:[%s9410_s1 + $0xf8] ss:$28 sps:$4 sm:$0xff]   ;;  %v6766_v30 = vld [vmem:[%s9410_s1 + $0x12c] ss:$28 sps:$4 sm:$0xff]   ;;  %v6782_v45 = vld [vmem:[%s9411_s2] ss:$28 sps:$4 sm:$0xff]  }
  0x20   :  { %777 = vmatprep.subr.bf16.mxu0 %v6691_v32  ;;  %818 = vmatprep.subr.bf16.mxu1 %v6693_v33  ;;  %v6767_v31 = vld [vmem:[%s9410_s1 + $0x2f0] ss:$28 sps:$4 sm:$0xff]   ;;  %v6764_v32 = vld [vmem:[%s9410_s1 + $0x128] ss:$28 sps:$4 sm:$0xff]   ;;  %v6776_v38 = vld [vmem:[%s9410_s1 + $0x19c] ss:$28 sps:$4 sm:$0xff]  }
  0x21   :  { %v6768_v33 = vld [vmem:[%s9410_s1 + $0x130] ss:$28 sps:$4 sm:$0xff]   ;;  %v6774_v40 = vld [vmem:[%s9410_s1 + $0x198] ss:$28 sps:$4 sm:$0xff]   ;;  %v6791_v53 = vld [vmem:[%s9410_s1 + $0x240] ss:$28 sps:$4 sm:$0xff]  }
  0x22   :  { %v6796_v52 = vld [vmem:[%s9411_s2 + $0x74] ss:$28 sps:$4 sm:$0xff]  }
  0x23   :  { %778 = vmatpush1.bf16.msra.mxu0 %v6695_v34  ;;  %819 = vmatpush1.bf16.msra.mxu1 %v6696_v35  ;;  %v6771_v34 = vld [vmem:[%s9410_s1 + $0x164] ss:$28 sps:$4 sm:$0xff]  }
  0x24   :  { %779 = vmatprep.subr.bf16.mxu0 %v6697_v36  ;;  %820 = vmatprep.subr.bf16.mxu1 %v6699_v37  ;;  %v6772_v35 = vld [vmem:[%s9410_s1 + $0x328] ss:$28 sps:$4 sm:$0xff]   ;;  %v6769_v36 = vld [vmem:[%s9410_s1 + $0x160] ss:$28 sps:$4 sm:$0xff]  }
  0x25   :  { %v6773_v37 = vld [vmem:[%s9410_s1 + $0x168] ss:$28 sps:$4 sm:$0xff]  }
  0x27   :  { %780 = vmatpush1.bf16.msra.mxu0 %v6701_v41  ;;  %821 = vmatpush1.bf16.msra.mxu1 %v6702_v42  ;;  %v6778_v41 = vld [vmem:[%s9410_s1 + $0x1a0] ss:$28 sps:$4 sm:$0xff]   ;;  %v6781_v42 = vld [vmem:[%s9410_s1 + $0x1d4] ss:$28 sps:$4 sm:$0xff]  }
  0x28   :  { %781 = vmatprep.subr.bf16.mxu0 %v6703_v43  ;;  %822 = vmatprep.subr.bf16.mxu1 %v6705_v44  ;;  %v6784_v43 = vld [vmem:[%s9411_s2 + $0x4] ss:$28 sps:$4 sm:$0xff]   ;;  %v6779_v44 = vld [vmem:[%s9410_s1 + $0x1d0] ss:$28 sps:$4 sm:$0xff]  }
  0x2b   :  { %782 = vmatpush1.bf16.msra.mxu0 %v6707_v47  ;;  %823 = vmatpush1.bf16.msra.mxu1 %v6708_v48  ;;  %v6787_v47 = vld [vmem:[%s9410_s1 + $0x20c] ss:$28 sps:$4 sm:$0xff]   ;;  %v6790_v48 = vld [vmem:[%s9411_s2 + $0x3c] ss:$28 sps:$4 sm:$0xff]  }
  0x2c   :  { %783 = vmatprep.subr.bf16.mxu0 %v6709_v49  ;;  %824 = vmatprep.subr.bf16.mxu1 %v6711_v50  ;;  %v6785_v49 = vld [vmem:[%s9410_s1 + $0x208] ss:$28 sps:$4 sm:$0xff]   ;;  %v6788_v50 = vld [vmem:[%s9411_s2 + $0x38] ss:$28 sps:$4 sm:$0xff]  }
  0x2f   :  { %784 = vmatpush1.bf16.msra.mxu0 %v6713_v51  ;;  %825 = vmatpush1.bf16.msra.mxu1 %v6714_v54  ;;  %v6793_v51 = vld [vmem:[%s9410_s1 + $0x244] ss:$28 sps:$4 sm:$0xff]   ;;  %v6794_v54 = vld [vmem:[%s9411_s2 + $0x70] ss:$28 sps:$4 sm:$0xff]  }
  0x30   :  { %785 = vmatprep.subr.bf16.mxu0 %v6715_v55  ;;  %826 = vmatprep.subr.bf16.mxu1 %v6717_v57  ;;  %v6799_v55 = vld [vmem:[%s9410_s1 + $0x27c] ss:$28 sps:$4 sm:$0xff]  }
  0x31   :  { %v6797_v57 = vld [vmem:[%s9410_s1 + $0x278] ss:$28 sps:$4 sm:$0xff]  }
  0x33   :  { %786 = vmatpush1.bf16.msra.mxu0 %v6719_v59  ;;  %827 = vmatpush1.bf16.msra.mxu1 %v6720_v60  ;;  %v6800_v59 = vld [vmem:[%s9411_s2 + $0xa8] ss:$28 sps:$4 sm:$0xff]   ;;  %v6805_v60 = vld [vmem:[%s9410_s1 + $0x2b4] ss:$28 sps:$4 sm:$0xff]  }
  0x34   :  { %787 = vmatprep.subr.bf16.mxu0 %v6721_v61  ;;  %828 = vmatprep.subr.bf16.mxu1 %v6723_v62  ;;  %v6808_v61 = vld [vmem:[%s9411_s2 + $0xe4] ss:$28 sps:$4 sm:$0xff]   ;;  %v6803_v62 = vld [vmem:[%s9410_s1 + $0x2b0] ss:$28 sps:$4 sm:$0xff]  }
  0x37   :  { %788 = vmatpush1.bf16.msra.mxu0 %v6725_v63  ;;  %829 = vmatpush1.bf16.msra.mxu1 %v6726_v0  ;;  %v6806_v63 = vld [vmem:[%s9411_s2 + $0xe0] ss:$28 sps:$4 sm:$0xff]   ;;  %v6811_v0 = vld [vmem:[%s9410_s1 + $0x2ec] ss:$28 sps:$4 sm:$0xff]  }
  0x38   :  { %789 = vmatprep.subr.bf16.mxu0 %v6727_v1  ;;  %830 = vmatprep.subr.bf16.mxu1 %v6729_v2  ;;  %v6814_v1 = vld [vmem:[%s9411_s2 + $0x11c] ss:$28 sps:$4 sm:$0xff]   ;;  %v6809_v2 = vld [vmem:[%s9410_s1 + $0x2e8] ss:$28 sps:$4 sm:$0xff]  }
  0x3b   :  { %790 = vmatpush1.bf16.msra.mxu0 %v6731_v3  ;;  %831 = vmatpush1.bf16.msra.mxu1 %v6732_v4  ;;  %v6812_v3 = vld [vmem:[%s9411_s2 + $0x118] ss:$28 sps:$4 sm:$0xff]   ;;  %v6817_v4 = vld [vmem:[%s9410_s1 + $0x324] ss:$28 sps:$4 sm:$0xff]  }
  0x3c   :  { %791 = vmatprep.subr.bf16.mxu0 %v6733_v5  ;;  %832 = vmatprep.subr.bf16.mxu1 %v6735_v6  ;;  %v6820_v5 = vld [vmem:[%s9411_s2 + $0x154] ss:$28 sps:$4 sm:$0xff]   ;;  %v6815_v6 = vld [vmem:[%s9410_s1 + $0x320] ss:$28 sps:$4 sm:$0xff]  }
  0x3f   :  { %792 = vmatpush1.bf16.msra.mxu0 %v6737_v7  ;;  %833 = vmatpush1.bf16.msra.mxu1 %v6738_v8  ;;  %v6818_v7 = vld [vmem:[%s9411_s2 + $0x150] ss:$28 sps:$4 sm:$0xff]   ;;  %v6823_v8 = vld [vmem:[%s9410_s1 + $0x35c] ss:$28 sps:$4 sm:$0xff]  }
  0x40   :  { %843 = vmatprep.subr.bf16.mxu0 %v6741_v9  ;;  %6452 = vmatprep.subr.bf16.mxu1 %v6742_v10  ;;  %v6826_v9 = vld [vmem:[%s9411_s2 + $0x18c] ss:$28 sps:$4 sm:$0xff]   ;;  %v6821_v10 = vld [vmem:[%s9410_s1 + $0x358] ss:$28 sps:$4 sm:$0xff]  }
  0x42   :  { %835 = vmatmul.mubr.bf16.vlgmr.msra.gmra.mrb[0].mxu1 %v7314_v12  ;;  %794 = vmatmul.mubr.bf16.vlgmr.msra.gmra.mrb[0].mxu0 %v7314_v12 }
  0x43   :  { %844 = vmatpush1.bf16.msra.mxu0 %v6739_v11  ;;  %6453 = vmatpush3.bf16.msra.mxu1 %v6743_v13  ;;  %v6824_v11 = vld [vmem:[%s9411_s2 + $0x188] ss:$28 sps:$4 sm:$0xff]  }
  0x44   :  { %845 = vmatprep.subr.bf16.mxu0 %v6746_v14  ;;  %6454 = vmatprep.subr.bf16.mxu1 %v6747_v15  ;;  %v6829_v13 = vld [vmem:[%s9411_s2 + $0x1c4] ss:$28 sps:$4 sm:$0xff]   ;;  %v6832_v14 = vld [vmem:[%s9411_s2 + $0xc] ss:$28 sps:$4 sm:$0xff]  }
  0x45   :  { %916 = vmatprep.mubr.bf16.mxu1 %v7259_v58  ;;  %875 = vmatprep.mubr.bf16.mxu0 %v7259_v58  ;;  %v6827_v15 = vld [vmem:[%s9411_s2 + $0x1c0] ss:$28 sps:$4 sm:$0xff]  }
  0x47   :  { %846 = vmatpush1.bf16.msra.mxu0 %v6744_v16  ;;  %6455 = vmatpush3.bf16.msra.mxu1 %v6748_v17  ;;  %v6830_v16 = vld [vmem:[%s9411_s2 + $0x8] ss:$28 sps:$4 sm:$0xff]   ;;  %v6835_v17 = vld [vmem:[%s9411_s2 + $0x1fc] ss:$28 sps:$4 sm:$0xff]  }
  0x48   :  { %847 = vmatprep.subr.bf16.mxu0 %v6751_v18  ;;  %6456 = vmatprep.subr.bf16.mxu1 %v6752_v19  ;;  %v6838_v18 = vld [vmem:[%s9411_s2 + $0x44] ss:$28 sps:$4 sm:$0xff]   ;;  %v6833_v19 = vld [vmem:[%s9411_s2 + $0x1f8] ss:$28 sps:$4 sm:$0xff]  }
  0x4b   :  { %848 = vmatpush1.bf16.msra.mxu0 %v6749_v20  ;;  %6457 = vmatpush3.bf16.msra.mxu1 %v6753_v21  ;;  %v6836_v20 = vld [vmem:[%s9411_s2 + $0x40] ss:$28 sps:$4 sm:$0xff]   ;;  %v6841_v21 = vld [vmem:[%s9411_s2 + $0x234] ss:$28 sps:$4 sm:$0xff]  }
  0x4c   :  { %849 = vmatprep.subr.bf16.mxu0 %v6756_v22  ;;  %6458 = vmatprep.subr.bf16.mxu1 %v6757_v23  ;;  %v6844_v22 = vld [vmem:[%s9411_s2 + $0x7c] ss:$28 sps:$4 sm:$0xff]   ;;  %v6839_v23 = vld [vmem:[%s9411_s2 + $0x230] ss:$28 sps:$4 sm:$0xff]  }
  0x4f   :  { %850 = vmatpush1.bf16.msra.mxu0 %v6754_v24  ;;  %6459 = vmatpush3.bf16.msra.mxu1 %v6758_v25  ;;  %v6842_v24 = vld [vmem:[%s9411_s2 + $0x78] ss:$28 sps:$4 sm:$0xff]   ;;  %v6847_v25 = vld [vmem:[%s9411_s2 + $0x26c] ss:$28 sps:$4 sm:$0xff]  }
  0x50   :  { %851 = vmatprep.subr.bf16.mxu0 %v6761_v26  ;;  %6460 = vmatprep.subr.bf16.mxu1 %v6762_v27  ;;  %v6850_v26 = vld [vmem:[%s9411_s2 + $0xb4] ss:$28 sps:$4 sm:$0xff]   ;;  %v6845_v27 = vld [vmem:[%s9411_s2 + $0x268] ss:$28 sps:$4 sm:$0xff]  }
  0x53   :  { %852 = vmatpush1.bf16.msra.mxu0 %v6759_v28  ;;  %6461 = vmatpush3.bf16.msra.mxu1 %v6763_v29  ;;  %v6848_v28 = vld [vmem:[%s9411_s2 + $0xb0] ss:$28 sps:$4 sm:$0xff]   ;;  %v6853_v29 = vld [vmem:[%s9411_s2 + $0x2a4] ss:$28 sps:$4 sm:$0xff]  }
  0x54   :  { %853 = vmatprep.subr.bf16.mxu0 %v6766_v30  ;;  %6462 = vmatprep.subr.bf16.mxu1 %v6767_v31  ;;  %v6856_v30 = vld [vmem:[%s9411_s2 + $0xec] ss:$28 sps:$4 sm:$0xff]   ;;  %v6851_v31 = vld [vmem:[%s9411_s2 + $0x2a0] ss:$28 sps:$4 sm:$0xff]  }
  0x57   :  { %854 = vmatpush1.bf16.msra.mxu0 %v6764_v32  ;;  %6463 = vmatpush3.bf16.msra.mxu1 %v6768_v33  ;;  %v6854_v32 = vld [vmem:[%s9411_s2 + $0xe8] ss:$28 sps:$4 sm:$0xff]   ;;  %v6859_v33 = vld [vmem:[%s9411_s2 + $0x2dc] ss:$28 sps:$4 sm:$0xff]  }
  0x58   :  { %855 = vmatprep.subr.bf16.mxu0 %v6771_v34  ;;  %6464 = vmatprep.subr.bf16.mxu1 %v6772_v35  ;;  %v6862_v34 = vld [vmem:[%s9411_s2 + $0x124] ss:$28 sps:$4 sm:$0xff]   ;;  %v6857_v35 = vld [vmem:[%s9411_s2 + $0x2d8] ss:$28 sps:$4 sm:$0xff]  }
  0x5b   :  { %856 = vmatpush1.bf16.msra.mxu0 %v6769_v36  ;;  %6465 = vmatpush3.bf16.msra.mxu1 %v6773_v37  ;;  %v6860_v36 = vld [vmem:[%s9411_s2 + $0x120] ss:$28 sps:$4 sm:$0xff]   ;;  %v6865_v37 = vld [vmem:[%s9411_s2 + $0x314] ss:$28 sps:$4 sm:$0xff]  }
  0x5c   :  { %857 = vmatprep.subr.bf16.mxu0 %v6776_v38  ;;  %6466 = vmatprep.subr.bf16.mxu1 %v6777_v39  ;;  %v6868_v38 = vld [vmem:[%s9411_s2 + $0x15c] ss:$28 sps:$4 sm:$0xff]   ;;  %v6863_v39 = vld [vmem:[%s9411_s2 + $0x310] ss:$28 sps:$4 sm:$0xff]  }
  0x5f   :  { %858 = vmatpush1.bf16.msra.mxu0 %v6774_v40  ;;  %6467 = vmatpush3.bf16.msra.mxu1 %v6778_v41  ;;  %v6866_v40 = vld [vmem:[%s9411_s2 + $0x158] ss:$28 sps:$4 sm:$0xff]   ;;  %v6871_v41 = vld [vmem:[%s9411_s2 + $0x34c] ss:$28 sps:$4 sm:$0xff]  }
  0x60   :  { %859 = vmatprep.subr.bf16.mxu0 %v6781_v42  ;;  %1628 = vmatprep.subr.bf16.mxu1 %v6784_v43  ;;  %v6874_v42 = vld [vmem:[%s9411_s2 + $0x194] ss:$28 sps:$4 sm:$0xff]   ;;  %v6869_v43 = vld [vmem:[%s9411_s2 + $0x348] ss:$28 sps:$4 sm:$0xff]  }
  0x62   :  { %917 = vmatmul.mubr.bf16.vlgmr.msra.gmra.mrb[4].mxu1 %v7314_v12 }
  0x63   :  { %860 = vmatpush1.bf16.msra.mxu0 %v6779_v44  ;;  %1629 = vmatpush1.bf16.msra.mxu1 %v6782_v45  ;;  %v6872_v44 = vld [vmem:[%s9411_s2 + $0x190] ss:$28 sps:$4 sm:$0xff]  }
  0x64   :  { %861 = vmatprep.subr.bf16.mxu0 %v6787_v47  ;;  %1630 = vmatprep.subr.bf16.mxu1 %v6790_v48  ;;  %v6877_v45 = vld [vmem:[%s9411_s2 + $0x1cc] ss:$28 sps:$4 sm:$0xff]   ;;  %v6880_v47 = vld [vmem:[%s9411_s2 + $0x14] ss:$28 sps:$4 sm:$0xff]  }
  0x65   :  { %1660 = vmatprep.mubr.bf16.mxu1 %v7259_v58  ;;  %v6875_v48 = vld [vmem:[%s9411_s2 + $0x1c8] ss:$28 sps:$4 sm:$0xff]  }
  0x67   :  { %862 = vmatpush1.bf16.msra.mxu0 %v6785_v49  ;;  %1631 = vmatpush1.bf16.msra.mxu1 %v6788_v50  ;;  %v6878_v49 = vld [vmem:[%s9411_s2 + $0x10] ss:$28 sps:$4 sm:$0xff]   ;;  %v6883_v50 = vld [vmem:[%s9411_s2 + $0x204] ss:$28 sps:$4 sm:$0xff]  }
  0x68   :  { %863 = vmatprep.subr.bf16.mxu0 %v6793_v51  ;;  %1632 = vmatprep.subr.bf16.mxu1 %v6796_v52  ;;  %v6886_v51 = vld [vmem:[%s9411_s2 + $0x4c] ss:$28 sps:$4 sm:$0xff]   ;;  %v6881_v52 = vld [vmem:[%s9411_s2 + $0x200] ss:$28 sps:$4 sm:$0xff]  }
  0x6b   :  { %864 = vmatpush1.bf16.msra.mxu0 %v6791_v53  ;;  %1633 = vmatpush1.bf16.msra.mxu1 %v6794_v54  ;;  %v6884_v53 = vld [vmem:[%s9411_s2 + $0x48] ss:$28 sps:$4 sm:$0xff]   ;;  %v6889_v54 = vld [vmem:[%s9411_s2 + $0x23c] ss:$28 sps:$4 sm:$0xff]  }
  0x6c   :  { %865 = vmatprep.subr.bf16.mxu0 %v6799_v55  ;;  %1634 = vmatprep.subr.bf16.mxu1 %v6802_v56  ;;  %v6892_v55 = vld [vmem:[%s9411_s2 + $0x84] ss:$28 sps:$4 sm:$0xff]   ;;  %v6887_v56 = vld [vmem:[%s9411_s2 + $0x238] ss:$28 sps:$4 sm:$0xff]  }
  0x6f   :  { %866 = vmatpush1.bf16.msra.mxu0 %v6797_v57  ;;  %1635 = vmatpush1.bf16.msra.mxu1 %v6800_v59  ;;  %v6890_v57 = vld [vmem:[%s9411_s2 + $0x80] ss:$28 sps:$4 sm:$0xff]   ;;  %v6895_v59 = vld [vmem:[%s9411_s2 + $0x274] ss:$28 sps:$4 sm:$0xff]  }
  0x70   :  { %867 = vmatprep.subr.bf16.mxu0 %v6805_v60  ;;  %1636 = vmatprep.subr.bf16.mxu1 %v6808_v61  ;;  %v6898_v60 = vld [vmem:[%s9411_s2 + $0xbc] ss:$28 sps:$4 sm:$0xff]   ;;  %v6893_v61 = vld [vmem:[%s9411_s2 + $0x270] ss:$28 sps:$4 sm:$0xff]  }
  0x73   :  { %868 = vmatpush1.bf16.msra.mxu0 %v6803_v62  ;;  %1637 = vmatpush1.bf16.msra.mxu1 %v6806_v63  ;;  %v6896_v62 = vld [vmem:[%s9411_s2 + $0xb8] ss:$28 sps:$4 sm:$0xff]   ;;  %v6901_v63 = vld [vmem:[%s9411_s2 + $0x2ac] ss:$28 sps:$4 sm:$0xff]  }
  0x74   :  { %869 = vmatprep.subr.bf16.mxu0 %v6811_v0  ;;  %1638 = vmatprep.subr.bf16.mxu1 %v6814_v1  ;;  %v6904_v0 = vld [vmem:[%s9411_s2 + $0xf4] ss:$28 sps:$4 sm:$0xff]   ;;  %v6899_v1 = vld [vmem:[%s9411_s2 + $0x2a8] ss:$28 sps:$4 sm:$0xff]  }
  0x77   :  { %870 = vmatpush1.bf16.msra.mxu0 %v6809_v2  ;;  %1639 = vmatpush1.bf16.msra.mxu1 %v6812_v3  ;;  %v6902_v2 = vld [vmem:[%s9411_s2 + $0xf0] ss:$28 sps:$4 sm:$0xff]   ;;  %v6907_v3 = vld [vmem:[%s9411_s2 + $0x2e4] ss:$28 sps:$4 sm:$0xff]  }
  0x78   :  { %871 = vmatprep.subr.bf16.mxu0 %v6817_v4  ;;  %1640 = vmatprep.subr.bf16.mxu1 %v6820_v5  ;;  %v6910_v4 = vld [vmem:[%s9411_s2 + $0x12c] ss:$28 sps:$4 sm:$0xff]   ;;  %v6905_v5 = vld [vmem:[%s9411_s2 + $0x2e0] ss:$28 sps:$4 sm:$0xff]  }
  0x7b   :  { %872 = vmatpush1.bf16.msra.mxu0 %v6815_v6  ;;  %1641 = vmatpush1.bf16.msra.mxu1 %v6818_v7  ;;  %v6908_v6 = vld [vmem:[%s9411_s2 + $0x128] ss:$28 sps:$4 sm:$0xff]   ;;  %v6913_v7 = vld [vmem:[%s9411_s2 + $0x31c] ss:$28 sps:$4 sm:$0xff]  }
  0x7c   :  { %873 = vmatprep.subr.bf16.mxu0 %v6823_v8  ;;  %1642 = vmatprep.subr.bf16.mxu1 %v6826_v9  ;;  %v6916_v8 = vld [vmem:[%s9411_s2 + $0x164] ss:$28 sps:$4 sm:$0xff]   ;;  %v6911_v9 = vld [vmem:[%s9411_s2 + $0x318] ss:$28 sps:$4 sm:$0xff]  }
  0x7f   :  { %874 = vmatpush1.bf16.msra.mxu0 %v6821_v10  ;;  %1643 = vmatpush1.bf16.msra.mxu1 %v6824_v11  ;;  %v6914_v10 = vld [vmem:[%s9411_s2 + $0x160] ss:$28 sps:$4 sm:$0xff]   ;;  %v6919_v11 = vld [vmem:[%s9411_s2 + $0x354] ss:$28 sps:$4 sm:$0xff]  }
  0x80   :  { %1644 = vmatprep.subr.bf16.mxu1 %v6829_v13  ;;  %1669 = vmatprep.subr.bf16.mxu0 %v6832_v14  ;;  %v6922_v13 = vld [vmem:[%s9411_s2 + $0x19c] ss:$28 sps:$4 sm:$0xff]   ;;  %v6917_v14 = vld [vmem:[%s9411_s2 + $0x350] ss:$28 sps:$4 sm:$0xff]  }
  0x82   :  { %876 = vmatmul.mubr.bf16.vlgmr.msra.gmra.mrb[4].mxu0 %v7314_v12 }
  0x83   :  { %1645 = vmatpush1.bf16.msra.mxu1 %v6827_v15  ;;  %1670 = vmatpush1.bf16.msra.mxu0 %v6830_v16  ;;  %v6920_v15 = vld [vmem:[%s9411_s2 + $0x198] ss:$28 sps:$4 sm:$0xff]  }
  0x84   :  { %1646 = vmatprep.subr.bf16.mxu1 %v6835_v17  ;;  %1671 = vmatprep.subr.bf16.mxu0 %v6838_v18  ;;  %v6925_v16 = vld [vmem:[%s9411_s2 + $0x1d4] ss:$28 sps:$4 sm:$0xff]  }
  0x85   :  { %1701 = vmatprep.mubr.bf16.mxu0 %v7259_v58  ;;  %v6926_v17 = vld [vmem:[%s9411_s2 + $0x1d8] ss:$28 sps:$4 sm:$0xff]   ;;  %v6923_v18 = vld [vmem:[%s9411_s2 + $0x1d0] ss:$28 sps:$4 sm:$0xff]  }
  0x87   :  { %1647 = vmatpush1.bf16.msra.mxu1 %v6833_v19  ;;  %1672 = vmatpush1.bf16.msra.mxu0 %v6836_v20  ;;  %v6927_v19 = vld [vmem:[%s9411_s2 + $0x18] ss:$28 sps:$4 sm:$0xff]   ;;  %v6930_v20 = vld [vmem:[%s9411_s2 + $0x20c] ss:$28 sps:$4 sm:$0xff]  }
  0x88   :  { %1648 = vmatprep.subr.bf16.mxu1 %v6841_v21  ;;  %1673 = vmatprep.subr.bf16.mxu0 %v6844_v22  ;;  %v6931_v21 = vld [vmem:[%s9411_s2 + $0x210] ss:$28 sps:$4 sm:$0xff]   ;;  %v6928_v22 = vld [vmem:[%s9411_s2 + $0x208] ss:$28 sps:$4 sm:$0xff]  }
  0x8b   :  { %1649 = vmatpush1.bf16.msra.mxu1 %v6839_v23  ;;  %1674 = vmatpush1.bf16.msra.mxu0 %v6842_v24  ;;  %v6932_v23 = vld [vmem:[%s9411_s2 + $0x50] ss:$28 sps:$4 sm:$0xff]   ;;  %v6935_v24 = vld [vmem:[%s9411_s2 + $0x244] ss:$28 sps:$4 sm:$0xff]  }
  0x8c   :  { %1650 = vmatprep.subr.bf16.mxu1 %v6847_v25  ;;  %1675 = vmatprep.subr.bf16.mxu0 %v6850_v26  ;;  %v6936_v25 = vld [vmem:[%s9411_s2 + $0x248] ss:$28 sps:$4 sm:$0xff]   ;;  %v6933_v26 = vld [vmem:[%s9411_s2 + $0x240] ss:$28 sps:$4 sm:$0xff]  }
  0x8f   :  { %1651 = vmatpush1.bf16.msra.mxu1 %v6845_v27  ;;  %1676 = vmatpush1.bf16.msra.mxu0 %v6848_v28  ;;  %v6937_v27 = vld [vmem:[%s9411_s2 + $0x88] ss:$28 sps:$4 sm:$0xff]   ;;  %v6940_v28 = vld [vmem:[%s9411_s2 + $0x27c] ss:$28 sps:$4 sm:$0xff]  }
  0x90   :  { %1652 = vmatprep.subr.bf16.mxu1 %v6853_v29  ;;  %1677 = vmatprep.subr.bf16.mxu0 %v6856_v30  ;;  %v6938_v29 = vld [vmem:[%s9411_s2 + $0x278] ss:$28 sps:$4 sm:$0xff]   ;;  %v6942_v30 = vld [vmem:[%s9411_s2 + $0xc0] ss:$28 sps:$4 sm:$0xff]  }
  0x93   :  { %1653 = vmatpush1.bf16.msra.mxu1 %v6851_v31  ;;  %1678 = vmatpush1.bf16.msra.mxu0 %v6854_v32  ;;  %v6945_v31 = vld [vmem:[%s9411_s2 + $0x2b4] ss:$28 sps:$4 sm:$0xff]  }
  0x94   :  { %1654 = vmatprep.subr.bf16.mxu1 %v6859_v33  ;;  %1679 = vmatprep.subr.bf16.mxu0 %v6862_v34  ;;  %v6946_v32 = vld [vmem:[%s9411_s2 + $0x2b8] ss:$28 sps:$4 sm:$0xff]   ;;  %v6943_v33 = vld [vmem:[%s9411_s2 + $0x2b0] ss:$28 sps:$4 sm:$0xff]  }
  0x95   :  { %v6947_v34 = vld [vmem:[%s9411_s2 + $0xf8] ss:$28 sps:$4 sm:$0xff]  }
  0x97   :  { %1655 = vmatpush1.bf16.msra.mxu1 %v6857_v35  ;;  %1680 = vmatpush1.bf16.msra.mxu0 %v6860_v36  ;;  %v6950_v35 = vld [vmem:[%s9411_s2 + $0x2ec] ss:$28 sps:$4 sm:$0xff]  }
  0x98   :  { %1656 = vmatprep.subr.bf16.mxu1 %v6865_v37  ;;  %1681 = vmatprep.subr.bf16.mxu0 %v6868_v38  ;;  %v6951_v36 = vld [vmem:[%s9411_s2 + $0x2f0] ss:$28 sps:$4 sm:$0xff]   ;;  %v6948_v37 = vld [vmem:[%s9411_s2 + $0x2e8] ss:$28 sps:$4 sm:$0xff]  }
  0x99   :  { %v6952_v38 = vld [vmem:[%s9411_s2 + $0x130] ss:$28 sps:$4 sm:$0xff]  }
  0x9b   :  { %1657 = vmatpush1.bf16.msra.mxu1 %v6863_v39  ;;  %1682 = vmatpush1.bf16.msra.mxu0 %v6866_v40  ;;  %v6955_v39 = vld [vmem:[%s9411_s2 + $0x324] ss:$28 sps:$4 sm:$0xff]  }
  0x9c   :  { %1658 = vmatprep.subr.bf16.mxu1 %v6871_v41  ;;  %1683 = vmatprep.subr.bf16.mxu0 %v6874_v42  ;;  %v6956_v40 = vld [vmem:[%s9411_s2 + $0x328] ss:$28 sps:$4 sm:$0xff]   ;;  %v6953_v41 = vld [vmem:[%s9411_s2 + $0x320] ss:$28 sps:$4 sm:$0xff]  }
  0x9d   :  { %v6957_v42 = vld [vmem:[%s9411_s2 + $0x168] ss:$28 sps:$4 sm:$0xff]  }
  0x9f   :  { %1659 = vmatpush1.bf16.msra.mxu1 %v6869_v43  ;;  %1684 = vmatpush1.bf16.msra.mxu0 %v6872_v44  ;;  %v6960_v43 = vld [vmem:[%s9411_s2 + $0x35c] ss:$28 sps:$4 sm:$0xff]  }
  0xa0   :  { %1685 = vmatprep.subr.bf16.mxu0 %v6877_v45  ;;  %1710 = vmatprep.subr.bf16.mxu1 %v6880_v47  ;;  %v6961_v44 = vld [vmem:[%s9411_s2 + $0x360] ss:$28 sps:$4 sm:$0xff]  }
  0xa1   :  { %v1856_v45 = vld [vmem:[%s9413_s4] sm:$0xff] }
  0xa2   :  { %1661 = vmatmul.mubr.bf16.vlgmr.msra.gmra.mrb[8].mxu1 %v7314_v12  ;;  %v1860_v47 = vld [vmem:[%s9413_s4 + $0x20] sm:$0xff] }
  0xa3   :  { %1686 = vmatpush1.bf16.msra.mxu0 %v6875_v48  ;;  %1711 = vmatpush1.bf16.msra.mxu1 %v6878_v49  ;;  %v1857_v48 = vld [vmem:[%s9413_s4 + $0x8] sm:$0xff] }
  0xa4   :  { %1687 = vmatprep.subr.bf16.mxu0 %v6883_v50  ;;  %1712 = vmatprep.subr.bf16.mxu1 %v6886_v51  ;;  %v1861_v49 = vld [vmem:[%s9413_s4 + $0x28] sm:$0xff]  ;;  %v6958_v50 = vld [vmem:[%s9411_s2 + $0x358] ss:$28 sps:$4 sm:$0xff]   ;;  %v6962_v51 = vld [vmem:[%s9411_s2 + $0x1a0] ss:$28 sps:$4 sm:$0xff]  }
  0xa5   :  { %1742 = vmatprep.mubr.bf16.mxu1 %v7259_v58 }
  0xa7   :  { %1688 = vmatpush1.bf16.msra.mxu0 %v6881_v52  ;;  %1713 = vmatpush1.bf16.msra.mxu1 %v6884_v53  ;;  %v1864_v52 = vld [vmem:[%s9413_s4 + $0x40] sm:$0xff]  ;;  %v5972_v53 = vcombine.high %v1856_v45, %v1860_v47 }
  0xa8   :  { %1689 = vmatprep.subr.bf16.mxu0 %v6889_v54  ;;  %1714 = vmatprep.subr.bf16.mxu1 %v6892_v55  ;;  %v5974_v54 = vcombine.high %v1857_v48, %v1861_v49 }
  0xab   :  { %1690 = vmatpush1.bf16.msra.mxu0 %v6887_v56  ;;  %1715 = vmatpush1.bf16.msra.mxu1 %v6890_v57 }
  0xac   :  { %1691 = vmatprep.subr.bf16.mxu0 %v6895_v59  ;;  %1716 = vmatprep.subr.bf16.mxu1 %v6898_v60 }
  0xaf   :  { %1692 = vmatpush1.bf16.msra.mxu0 %v6893_v61  ;;  %1717 = vmatpush1.bf16.msra.mxu1 %v6896_v62 }
  0xb0   :  { %1693 = vmatprep.subr.bf16.mxu0 %v6901_v63  ;;  %1718 = vmatprep.subr.bf16.mxu1 %v6904_v0 }
  0xb3   :  { %1694 = vmatpush1.bf16.msra.mxu0 %v6899_v1  ;;  %1719 = vmatpush1.bf16.msra.mxu1 %v6902_v2 }
  0xb4   :  { %1695 = vmatprep.subr.bf16.mxu0 %v6907_v3  ;;  %1720 = vmatprep.subr.bf16.mxu1 %v6910_v4 }
  0xb7   :  { %1696 = vmatpush1.bf16.msra.mxu0 %v6905_v5  ;;  %1721 = vmatpush1.bf16.msra.mxu1 %v6908_v6 }
  0xb8   :  { %1697 = vmatprep.subr.bf16.mxu0 %v6913_v7  ;;  %1722 = vmatprep.subr.bf16.mxu1 %v6916_v8 }
  0xbb   :  { %1698 = vmatpush1.bf16.msra.mxu0 %v6911_v9  ;;  %1723 = vmatpush1.bf16.msra.mxu1 %v6914_v10 }
  0xbc   :  { %1699 = vmatprep.subr.bf16.mxu0 %v6919_v11  ;;  %1724 = vmatprep.subr.bf16.mxu1 %v6922_v13 }
  0xbf   :  { %1700 = vmatpush1.bf16.msra.mxu0 %v6917_v14  ;;  %1725 = vmatpush1.bf16.msra.mxu1 %v6920_v15 }
  0xc0   :  { %1726 = vmatprep.subr.bf16.mxu1 %v6925_v16  ;;  %6474 = vmatprep.subr.bf16.mxu0 %v6926_v17 }
  0xc2   :  { %1702 = vmatmul.mubr.bf16.vlgmr.msra.gmra.mrb[8].mxu0 %v7314_v12 }
  0xc3   :  { %1727 = vmatpush1.bf16.msra.mxu1 %v6923_v18  ;;  %6475 = vmatpush3.bf16.msra.mxu0 %v6927_v19 }
  0xc4   :  { %1728 = vmatprep.subr.bf16.mxu1 %v6930_v20  ;;  %6476 = vmatprep.subr.bf16.mxu0 %v6931_v21 }
  0xc5   :  { %1783 = vmatprep.mubr.bf16.mxu0 %v7259_v58  ;;  %v6941_v58 = vld [vmem:[%s9411_s2 + $0x280] ss:$28 sps:$4 sm:$0xff]  }
  0xc7   :  { %1729 = vmatpush1.bf16.msra.mxu1 %v6928_v22  ;;  %6477 = vmatpush3.bf16.msra.mxu0 %v6932_v23 }
  0xc8   :  { %1730 = vmatprep.subr.bf16.mxu1 %v6935_v24  ;;  %6478 = vmatprep.subr.bf16.mxu0 %v6936_v25 }
  0xcb   :  { %1731 = vmatpush1.bf16.msra.mxu1 %v6933_v26  ;;  %6479 = vmatpush3.bf16.msra.mxu0 %v6937_v27 }
  0xcc   :  { %1732 = vmatprep.subr.bf16.mxu1 %v6940_v28  ;;  %6480 = vmatprep.subr.bf16.mxu0 %v6941_v58 }
  0xcf   :  { %1733 = vmatpush1.bf16.msra.mxu1 %v6938_v29  ;;  %6481 = vmatpush3.bf16.msra.mxu0 %v6942_v30 }
  0xd0   :  { %1734 = vmatprep.subr.bf16.mxu1 %v6945_v31  ;;  %6482 = vmatprep.subr.bf16.mxu0 %v6946_v32 }
  0xd3   :  { %1735 = vmatpush1.bf16.msra.mxu1 %v6943_v33  ;;  %6483 = vmatpush3.bf16.msra.mxu0 %v6947_v34 }
  0xd4   :  { %1736 = vmatprep.subr.bf16.mxu1 %v6950_v35  ;;  %6484 = vmatprep.subr.bf16.mxu0 %v6951_v36 }
  0xd7   :  { %1737 = vmatpush1.bf16.msra.mxu1 %v6948_v37  ;;  %6485 = vmatpush3.bf16.msra.mxu0 %v6952_v38 }
  0xd8   :  { %1738 = vmatprep.subr.bf16.mxu1 %v6955_v39  ;;  %6486 = vmatprep.subr.bf16.mxu0 %v6956_v40 }
  0xdb   :  { %1739 = vmatpush1.bf16.msra.mxu1 %v6953_v41  ;;  %6487 = vmatpush3.bf16.msra.mxu0 %v6957_v42 }
  0xdc   :  { %1740 = vmatprep.subr.bf16.mxu1 %v6960_v43  ;;  %6488 = vmatprep.subr.bf16.mxu0 %v6961_v44 }
  0xdd   :  { %13 = vsyncpa [#allocation3], 0  ;;  %v1868_v55 = vld [vmem:[%s9413_s4 + $0x60] sm:$0xff]  ;;  %v1865_v56 = vld [vmem:[%s9413_s4 + $0x48] sm:$0xff]  ;;  %v5971_v59 = vcombine.low %v1856_v45, %v1860_v47  ;;  %v5973_v60 = vcombine.low %v1857_v48, %v1861_v49  ;;  %vm4342_vm0 = vcmask 1044480   ;;  %vm4338_vm1 = vcmask 343040  }
  0xde   :  { %v1869_v57 = vld [vmem:[%s9413_s4 + $0x68] sm:$0xff]  ;;  %v5980_v61 = vcombine.high %v1864_v52, %v1868_v55  ;;  %v1872_v63 = vld [vmem:[%s9413_s4 + $0x80] sm:$0xff]  ;;  %v5979_v3 = vcombine.low %v1864_v52, %v1868_v55  ;;  %vm5718_vm2 = vcmask 33792  }
  0xdf   :  { %1741 = vmatpush1.bf16.msra.mxu1 %v6958_v50  ;;  %6489 = vmatpush3.bf16.msra.mxu0 %v6962_v51  ;;  %v5982_v62 = vcombine.high %v1865_v56, %v1869_v57  ;;  %v1876_v0 = vld [vmem:[%s9413_s4 + $0xa0] sm:$0xff]  ;;  %v1873_v1 = vld [vmem:[%s9413_s4 + $0x88] sm:$0xff]  ;;  %v5981_v4 = vcombine.low %v1865_v56, %v1869_v57 }
  0xe0   :  { %4367 = vmatprep.subr.bf16.mxu0 %v5972_v53  ;;  %4531 = vmatprep.subr.bf16.mxu1 %v5974_v54  ;;  %v1877_v2 = vld [vmem:[%s9413_s4 + $0xa8] sm:$0xff]  ;;  %v5988_v5 = vcombine.high %v1872_v63, %v1876_v0  ;;  %v1880_v7 = vld [vmem:[%s9413_s4 + $0xc0] sm:$0xff]  ;;  %v5987_v10 = vcombine.low %v1872_v63, %v1876_v0 }
  0xe1   :  { %v5990_v6 = vcombine.high %v1873_v1, %v1877_v2  ;;  %v1884_v8 = vld [vmem:[%s9413_s4 + $0xe0] sm:$0xff]  ;;  %v1885_v9 = vld [vmem:[%s9413_s4 + $0xe8] sm:$0xff]  ;;  %v5989_v11 = vcombine.low %v1873_v1, %v1877_v2 }
  0xe2   :  { %1743 = vmatmul.mubr.bf16.vlgmr.msra.gmra.mrb[12].mxu1 %v7314_v12  ;;  %1784 = vmatmul.mubr.bf16.vlgmr.msra.gmra.mrb[12].mxu0 %v7314_v12  ;;  %v1881_v12 = vld [vmem:[%s9413_s4 + $0xc8] sm:$0xff]  ;;  %v5996_v13 = vcombine.high %v1880_v7, %v1884_v8  ;;  %v1888_v15 = vld [vmem:[%s9413_s4 + $0x100] sm:$0xff]  ;;  %v5995_v19 = vcombine.low %v1880_v7, %v1884_v8 }
  0xe3   :  { %4368 = vmatpush1.bf16.msra.mxu0 %v5971_v59  ;;  %4532 = vmatpush1.bf16.msra.mxu1 %v5973_v60  ;;  %v5998_v14 = vcombine.high %v1881_v12, %v1885_v9  ;;  %v1892_v16 = vld [vmem:[%s9413_s4 + $0x120] sm:$0xff]  ;;  %v1889_v17 = vld [vmem:[%s9413_s4 + $0x108] sm:$0xff]  ;;  %v5997_v20 = vcombine.low %v1881_v12, %v1885_v9 }
  0xe4   :  { %4369 = vmatprep.subr.bf16.mxu0 %v5980_v61  ;;  %4533 = vmatprep.subr.bf16.mxu1 %v5982_v62  ;;  %v1893_v18 = vld [vmem:[%s9413_s4 + $0x128] sm:$0xff]  ;;  %v6004_v21 = vcombine.high %v1888_v15, %v1892_v16  ;;  %v1896_v23 = vld [vmem:[%s9413_s4 + $0x140] sm:$0xff]  ;;  %v6003_v27 = vcombine.low %v1888_v15, %v1892_v16 }
  0xe5   :  { %v6006_v22 = vcombine.high %v1889_v17, %v1893_v18  ;;  %v1900_v24 = vld [vmem:[%s9413_s4 + $0x160] sm:$0xff]  ;;  %v1897_v25 = vld [vmem:[%s9413_s4 + $0x148] sm:$0xff]  ;;  %v6005_v28 = vcombine.low %v1889_v17, %v1893_v18 }
  0xe6   :  { %v1901_v26 = vld [vmem:[%s9413_s4 + $0x168] sm:$0xff]  ;;  %v6012_v58 = vcombine.high %v1896_v23, %v1900_v24  ;;  %v1904_v30 = vld [vmem:[%s9413_s4 + $0x180] sm:$0xff]  ;;  %v6011_v34 = vcombine.low %v1896_v23, %v1900_v24 }
  0xe7   :  { %4370 = vmatpush1.bf16.msra.mxu0 %v5979_v3  ;;  %4534 = vmatpush1.bf16.msra.mxu1 %v5981_v4  ;;  %v6014_v29 = vcombine.high %v1897_v25, %v1901_v26  ;;  %v1908_v31 = vld [vmem:[%s9413_s4 + $0x1a0] sm:$0xff]  ;;  %v1905_v32 = vld [vmem:[%s9413_s4 + $0x188] sm:$0xff]  ;;  %v6013_v35 = vcombine.low %v1897_v25, %v1901_v26 }
  0xe8   :  { %4371 = vmatprep.subr.bf16.mxu0 %v5988_v5  ;;  %4535 = vmatprep.subr.bf16.mxu1 %v5990_v6  ;;  %v1909_v33 = vld [vmem:[%s9413_s4 + $0x1a8] sm:$0xff]  ;;  %v6020_v36 = vcombine.high %v1904_v30, %v1908_v31  ;;  %v1912_v38 = vld [vmem:[%s9413_s4 + $0x1c0] sm:$0xff]  ;;  %v6019_v42 = vcombine.low %v1904_v30, %v1908_v31 }
  0xe9   :  { %v6022_v37 = vcombine.high %v1905_v32, %v1909_v33  ;;  %v1916_v39 = vld [vmem:[%s9413_s4 + $0x1e0] sm:$0xff]  ;;  %v1913_v40 = vld [vmem:[%s9413_s4 + $0x1c8] sm:$0xff]  ;;  %v6021_v43 = vcombine.low %v1905_v32, %v1909_v33 }
  0xea   :  { %v1917_v41 = vld [vmem:[%s9413_s4 + $0x1e8] sm:$0xff]  ;;  %v6028_v44 = vcombine.high %v1912_v38, %v1916_v39  ;;  %v1920_v47 = vld [vmem:[%s9413_s4 + $0x200] sm:$0xff]  ;;  %v6027_v51 = vcombine.low %v1912_v38, %v1916_v39 }
  0xeb   :  { %4372 = vmatpush1.bf16.msra.mxu0 %v5987_v10  ;;  %4536 = vmatpush1.bf16.msra.mxu1 %v5989_v11  ;;  %v6030_v45 = vcombine.high %v1913_v40, %v1917_v41  ;;  %v1924_v48 = vld [vmem:[%s9413_s4 + $0x220] sm:$0xff]  ;;  %v1921_v49 = vld [vmem:[%s9413_s4 + $0x208] sm:$0xff]  ;;  %v6029_v52 = vcombine.low %v1913_v40, %v1917_v41 }
  0xec   :  { %4373 = vmatprep.subr.bf16.mxu0 %v5996_v13  ;;  %4537 = vmatprep.subr.bf16.mxu1 %v5998_v14  ;;  %v1925_v50 = vld [vmem:[%s9413_s4 + $0x228] sm:$0xff]  ;;  %v1928_v53 = vld [vmem:[%s9413_s4 + $0x240] sm:$0xff]  ;;  %v6036_v55 = vcombine.high %v1920_v47, %v1924_v48  ;;  %v6035_v2 = vcombine.low %v1920_v47, %v1924_v48 }
  0xed   :  { %v1932_v54 = vld [vmem:[%s9413_s4 + $0x260] sm:$0xff]  ;;  %v6038_v56 = vcombine.high %v1921_v49, %v1925_v50  ;;  %v7928_v60 = vld [vmem:[%s9413_s4 + $0x408] sm:$0xff]  ;;  %v6037_v3 = vcombine.low %v1921_v49, %v1925_v50 }
  0xee   :  { %v7918_v57 = vld [vmem:[%s9413_s4 + $0x400] sm:$0xff]  ;;  %v1929_v61 = vld [vmem:[%s9413_s4 + $0x248] sm:$0xff]  ;;  %v6044_v4 = vcombine.high %v1928_v53, %v1932_v54  ;;  %v6043_v9 = vcombine.low %v1928_v53, %v1932_v54 }
  0xef   :  { %4374 = vmatpush1.bf16.msra.mxu0 %v5995_v19  ;;  %4538 = vmatpush1.bf16.msra.mxu1 %v5997_v20  ;;  %v7923_v59 = vld [vmem:[%s9413_s4 + $0x420] sm:$0xff]  ;;  %v1933_v62 = vld [vmem:[%s9413_s4 + $0x268] sm:$0xff] }
  0xf0   :  { %4375 = vmatprep.subr.bf16.mxu0 %v6004_v21  ;;  %4539 = vmatprep.subr.bf16.mxu1 %v6006_v22  ;;  %v7939_v63 = vld [vmem:[%s9413_s4 + $0x428] sm:$0xff]  ;;  %v6099_v0 = vcombine.low %v7918_v57, %v7923_v59  ;;  %v6046_v5 = vcombine.high %v1929_v61, %v1933_v62  ;;  %v1936_v6 = vld [vmem:[%s9413_s4 + $0x280] sm:$0xff]  ;;  %v6045_v10 = vcombine.low %v1929_v61, %v1933_v62 }
  0xf1   :  { %v6101_v1 = vcombine.low %v7928_v60, %v7939_v63  ;;  %v1940_v7 = vld [vmem:[%s9413_s4 + $0x2a0] sm:$0xff]  ;;  %v1937_v8 = vld [vmem:[%s9413_s4 + $0x288] sm:$0xff] }
  0xf2   :  { %v1941_v12 = vld [vmem:[%s9413_s4 + $0x2a8] sm:$0xff]  ;;  %v6052_v11 = vcombine.high %v1936_v6, %v1940_v7  ;;  %v1944_v14 = vld [vmem:[%s9413_s4 + $0x2c0] sm:$0xff]  ;;  %v6051_v18 = vcombine.low %v1936_v6, %v1940_v7  ;;  %v6100_v7 = vcombine.high %v7918_v57, %v7923_v59 }
  0xf3   :  { %4376 = vmatpush1.bf16.msra.mxu0 %v6003_v27  ;;  %4540 = vmatpush1.bf16.msra.mxu1 %v6005_v28  ;;  %v6054_v13 = vcombine.high %v1937_v8, %v1941_v12  ;;  %v1948_v15 = vld [vmem:[%s9413_s4 + $0x2e0] sm:$0xff]  ;;  %v1945_v16 = vld [vmem:[%s9413_s4 + $0x2c8] sm:$0xff]  ;;  %v6053_v19 = vcombine.low %v1937_v8, %v1941_v12  ;;  %v6102_v8 = vcombine.high %v7928_v60, %v7939_v63 }
  0xf4   :  { %4377 = vmatprep.subr.bf16.mxu0 %v6012_v58  ;;  %4541 = vmatprep.subr.bf16.mxu1 %v6014_v29  ;;  %v1949_v17 = vld [vmem:[%s9413_s4 + $0x2e8] sm:$0xff]  ;;  %v6060_v20 = vcombine.high %v1944_v14, %v1948_v15  ;;  %v1952_v22 = vld [vmem:[%s9413_s4 + $0x300] sm:$0xff]  ;;  %v6059_v26 = vcombine.low %v1944_v14, %v1948_v15 }
  0xf5   :  { %v6062_v21 = vcombine.high %v1945_v16, %v1949_v17  ;;  %v1956_v23 = vld [vmem:[%s9413_s4 + $0x320] sm:$0xff]  ;;  %v1953_v24 = vld [vmem:[%s9413_s4 + $0x308] sm:$0xff]  ;;  %v6061_v27 = vcombine.low %v1945_v16, %v1949_v17 }
  0xf6   :  { %v1957_v25 = vld [vmem:[%s9413_s4 + $0x328] sm:$0xff]  ;;  %v6068_v28 = vcombine.high %v1952_v22, %v1956_v23  ;;  %v1960_v29 = vld [vmem:[%s9413_s4 + $0x340] sm:$0xff]  ;;  %v6067_v33 = vcombine.low %v1952_v22, %v1956_v23 }
  0xf7   :  { %4378 = vmatpush1.bf16.msra.mxu0 %v6011_v34  ;;  %4542 = vmatpush1.bf16.msra.mxu1 %v6013_v35  ;;  %v6070_v58 = vcombine.high %v1953_v24, %v1957_v25  ;;  %v1964_v30 = vld [vmem:[%s9413_s4 + $0x360] sm:$0xff]  ;;  %v1961_v31 = vld [vmem:[%s9413_s4 + $0x348] sm:$0xff]  ;;  %v6069_v34 = vcombine.low %v1953_v24, %v1957_v25 }
  0xf8   :  { %4379 = vmatprep.subr.bf16.mxu0 %v6020_v36  ;;  %4543 = vmatprep.subr.bf16.mxu1 %v6022_v37  ;;  %v1965_v32 = vld [vmem:[%s9413_s4 + $0x368] sm:$0xff]  ;;  %v6076_v35 = vcombine.high %v1960_v29, %v1964_v30  ;;  %v1968_v37 = vld [vmem:[%s9413_s4 + $0x380] sm:$0xff]  ;;  %v6075_v41 = vcombine.low %v1960_v29, %v1964_v30 }
  0xf9   :  { %v6078_v36 = vcombine.high %v1961_v31, %v1965_v32  ;;  %v1972_v38 = vld [vmem:[%s9413_s4 + $0x3a0] sm:$0xff]  ;;  %v1969_v39 = vld [vmem:[%s9413_s4 + $0x388] sm:$0xff] }
  0xfa   :  { %v1973_v40 = vld [vmem:[%s9413_s4 + $0x3a8] sm:$0xff]  ;;  %v1980_v49 = vld [vmem:[%s9413_s4 + $0x3e0] sm:$0xff] }
  0xfb   :  { %4380 = vmatpush1.bf16.msra.mxu0 %v6019_v42  ;;  %4544 = vmatpush1.bf16.msra.mxu1 %v6021_v43  ;;  %v6077_v42 = vcombine.low %v1961_v31, %v1965_v32  ;;  %v6084_v43 = vcombine.high %v1968_v37, %v1972_v38  ;;  %v1977_v50 = vld [vmem:[%s9413_s4 + $0x3c8] sm:$0xff]  ;;  %v6085_v61 = vcombine.low %v1969_v39, %v1973_v40  ;;  %v1992_v31 = vld [vmem:[%s9413_s4 + $0x440] sm:$0xff] }
  0xfc   :  { %4381 = vmatprep.subr.bf16.mxu0 %v6028_v44  ;;  %4545 = vmatprep.subr.bf16.mxu1 %v6030_v45  ;;  %v6086_v44 = vcombine.high %v1969_v39, %v1973_v40  ;;  %v1976_v45 = vld [vmem:[%s9413_s4 + $0x3c0] sm:$0xff]  ;;  %v2009_v57 = vld [vmem:[%s9413_s4 + $0x4c8] sm:$0xff] }
  0xfd   :  { %v2000_v40 = vld [vmem:[%s9413_s4 + $0x480] sm:$0xff]  ;;  %v2013_v59 = vld [vmem:[%s9413_s4 + $0x4e8] sm:$0xff] }
  0xff   :  { %4382 = vmatpush1.bf16.msra.mxu0 %v6027_v51  ;;  %4546 = vmatpush1.bf16.msra.mxu1 %v6029_v52  ;;  %v1981_v51 = vld [vmem:[%s9413_s4 + $0x3e8] sm:$0xff] }
 0x100   :  { %4383 = vmatprep.subr.bf16.mxu0 %v6036_v55  ;;  %4547 = vmatprep.subr.bf16.mxu1 %v6038_v56  ;;  %v6083_v56 = vcombine.low %v1968_v37, %v1972_v38  ;;  %v6093_v6 = vcombine.low %v1977_v50, %v1981_v51 }
 0x103   :  { %4384 = vmatpush1.bf16.msra.mxu0 %v6035_v2  ;;  %4548 = vmatpush1.bf16.msra.mxu1 %v6037_v3  ;;  %v6092_v3 = vcombine.high %v1976_v45, %v1980_v49 }
 0x104   :  { %4385 = vmatprep.subr.bf16.mxu0 %v6044_v4  ;;  %4549 = vmatprep.subr.bf16.mxu1 %v6046_v5  ;;  %v6094_v4 = vcombine.high %v1977_v50, %v1981_v51  ;;  %v6091_v5 = vcombine.low %v1976_v45, %v1980_v49  ;;  %v2008_v50 = vld [vmem:[%s9413_s4 + $0x4c0] sm:$0xff] }
 0x105   :  { %v2012_v51 = vld [vmem:[%s9413_s4 + $0x4e0] sm:$0xff] }
 0x107   :  { %4386 = vmatpush1.bf16.msra.mxu0 %v6043_v9  ;;  %4550 = vmatpush1.bf16.msra.mxu1 %v6045_v10 }
 0x108   :  { %4387 = vmatprep.subr.bf16.mxu0 %v6052_v11  ;;  %4551 = vmatprep.subr.bf16.mxu1 %v6054_v13 }
 0x10b   :  { %4388 = vmatpush1.bf16.msra.mxu0 %v6051_v18  ;;  %4552 = vmatpush1.bf16.msra.mxu1 %v6053_v19  ;;  %v1802_v18 = vsub.s32 0, %v7229_v46  ;;  %v8035_v19 = vld [vmem:[%s9412_s3] sm:$0x7f] }
 0x10c   :  { %4389 = vmatprep.subr.bf16.mxu0 %v6060_v20  ;;  %4553 = vmatprep.subr.bf16.mxu1 %v6062_v21  ;;  %v1806_v20 = vsub.s32 1, %v7229_v46 }
 0x10d   :  { %v1803_v21 = vrot.slane %v8035_v19, %v1802_v18 }
 0x10e   :  { %v1807_v23 = vrot.slane %v8035_v19, %v1806_v20 }
 0x10f   :  { %4390 = vmatpush1.bf16.msra.mxu0 %v6059_v26  ;;  %4554 = vmatpush1.bf16.msra.mxu1 %v6061_v27 }
 0x110   :  { %4391 = vmatprep.subr.bf16.mxu0 %v6068_v28  ;;  %4555 = vmatprep.subr.bf16.mxu1 %v6070_v58 }
 0x113   :  { %4392 = vmatpush1.bf16.msra.mxu0 %v6067_v33  ;;  %4556 = vmatpush1.bf16.msra.mxu1 %v6069_v34  ;;  %v1996_v33 = vld [vmem:[%s9413_s4 + $0x460] sm:$0xff]  ;;  %v1993_v34 = vld [vmem:[%s9413_s4 + $0x448] sm:$0xff] }
 0x114   :  { %4393 = vmatprep.subr.bf16.mxu0 %v6076_v35  ;;  %4557 = vmatprep.subr.bf16.mxu1 %v6078_v36  ;;  %v1997_v35 = vld [vmem:[%s9413_s4 + $0x468] sm:$0xff]  ;;  %v6108_v38 = vcombine.high %v1992_v31, %v1996_v33 }
 0x115   :  { %v8008_v47 = vpop.f32.mrb[0].mxu1  ;;  %v795_v48 = vpop.f32.mrb[0].mxu0  ;;  %v6110_v39 = vcombine.high %v1993_v34, %v1997_v35  ;;  %v6109_v45 = vcombine.low %v1993_v34, %v1997_v35 }
 0x116   :  { %v8019_v52 = vpop.f32.mrb[1].mxu1  ;;  %v797_v53 = vpop.f32.mrb[1].mxu0 }
 0x117   :  { %v840_v54 = vpop.f32.mrb[2].mxu1  ;;  %v799_v55 = vpop.f32.mrb[2].mxu0  ;;  %4394 = vmatpush1.bf16.msra.mxu0 %v6075_v41  ;;  %4558 = vmatpush1.bf16.msra.mxu1 %v6077_v42  ;;  %v2004_v41 = vld [vmem:[%s9413_s4 + $0x4a0] sm:$0xff]  ;;  %v2001_v42 = vld [vmem:[%s9413_s4 + $0x488] sm:$0xff] }
 0x118   :  { %v841_v62 = vpop.f32.mrb[3].mxu1  ;;  %v800_v2 = vpop.f32.mrb[3].mxu0  ;;  %4395 = vmatprep.subr.bf16.mxu0 %v6084_v43  ;;  %4559 = vmatprep.subr.bf16.mxu1 %v6086_v44  ;;  %v2005_v43 = vld [vmem:[%s9413_s4 + $0x4a8] sm:$0xff]  ;;  %v6107_v44 = vcombine.low %v1992_v31, %v1996_v33  ;;  %v6115_v60 = vcombine.low %v2000_v40, %v2004_v41  ;;  %v2020_v54 = vld [vmem:[%s9413_s4 + $0x520] sm:$0xff] }
 0x119   :  { %v6118_v49 = vcombine.high %v2001_v42, %v2005_v43  ;;  %v6117_v63 = vcombine.low %v2001_v42, %v2005_v43  ;;  %v2017_v55 = vld [vmem:[%s9413_s4 + $0x508] sm:$0xff]  ;;  %v6125_v62 = vcombine.low %v2009_v57, %v2013_v59  ;;  %v2052_v42 = vld [vmem:[%s9413_s4 + $0x620] sm:$0xff] }
 0x11a   :  { %v2049_v43 = vld [vmem:[%s9413_s4 + $0x608] sm:$0xff] }
 0x11b   :  { %4396 = vmatpush1.bf16.msra.mxu0 %v6083_v56  ;;  %4560 = vmatpush1.bf16.msra.mxu1 %v6085_v61  ;;  %v2021_v56 = vld [vmem:[%s9413_s4 + $0x528] sm:$0xff]  ;;  %v6123_v61 = vcombine.low %v2008_v50, %v2012_v51 }
 0x11c   :  { %4397 = vmatprep.subr.bf16.mxu0 %v6092_v3  ;;  %4561 = vmatprep.subr.bf16.mxu1 %v6094_v4  ;;  %v6134_v3 = vcombine.high %v2017_v55, %v2021_v56  ;;  %v2024_v4 = vld [vmem:[%s9413_s4 + $0x540] sm:$0xff] }
 0x11f   :  { %4398 = vmatpush1.bf16.msra.mxu0 %v6091_v5  ;;  %4562 = vmatpush1.bf16.msra.mxu1 %v6093_v6  ;;  %v2028_v5 = vld [vmem:[%s9413_s4 + $0x560] sm:$0xff]  ;;  %v2025_v6 = vld [vmem:[%s9413_s4 + $0x548] sm:$0xff] }
 0x120   :  { %4408 = vmatprep.subr.bf16.mxu0 %v6100_v7  ;;  %4572 = vmatprep.subr.bf16.mxu1 %v6102_v8  ;;  %v2029_v7 = vld [vmem:[%s9413_s4 + $0x568] sm:$0xff] }
 0x135   :  { %v6468_v12 = vpop.f32.mrb[4].mxu1 }
 0x136   :  { %v6469_v9 = vpop.f32.mrb[5].mxu1 }
 0x137   :  { %v8025_v10 = vadd.f32 %v6469_v9, %v6468_v12  ;;  %v6471_v11 = vpop.f32.mrb[6].mxu1  ;;  %v6133_v12 = vcombine.low %v2017_v55, %v2021_v56  ;;  %v6140_v9 = vcombine.high %v2024_v4, %v2028_v5 }
 0x138   :  { %v6472_v13 = vpop.f32.mrb[7].mxu1  ;;  %v6142_v11 = vcombine.high %v2025_v6, %v2029_v7 }
 0x139   :  { %v2032_v13 = vld [vmem:[%s9413_s4 + $0x580] sm:$0xff] }
 0x155   :  { %v8027_v14 = vpop.f32.mrb[4].mxu0 }
 0x156   :  { %v8029_v15 = vpop.f32.mrb[5].mxu0 }
 0x157   :  { %v881_v16 = vpop.f32.mrb[6].mxu0 }
 0x158   :  { %v882_v17 = vpop.f32.mrb[7].mxu0  ;;  %v2036_v16 = vld [vmem:[%s9413_s4 + $0x5a0] sm:$0xff] }
 0x159   :  { %v2033_v17 = vld [vmem:[%s9413_s4 + $0x588] sm:$0xff] }
 0x175   :  { %v1662_v22 = vpop.f32.mrb[8].mxu1 }
 0x176   :  { %v1791_v24 = vmax.f32 %v795_v48, %v1662_v22  ;;  %v1664_v25 = vpop.f32.mrb[9].mxu1  ;;  %v6116_v48 = vcombine.high %v2000_v40, %v2004_v41  ;;  %v6139_v22 = vcombine.low %v2024_v4, %v2028_v5  ;;  %v2048_v40 = vld [vmem:[%s9413_s4 + $0x600] sm:$0xff]  ;;  %v2069_v4 = vld [vmem:[%s9413_s4 + $0x6a8] sm:$0xff] }
 0x177   :  { %v1792_v26 = vmax.f32 %v797_v53, %v1664_v25  ;;  %v1666_v27 = vpop.f32.mrb[10].mxu1  ;;  %v2016_v53 = vld [vmem:[%s9413_s4 + $0x500] sm:$0xff]  ;;  %v6148_v25 = vcombine.high %v2032_v13, %v2036_v16 }
 0x178   :  { %v1835_v28 = vadd.f32 %v1803_v21, %v1791_v24  ;;  %v1667_v58 = vpop.f32.mrb[11].mxu1  ;;  %v6132_v2 = vcombine.high %v2016_v53, %v2020_v54  ;;  %v6131_v8 = vcombine.low %v2016_v53, %v2020_v54  ;;  %v2037_v21 = vld [vmem:[%s9413_s4 + $0x5a8] sm:$0xff]  ;;  %v1814_v24 = vsub.s32 3, %v7229_v46  ;;  %v2040_v27 = vld [vmem:[%s9413_s4 + $0x5c0] sm:$0xff] }
 0x179   :  { %v1836_v29 = vadd.f32 %v1807_v23, %v1792_v26  ;;  %v6141_v23 = vcombine.low %v2025_v6, %v2029_v7  ;;  %v6150_v26 = vcombine.high %v2033_v17, %v2037_v21  ;;  %v2041_v58 = vld [vmem:[%s9413_s4 + $0x5c8] sm:$0xff]  ;;  %v6149_v33 = vcombine.low %v2033_v17, %v2037_v21 }
 0x17a   :  { %v1842_v30 = vmax.f32 %v1835_v28, 0.0  ;;  %v2044_v28 = vld [vmem:[%s9413_s4 + $0x5e0] sm:$0xff]  ;;  %v1815_v31 = vrot.slane %v8035_v19, %v1814_v24  ;;  %v6163_v54 = vcombine.low %v2048_v40, %v2052_v42 }
 0x17b   :  { %v1843_v32 = vmax.f32 %v1836_v29, 0.0  ;;  %v2045_v29 = vld [vmem:[%s9413_s4 + $0x5e8] sm:$0xff] }
 0x17c   :  { %v8058_v37 = vpack.c.bf16 %v1842_v30, %v1842_v30 }
 0x17d   :  { %v8056_v36 = vpack.c.bf16 %v1843_v32, %v1843_v32  ;;  %v6147_v32 = vcombine.low %v2032_v13, %v2036_v16  ;;  %v2077_v13 = vld [vmem:[%s9413_s4 + $0x6e8] sm:$0xff] }
 0x17f   :  { %4399 = vmatprep.mubr.bf16.mxu0 %v8056_v36  ;;  %4563 = vmatprep.mubr.bf16.mxu1 %v8056_v36 }
 0x180   :  { %4400 = vmatmul.mubr.bf16.vlgmr.msra.gmra.mrb[16].mxu0 %v8058_v37  ;;  %4564 = vmatmul.mubr.bf16.vlgmr.msra.gmra.mrb[16].mxu1 %v8058_v37 }
 0x181   :  { %4409 = vmatpush1.bf16.msra.mxu0 %v6099_v0  ;;  %4573 = vmatpush1.bf16.msra.mxu1 %v6101_v1  ;;  %v6124_v0 = vcombine.high %v2008_v50, %v2012_v51  ;;  %v6126_v1 = vcombine.high %v2009_v57, %v2013_v59  ;;  %v6155_v50 = vcombine.low %v2040_v27, %v2044_v28  ;;  %v2056_v59 = vld [vmem:[%s9413_s4 + $0x640] sm:$0xff] }
 0x182   :  { %4410 = vmatprep.subr.bf16.mxu0 %v6108_v38  ;;  %4574 = vmatprep.subr.bf16.mxu1 %v6110_v39  ;;  %v6156_v38 = vcombine.high %v2040_v27, %v2044_v28  ;;  %v6158_v39 = vcombine.high %v2041_v58, %v2045_v29  ;;  %v6157_v51 = vcombine.low %v2041_v58, %v2045_v29  ;;  %v2085_v27 = vld [vmem:[%s9413_s4 + $0x728] sm:$0xff] }
 0x185   :  { %4411 = vmatpush1.bf16.msra.mxu0 %v6107_v44  ;;  %4575 = vmatpush1.bf16.msra.mxu1 %v6109_v45  ;;  %v2053_v44 = vld [vmem:[%s9413_s4 + $0x628] sm:$0xff] }
 0x186   :  { %4412 = vmatprep.subr.bf16.mxu0 %v6116_v48  ;;  %4576 = vmatprep.subr.bf16.mxu1 %v6118_v49  ;;  %v6166_v57 = vcombine.high %v2049_v43, %v2053_v44  ;;  %v6165_v55 = vcombine.low %v2049_v43, %v2053_v44  ;;  %v2096_v44 = vld [vmem:[%s9413_s4 + $0x780] sm:$0xff] }
 0x189   :  { %4413 = vmatpush1.bf16.msra.mxu0 %v6115_v60  ;;  %4577 = vmatpush1.bf16.msra.mxu1 %v6117_v63  ;;  %v2060_v63 = vld [vmem:[%s9413_s4 + $0x660] sm:$0xff] }
 0x18a   :  { %4414 = vmatprep.subr.bf16.mxu0 %v6124_v0  ;;  %4578 = vmatprep.subr.bf16.mxu1 %v6126_v1  ;;  %v2057_v0 = vld [vmem:[%s9413_s4 + $0x648] sm:$0xff]  ;;  %v6172_v56 = vcombine.high %v2056_v59, %v2060_v63  ;;  %v6171_v5 = vcombine.low %v2056_v59, %v2060_v63  ;;  %v2104_v63 = vld [vmem:[%s9413_s4 + $0x7c0] sm:$0xff] }
 0x18b   :  { %v2061_v1 = vld [vmem:[%s9413_s4 + $0x668] sm:$0xff] }
 0x18c   :  { %v6173_v6 = vcombine.low %v2057_v0, %v2061_v1 }
 0x18d   :  { %4415 = vmatpush1.bf16.msra.mxu0 %v6123_v61  ;;  %4579 = vmatpush1.bf16.msra.mxu1 %v6125_v62  ;;  %v6174_v61 = vcombine.high %v2057_v0, %v2061_v1  ;;  %v2064_v62 = vld [vmem:[%s9413_s4 + $0x680] sm:$0xff]  ;;  %v2105_v1 = vld [vmem:[%s9413_s4 + $0x7c8] sm:$0xff] }
 0x18e   :  { %4416 = vmatprep.subr.bf16.mxu0 %v6132_v2  ;;  %4580 = vmatprep.subr.bf16.mxu1 %v6134_v3  ;;  %v2068_v2 = vld [vmem:[%s9413_s4 + $0x6a0] sm:$0xff]  ;;  %v2065_v3 = vld [vmem:[%s9413_s4 + $0x688] sm:$0xff] }
 0x18f   :  { %v6180_v7 = vcombine.high %v2064_v62, %v2068_v2  ;;  %v6179_v16 = vcombine.low %v2064_v62, %v2068_v2  ;;  %v6181_v17 = vcombine.low %v2065_v3, %v2069_v4  ;;  %v2108_v0 = vld [vmem:[%s9413_s4 + $0x7e0] sm:$0xff] }
 0x191   :  { %4417 = vmatpush1.bf16.msra.mxu0 %v6131_v8  ;;  %4581 = vmatpush1.bf16.msra.mxu1 %v6133_v12  ;;  %v6182_v8 = vcombine.high %v2065_v3, %v2069_v4  ;;  %v2072_v12 = vld [vmem:[%s9413_s4 + $0x6c0] sm:$0xff]  ;;  %v6220_v3 = vcombine.high %v2104_v63, %v2108_v0 }
 0x192   :  { %4418 = vmatprep.subr.bf16.mxu0 %v6140_v9  ;;  %4582 = vmatprep.subr.bf16.mxu1 %v6142_v11  ;;  %v2076_v9 = vld [vmem:[%s9413_s4 + $0x6e0] sm:$0xff]  ;;  %v2073_v11 = vld [vmem:[%s9413_s4 + $0x6c8] sm:$0xff] }
 0x193   :  { %v6188_v21 = vcombine.high %v2072_v12, %v2076_v9  ;;  %v6187_v28 = vcombine.low %v2072_v12, %v2076_v9  ;;  %v6189_v58 = vcombine.low %v2073_v11, %v2077_v13  ;;  %v2112_v12 = vld [vmem:[%s9413_s4 + $0x800] sm:$0xff] }
 0x195   :  { %4419 = vmatpush1.bf16.msra.mxu0 %v6139_v22  ;;  %4583 = vmatpush1.bf16.msra.mxu1 %v6141_v23  ;;  %v8143_v30 = vpop.f32.mrb[8].mxu0  ;;  %v6190_v22 = vcombine.high %v2073_v11, %v2077_v13  ;;  %v2080_v23 = vld [vmem:[%s9413_s4 + $0x700] sm:$0xff] }
 0x196   :  { %v1793_v34 = vmax.f32 %v8008_v47, %v8143_v30  ;;  %v1705_v35 = vpop.f32.mrb[9].mxu0  ;;  %4420 = vmatprep.subr.bf16.mxu0 %v6148_v25  ;;  %4584 = vmatprep.subr.bf16.mxu1 %v6150_v26  ;;  %v2084_v25 = vld [vmem:[%s9413_s4 + $0x720] sm:$0xff]  ;;  %v2081_v26 = vld [vmem:[%s9413_s4 + $0x708] sm:$0xff] }
 0x197   :  { %v1794_v41 = vmax.f32 %v8019_v52, %v1705_v35  ;;  %v1707_v45 = vpop.f32.mrb[10].mxu0  ;;  %v6164_v52 = vcombine.high %v2048_v40, %v2052_v42  ;;  %v6196_v29 = vcombine.high %v2080_v23, %v2084_v25  ;;  %v2089_v35 = vld [vmem:[%s9413_s4 + $0x748] sm:$0xff]  ;;  %v6197_v40 = vcombine.low %v2081_v26, %v2085_v27  ;;  %v2116_v47 = vld [vmem:[%s9413_s4 + $0x820] sm:$0xff] }
 0x198   :  { %v1708_v48 = vpop.f32.mrb[11].mxu0  ;;  %v2100_v45 = vld [vmem:[%s9413_s4 + $0x7a0] sm:$0xff]  ;;  %v2113_v30 = vld [vmem:[%s9413_s4 + $0x808] sm:$0xff] }
 0x199   :  { %v1838_v49 = vadd.f32 %v1815_v31, %v1794_v41  ;;  %4421 = vmatpush1.bf16.msra.mxu0 %v6147_v32  ;;  %4585 = vmatpush1.bf16.msra.mxu1 %v6149_v33  ;;  %v6198_v31 = vcombine.high %v2081_v26, %v2085_v27  ;;  %v2088_v32 = vld [vmem:[%s9413_s4 + $0x740] sm:$0xff]  ;;  %v1810_v41 = vsub.s32 2, %v7229_v46  ;;  %v2097_v48 = vld [vmem:[%s9413_s4 + $0x788] sm:$0xff]  ;;  %v6212_v59 = vcombine.high %v2096_v44, %v2100_v45 }
 0x19a   :  { %4422 = vmatprep.subr.bf16.mxu0 %v6156_v38  ;;  %4586 = vmatprep.subr.bf16.mxu1 %v6158_v39  ;;  %v2092_v33 = vld [vmem:[%s9413_s4 + $0x760] sm:$0xff]  ;;  %v2093_v38 = vld [vmem:[%s9413_s4 + $0x768] sm:$0xff]  ;;  %v6195_v39 = vcombine.low %v2080_v23, %v2084_v25  ;;  %v6228_v27 = vcombine.high %v2112_v12, %v2116_v47 }
 0x19b   :  { %v1845_v60 = vmax.f32 %v1838_v49, 0.0  ;;  %v6204_v42 = vcombine.high %v2088_v32, %v2092_v33  ;;  %v6206_v43 = vcombine.high %v2089_v35, %v2093_v38  ;;  %v2101_v49 = vld [vmem:[%s9413_s4 + $0x7a8] sm:$0xff] }
 0x19c   :  { %v6213_v2 = vcombine.low %v2097_v48, %v2101_v49 }
 0x19d   :  { %v8175_v53 = vpack.c.bf16 %v1845_v60, %v1845_v60  ;;  %4423 = vmatpush1.bf16.msra.mxu0 %v6155_v50  ;;  %4587 = vmatpush1.bf16.msra.mxu1 %v6157_v51  ;;  %v6203_v50 = vcombine.low %v2088_v32, %v2092_v33  ;;  %v6205_v51 = vcombine.low %v2089_v35, %v2093_v38  ;;  %v2121_v32 = vld [vmem:[%s9413_s4 + $0x848] sm:$0xff] }
 0x19e   :  { %4424 = vmatprep.subr.bf16.mxu0 %v6164_v52  ;;  %4588 = vmatprep.subr.bf16.mxu1 %v6166_v57  ;;  %v1822_v52 = vsub.s32 5, %v7229_v46  ;;  %v1811_v57 = vrot.slane %v8035_v19, %v1810_v41  ;;  %v6214_v60 = vcombine.high %v2097_v48, %v2101_v49  ;;  %v2125_v33 = vld [vmem:[%s9413_s4 + $0x868] sm:$0xff]  ;;  %v6227_v38 = vcombine.low %v2112_v12, %v2116_v47  ;;  %v2152_v47 = vld [vmem:[%s9413_s4 + $0x940] sm:$0xff] }
 0x19f   :  { %4440 = vmatprep.mubr.bf16.mxu0 %v8175_v53  ;;  %4604 = vmatprep.mubr.bf16.mxu1 %v8175_v53  ;;  %v2129_v48 = vld [vmem:[%s9413_s4 + $0x888] sm:$0xff] }
 0x1a0   :  { %v1823_v62 = vrot.slane %v8035_v19, %v1822_v52  ;;  %v1837_v4 = vadd.f32 %v1811_v57, %v1793_v34  ;;  %v2117_v34 = vld [vmem:[%s9413_s4 + $0x828] sm:$0xff] }
 0x1a1   :  { %4425 = vmatpush1.bf16.msra.mxu0 %v6163_v54  ;;  %4589 = vmatpush1.bf16.msra.mxu1 %v6165_v55  ;;  %v2109_v54 = vld [vmem:[%s9413_s4 + $0x7e8] sm:$0xff]  ;;  %v6211_v55 = vcombine.low %v2096_v44, %v2100_v45  ;;  %v2128_v44 = vld [vmem:[%s9413_s4 + $0x880] sm:$0xff] }
 0x1a2   :  { %4426 = vmatprep.subr.bf16.mxu0 %v6172_v56  ;;  %4590 = vmatprep.subr.bf16.mxu1 %v6174_v61  ;;  %v6221_v25 = vcombine.low %v2105_v1, %v2109_v54  ;;  %v1844_v26 = vmax.f32 %v1837_v4, 0.0  ;;  %v2132_v45 = vld [vmem:[%s9413_s4 + $0x8a0] sm:$0xff]  ;;  %v2133_v49 = vld [vmem:[%s9413_s4 + $0x8a8] sm:$0xff] }
 0x1a3   :  { %v6244_v57 = vcombine.high %v2128_v44, %v2132_v45  ;;  %v2145_v4 = vld [vmem:[%s9413_s4 + $0x908] sm:$0xff] }
 0x1a5   :  { %4427 = vmatpush1.bf16.msra.mxu0 %v6171_v5  ;;  %4591 = vmatpush1.bf16.msra.mxu1 %v6173_v6 }
 0x1a6   :  { %4428 = vmatprep.subr.bf16.mxu0 %v6180_v7  ;;  %4592 = vmatprep.subr.bf16.mxu1 %v6182_v8  ;;  %v6222_v8 = vcombine.high %v2105_v1, %v2109_v54  ;;  %v2141_v1 = vld [vmem:[%s9413_s4 + $0x8e8] sm:$0xff]  ;;  %v6243_v54 = vcombine.low %v2128_v44, %v2132_v45 }
 0x1a9   :  { %4429 = vmatpush1.bf16.msra.mxu0 %v6179_v16  ;;  %4593 = vmatpush1.bf16.msra.mxu1 %v6181_v17  ;;  %v6219_v17 = vcombine.low %v2104_v63, %v2108_v0  ;;  %v2140_v63 = vld [vmem:[%s9413_s4 + $0x8e0] sm:$0xff]  ;;  %v2137_v0 = vld [vmem:[%s9413_s4 + $0x8c8] sm:$0xff] }
 0x1aa   :  { %4430 = vmatprep.subr.bf16.mxu0 %v6188_v21  ;;  %4594 = vmatprep.subr.bf16.mxu1 %v6190_v22 }
 0x1ad   :  { %4431 = vmatpush1.bf16.msra.mxu0 %v6187_v28  ;;  %4595 = vmatpush1.bf16.msra.mxu1 %v6189_v58  ;;  %v6230_v28 = vcombine.high %v2113_v30, %v2117_v34 }
 0x1ae   :  { %4432 = vmatprep.subr.bf16.mxu0 %v6196_v29  ;;  %4596 = vmatprep.subr.bf16.mxu1 %v6198_v31  ;;  %v2120_v29 = vld [vmem:[%s9413_s4 + $0x840] sm:$0xff] }
 0x1af   :  { %v2124_v31 = vld [vmem:[%s9413_s4 + $0x860] sm:$0xff] }
 0x1b1   :  { %4433 = vmatpush1.bf16.msra.mxu0 %v6195_v39  ;;  %4597 = vmatpush1.bf16.msra.mxu1 %v6197_v40  ;;  %v8297_v39 = vpack.c.bf16 %v1844_v26, %v1844_v26  ;;  %v6229_v40 = vcombine.low %v2113_v30, %v2117_v34  ;;  %v2156_v30 = vld [vmem:[%s9413_s4 + $0x960] sm:$0xff]  ;;  %v2153_v34 = vld [vmem:[%s9413_s4 + $0x948] sm:$0xff] }
 0x1b2   :  { %4434 = vmatprep.subr.bf16.mxu0 %v6204_v42  ;;  %4598 = vmatprep.subr.bf16.mxu1 %v6206_v43  ;;  %v6236_v42 = vcombine.high %v2120_v29, %v2124_v31  ;;  %v6238_v43 = vcombine.high %v2121_v32, %v2125_v33  ;;  %v2161_v26 = vld [vmem:[%s9413_s4 + $0x988] sm:$0xff] }
 0x1b5   :  { %4435 = vmatpush1.bf16.msra.mxu0 %v6203_v50  ;;  %4599 = vmatpush1.bf16.msra.mxu1 %v6205_v51  ;;  %v8256_v56 = vpop.f32.mrb[12].mxu1  ;;  %v6490_v61 = vpop.f32.mrb[12].mxu0  ;;  %v6235_v50 = vcombine.low %v2120_v29, %v2124_v31  ;;  %v6237_v51 = vcombine.low %v2121_v32, %v2125_v33  ;;  %v2168_v32 = vld [vmem:[%s9413_s4 + $0x9c0] sm:$0xff] }
 0x1b6   :  { %v1795_v5 = vmax.f32 %v8027_v14, %v8256_v56  ;;  %v1746_v6 = vpop.f32.mrb[13].mxu1  ;;  %v6491_v7 = vpop.f32.mrb[13].mxu0  ;;  %4436 = vmatprep.subr.bf16.mxu0 %v6212_v59  ;;  %4600 = vmatprep.subr.bf16.mxu1 %v6214_v60  ;;  %v6246_v59 = vcombine.high %v2129_v48, %v2133_v49  ;;  %v2136_v60 = vld [vmem:[%s9413_s4 + $0x8c0] sm:$0xff]  ;;  %v2245_v14 = vld [vmem:[%s9413_s4 + $0xc28] sm:$0xff]  ;;  %v1826_v56 = vsub.s32 6, %v7229_v46 }
 0x1b7   :  { %v1796_v9 = vmax.f32 %v8029_v15, %v1746_v6  ;;  %v8270_v11 = vadd.f32 %v6491_v7, %v6490_v61  ;;  %v1748_v13 = vpop.f32.mrb[14].mxu1  ;;  %v6493_v16 = vpop.f32.mrb[14].mxu0  ;;  %v6252_v61 = vcombine.high %v2136_v60, %v2140_v63  ;;  %v2149_v6 = vld [vmem:[%s9413_s4 + $0x928] sm:$0xff]  ;;  %v6251_v7 = vcombine.low %v2136_v60, %v2140_v63  ;;  %v2172_v33 = vld [vmem:[%s9413_s4 + $0x9e0] sm:$0xff] }
 0x1b8   :  { %v1749_v21 = vpop.f32.mrb[15].mxu1  ;;  %v6494_v22 = vpop.f32.mrb[15].mxu0  ;;  %v2157_v13 = vld [vmem:[%s9413_s4 + $0x968] sm:$0xff]  ;;  %v6284_v44 = vcombine.high %v2168_v32, %v2172_v33 }
 0x1b9   :  { %v1840_v15 = vadd.f32 %v1823_v62, %v1796_v9  ;;  %v1797_v23 = vmax.f32 %v8025_v10, %v8270_v11  ;;  %4437 = vmatpush1.bf16.msra.mxu0 %v6211_v55  ;;  %4601 = vmatpush1.bf16.msra.mxu1 %v6213_v2  ;;  %v6245_v55 = vcombine.low %v2129_v48, %v2133_v49  ;;  %v2144_v2 = vld [vmem:[%s9413_s4 + $0x900] sm:$0xff]  ;;  %v1862_v10 = vld [vmem:[%s9413_s4 + $0x30] sm:$0xff]  ;;  %v1859_v11 = vld [vmem:[%s9413_s4 + $0x18] sm:$0xff] }
 0x1ba   :  { %4438 = vmatprep.subr.bf16.mxu0 %v6220_v3  ;;  %4602 = vmatprep.subr.bf16.mxu1 %v6222_v8  ;;  %v6254_v62 = vcombine.high %v2137_v0, %v2141_v1  ;;  %v2148_v3 = vld [vmem:[%s9413_s4 + $0x920] sm:$0xff]  ;;  %v6253_v8 = vcombine.low %v2137_v0, %v2141_v1  ;;  %v6262_v9 = vcombine.high %v2145_v4, %v2149_v6 }
 0x1bb   :  { %v1847_v58 = vmax.f32 %v1840_v15, 0.0  ;;  %v6260_v12 = vcombine.high %v2144_v2, %v2148_v3  ;;  %v6259_v16 = vcombine.low %v2144_v2, %v2148_v3  ;;  %v6268_v21 = vcombine.high %v2152_v47, %v2156_v30  ;;  %v2160_v15 = vld [vmem:[%s9413_s4 + $0x980] sm:$0xff] }
 0x1bc   :  { %v6270_v22 = vcombine.high %v2153_v34, %v2157_v13  ;;  %v2176_v48 = vld [vmem:[%s9413_s4 + $0xa00] sm:$0xff] }
 0x1bd   :  { %v8295_v35 = vpack.c.bf16 %v1847_v58, %v1847_v58  ;;  %4439 = vmatpush1.bf16.msra.mxu0 %v6219_v17  ;;  %4603 = vmatpush1.bf16.msra.mxu1 %v6221_v25  ;;  %v6261_v17 = vcombine.low %v2145_v4, %v2149_v6  ;;  %v2164_v25 = vld [vmem:[%s9413_s4 + $0x9a0] sm:$0xff]  ;;  %v6269_v58 = vcombine.low %v2153_v34, %v2157_v13 }
 0x1be   :  { %4449 = vmatprep.subr.bf16.mxu0 %v6228_v27  ;;  %4613 = vmatprep.subr.bf16.mxu1 %v6230_v28  ;;  %v2165_v27 = vld [vmem:[%s9413_s4 + $0x9a8] sm:$0xff]  ;;  %v6267_v28 = vcombine.low %v2152_v47, %v2156_v30  ;;  %v6276_v29 = vcombine.high %v2160_v15, %v2164_v25  ;;  %v2180_v49 = vld [vmem:[%s9413_s4 + $0xa20] sm:$0xff] }
 0x1bf   :  { %v6278_v31 = vcombine.high %v2161_v26, %v2165_v27  ;;  %v6292_v60 = vcombine.high %v2176_v48, %v2180_v49  ;;  %v2184_v0 = vld [vmem:[%s9413_s4 + $0xa40] sm:$0xff] }
 0x1c0   :  { %4441 = vmatmul.mubr.bf16.vlgmr.msra.gmra.mrb[16].mxu0 %v8297_v39  ;;  %4605 = vmatmul.mubr.bf16.vlgmr.msra.gmra.mrb[16].mxu1 %v8297_v39  ;;  %v2188_v1 = vld [vmem:[%s9413_s4 + $0xa60] sm:$0xff] }
 0x1c1   :  { %4450 = vmatpush1.bf16.msra.mxu0 %v6227_v38  ;;  %4481 = vmatprep.mubr.bf16.mxu0 %v8295_v35  ;;  %v2169_v38 = vld [vmem:[%s9413_s4 + $0x9c8] sm:$0xff]  ;;  %v6300_v2 = vcombine.high %v2184_v0, %v2188_v1  ;;  %v2192_v4 = vld [vmem:[%s9413_s4 + $0xa80] sm:$0xff] }
 0x1c2   :  { %4614 = vmatpush1.bf16.msra.mxu1 %v6229_v40  ;;  %4645 = vmatprep.mubr.bf16.mxu1 %v8295_v35  ;;  %v2173_v40 = vld [vmem:[%s9413_s4 + $0x9e8] sm:$0xff]  ;;  %v2196_v6 = vld [vmem:[%s9413_s4 + $0xaa0] sm:$0xff] }
 0x1c3   :  { %4451 = vmatprep.subr.bf16.mxu0 %v6236_v42  ;;  %4615 = vmatprep.subr.bf16.mxu1 %v6238_v43  ;;  %v6275_v42 = vcombine.low %v2160_v15, %v2164_v25  ;;  %v6277_v43 = vcombine.low %v2161_v26, %v2165_v27  ;;  %v6286_v45 = vcombine.high %v2169_v38, %v2173_v40  ;;  %v2200_v34 = vld [vmem:[%s9413_s4 + $0xac0] sm:$0xff] }
 0x1c4   :  { %v6308_v47 = vcombine.high %v2192_v4, %v2196_v6  ;;  %v2204_v13 = vld [vmem:[%s9413_s4 + $0xae0] sm:$0xff] }
 0x1c5   :  { %4452 = vmatpush1.bf16.msra.mxu0 %v6235_v50  ;;  %v2177_v50 = vld [vmem:[%s9413_s4 + $0xa08] sm:$0xff]  ;;  %v6316_v15 = vcombine.high %v2200_v34, %v2204_v13  ;;  %v2208_v26 = vld [vmem:[%s9413_s4 + $0xb00] sm:$0xff] }
 0x1c6   :  { %4616 = vmatpush1.bf16.msra.mxu1 %v6237_v51  ;;  %4453 = vmatprep.subr.bf16.mxu0 %v6244_v57  ;;  %v2181_v51 = vld [vmem:[%s9413_s4 + $0xa28] sm:$0xff]  ;;  %v6283_v57 = vcombine.low %v2168_v32, %v2172_v33  ;;  %v2212_v27 = vld [vmem:[%s9413_s4 + $0xb20] sm:$0xff] }
 0x1c7   :  { %4617 = vmatprep.subr.bf16.mxu1 %v6246_v59  ;;  %v6285_v59 = vcombine.low %v2169_v38, %v2173_v40  ;;  %v6294_v63 = vcombine.high %v2177_v50, %v2181_v51  ;;  %v6324_v32 = vcombine.high %v2208_v26, %v2212_v27  ;;  %v2216_v38 = vld [vmem:[%s9413_s4 + $0xb40] sm:$0xff] }
 0x1c8   :  { %v2220_v40 = vld [vmem:[%s9413_s4 + $0xb60] sm:$0xff] }
 0x1c9   :  { %4454 = vmatpush1.bf16.msra.mxu0 %v6243_v54  ;;  %v2185_v54 = vld [vmem:[%s9413_s4 + $0xa48] sm:$0xff] }
 0x1ca   :  { %4618 = vmatpush1.bf16.msra.mxu1 %v6245_v55  ;;  %4455 = vmatprep.subr.bf16.mxu0 %v6252_v61  ;;  %v2189_v55 = vld [vmem:[%s9413_s4 + $0xa68] sm:$0xff]  ;;  %v6291_v61 = vcombine.low %v2176_v48, %v2180_v49  ;;  %v6332_v49 = vcombine.high %v2216_v38, %v2220_v40 }
 0x1cb   :  { %4619 = vmatprep.subr.bf16.mxu1 %v6254_v62  ;;  %v6293_v62 = vcombine.low %v2177_v50, %v2181_v51  ;;  %v6302_v3 = vcombine.high %v2185_v54, %v2189_v55  ;;  %v2224_v51 = vld [vmem:[%s9413_s4 + $0xb80] sm:$0xff] }
 0x1cd   :  { %4456 = vmatpush1.bf16.msra.mxu0 %v6251_v7  ;;  %v2193_v7 = vld [vmem:[%s9413_s4 + $0xa88] sm:$0xff] }
 0x1ce   :  { %4620 = vmatpush1.bf16.msra.mxu1 %v6253_v8  ;;  %4457 = vmatprep.subr.bf16.mxu0 %v6260_v12  ;;  %v2197_v8 = vld [vmem:[%s9413_s4 + $0xaa8] sm:$0xff]  ;;  %v6299_v12 = vcombine.low %v2184_v0, %v2188_v1 }
 0x1cf   :  { %4621 = vmatprep.subr.bf16.mxu1 %v6262_v9  ;;  %v6301_v9 = vcombine.low %v2185_v54, %v2189_v55  ;;  %v6310_v30 = vcombine.high %v2193_v7, %v2197_v8 }
 0x1d1   :  { %4458 = vmatpush1.bf16.msra.mxu0 %v6259_v16  ;;  %v2201_v16 = vld [vmem:[%s9413_s4 + $0xac8] sm:$0xff] }
 0x1d2   :  { %4622 = vmatpush1.bf16.msra.mxu1 %v6261_v17  ;;  %4459 = vmatprep.subr.bf16.mxu0 %v6268_v21  ;;  %v2205_v17 = vld [vmem:[%s9413_s4 + $0xae8] sm:$0xff]  ;;  %v6307_v21 = vcombine.low %v2192_v4, %v2196_v6 }
 0x1d3   :  { %4623 = vmatprep.subr.bf16.mxu1 %v6270_v22  ;;  %v6309_v22 = vcombine.low %v2193_v7, %v2197_v8  ;;  %v6318_v25 = vcombine.high %v2201_v16, %v2205_v17 }
 0x1d5   :  { %4460 = vmatpush1.bf16.msra.mxu0 %v6267_v28  ;;  %v2209_v28 = vld [vmem:[%s9413_s4 + $0xb08] sm:$0xff] }
 0x1d6   :  { %4624 = vmatpush1.bf16.msra.mxu1 %v6269_v58  ;;  %4461 = vmatprep.subr.bf16.mxu0 %v6276_v29  ;;  %v2213_v58 = vld [vmem:[%s9413_s4 + $0xb28] sm:$0xff]  ;;  %v6315_v29 = vcombine.low %v2200_v34, %v2204_v13 }
 0x1d7   :  { %4625 = vmatprep.subr.bf16.mxu1 %v6278_v31  ;;  %v6317_v31 = vcombine.low %v2201_v16, %v2205_v17  ;;  %v6326_v33 = vcombine.high %v2209_v28, %v2213_v58  ;;  %v6325_v48 = vcombine.low %v2209_v28, %v2213_v58 }
 0x1d9   :  { %4462 = vmatpush1.bf16.msra.mxu0 %v6275_v42  ;;  %v2217_v42 = vld [vmem:[%s9413_s4 + $0xb48] sm:$0xff] }
 0x1da   :  { %4626 = vmatpush1.bf16.msra.mxu1 %v6277_v43  ;;  %4463 = vmatprep.subr.bf16.mxu0 %v6284_v44  ;;  %v2221_v43 = vld [vmem:[%s9413_s4 + $0xb68] sm:$0xff]  ;;  %v6323_v44 = vcombine.low %v2208_v26, %v2212_v27  ;;  %v1827_v26 = vrot.slane %v8035_v19, %v1826_v56 }
 0x1db   :  { %4627 = vmatprep.subr.bf16.mxu1 %v6286_v45  ;;  %v1818_v45 = vsub.s32 4, %v7229_v46  ;;  %v6334_v50 = vcombine.high %v2217_v42, %v2221_v43  ;;  %v6333_v1 = vcombine.low %v2217_v42, %v2221_v43 }
 0x1dc   :  { %v1841_v43 = vadd.f32 %v1827_v26, %v1797_v23  ;;  %v1863_v23 = vld [vmem:[%s9413_s4 + $0x38] sm:$0xff]  ;;  %v1890_v26 = vld [vmem:[%s9413_s4 + $0x110] sm:$0xff] }
 0x1dd   :  { %4464 = vmatpush1.bf16.msra.mxu0 %v6283_v57  ;;  %v2228_v57 = vld [vmem:[%s9413_s4 + $0xba0] sm:$0xff]  ;;  %v1819_v0 = vrot.slane %v8035_v19, %v1818_v45  ;;  %v2257_v19 = vld [vmem:[%s9413_s4 + $0xc88] sm:$0xff] }
 0x1de   :  { %4628 = vmatpush1.bf16.msra.mxu1 %v6285_v59  ;;  %4465 = vmatprep.subr.bf16.mxu0 %v6292_v60  ;;  %v2225_v59 = vld [vmem:[%s9413_s4 + $0xb88] sm:$0xff]  ;;  %v6340_v54 = vcombine.high %v2224_v51, %v2228_v57  ;;  %v6339_v4 = vcombine.low %v2224_v51, %v2228_v57  ;;  %v7056_v51 = vmov 0   ;;  %v1858_v57 = vld [vmem:[%s9413_s4 + $0x10] sm:$0xff] }
 0x1df   :  { %4629 = vmatprep.subr.bf16.mxu1 %v6294_v63  ;;  %v2229_v60 = vld [vmem:[%s9413_s4 + $0xba8] sm:$0xff]  ;;  %v6331_v63 = vcombine.low %v2216_v38, %v2220_v40  ;;  %v1839_v6 = vadd.f32 %v1819_v0, %v1795_v5 }
 0x1e0   :  { %v6342_v55 = vcombine.high %v2225_v59, %v2229_v60  ;;  %v6341_v7 = vcombine.low %v2225_v59, %v2229_v60  ;;  %v2261_v38 = vld [vmem:[%s9413_s4 + $0xca8] sm:$0x11]  ;;  %v1848_v59 = vmax.f32 %v1841_v43, 0.0  ;;  %v1903_v43 = vld [vmem:[%s9413_s4 + $0x178] sm:$0xff] }
 0x1e1   :  { %4466 = vmatpush1.bf16.msra.mxu0 %v6291_v61  ;;  %v2232_v61 = vld [vmem:[%s9413_s4 + $0xbc0] sm:$0xff]  ;;  %v1846_v34 = vmax.f32 %v1839_v6, 0.0 }
 0x1e2   :  { %4630 = vmatpush1.bf16.msra.mxu1 %v6293_v62  ;;  %4467 = vmatprep.subr.bf16.mxu0 %v6300_v2  ;;  %v2236_v62 = vld [vmem:[%s9413_s4 + $0xbe0] sm:$0xff]  ;;  %v2233_v2 = vld [vmem:[%s9413_s4 + $0xbc8] sm:$0xff] }
 0x1e3   :  { %4631 = vmatprep.subr.bf16.mxu1 %v6302_v3  ;;  %v2237_v3 = vld [vmem:[%s9413_s4 + $0xbe8] sm:$0xff]  ;;  %v6348_v8 = vcombine.high %v2232_v61, %v2236_v62  ;;  %v6347_v5 = vcombine.low %v2232_v61, %v2236_v62  ;;  %v8506_v28 = vpack.c.bf16 %v1846_v34, %v1846_v34  ;;  %v5975_v61 = vcombine.low %v1858_v57, %v1862_v10  ;;  %v1867_v62 = vld [vmem:[%s9413_s4 + $0x58] sm:$0xff] }
 0x1e4   :  { %v6349_v13 = vcombine.low %v2233_v2, %v2237_v3 }
 0x1e5   :  { %4468 = vmatpush1.bf16.msra.mxu0 %v6299_v12  ;;  %v6350_v12 = vcombine.high %v2233_v2, %v2237_v3  ;;  %v1871_v2 = vld [vmem:[%s9413_s4 + $0x78] sm:$0xff]  ;;  %v8555_v3 = vpack.c.bf16 %v1848_v59, %v1848_v59 }
 0x1e6   :  { %4632 = vmatpush1.bf16.msra.mxu1 %v6301_v9  ;;  %4469 = vmatprep.subr.bf16.mxu0 %v6308_v47  ;;  %v2240_v9 = vld [vmem:[%s9413_s4 + $0xc00] sm:$0xff] }
 0x1e7   :  { %4633 = vmatprep.subr.bf16.mxu1 %v6310_v30  ;;  %v2244_v47 = vld [vmem:[%s9413_s4 + $0xc20] sm:$0xff]  ;;  %v2241_v30 = vld [vmem:[%s9413_s4 + $0xc08] sm:$0xff] }
 0x1e8   :  { %v6356_v16 = vcombine.high %v2240_v9, %v2244_v47  ;;  %v6358_v17 = vcombine.high %v2241_v30, %v2245_v14  ;;  %v6355_v27 = vcombine.low %v2240_v9, %v2244_v47  ;;  %v6357_v58 = vcombine.low %v2241_v30, %v2245_v14  ;;  %v1875_v9 = vld [vmem:[%s9413_s4 + $0x98] sm:$0xff] }
 0x1e9   :  { %4470 = vmatpush1.bf16.msra.mxu0 %v6307_v21  ;;  %v2248_v21 = vld [vmem:[%s9413_s4 + $0xc40] sm:$0xff]  ;;  %v1879_v47 = vld [vmem:[%s9413_s4 + $0xb8] sm:$0xff]  ;;  %v5985_v14 = vcombine.low %v1867_v62, %v1871_v2 }
 0x1ea   :  { %4634 = vmatpush1.bf16.msra.mxu1 %v6309_v22  ;;  %4471 = vmatprep.subr.bf16.mxu0 %v6316_v15  ;;  %v2252_v22 = vld [vmem:[%s9413_s4 + $0xc60] sm:$0xff]  ;;  %v2249_v15 = vld [vmem:[%s9413_s4 + $0xc48] sm:$0xff]  ;;  %v5994_v34 = vcombine.high %v1875_v9, %v1879_v47 }
 0x1eb   :  { %4635 = vmatprep.subr.bf16.mxu1 %v6318_v25  ;;  %v2253_v25 = vld [vmem:[%s9413_s4 + $0xc68] sm:$0xff]  ;;  %v6363_v40 = vcombine.low %v2248_v21, %v2252_v22 }
 0x1ec   :  { %v6365_v42 = vcombine.low %v2249_v15, %v2253_v25 }
 0x1ed   :  { %4472 = vmatpush1.bf16.msra.mxu0 %v6315_v29  ;;  %v6364_v29 = vcombine.high %v2248_v21, %v2252_v22  ;;  %v1887_v21 = vld [vmem:[%s9413_s4 + $0xf8] sm:$0xff]  ;;  %v5993_v22 = vcombine.low %v1875_v9, %v1879_v47 }
 0x1ee   :  { %4636 = vmatpush1.bf16.msra.mxu1 %v6317_v31  ;;  %4473 = vmatprep.subr.bf16.mxu0 %v6324_v32  ;;  %v6366_v31 = vcombine.high %v2249_v15, %v2253_v25  ;;  %v2256_v32 = vld [vmem:[%s9413_s4 + $0xc80] sm:$0xff]  ;;  %v1927_v9 = vld [vmem:[%s9413_s4 + $0x238] sm:$0xff] }
 0x1ef   :  { %4637 = vmatprep.subr.bf16.mxu1 %v6326_v33  ;;  %v2260_v33 = vld [vmem:[%s9413_s4 + $0xca0] sm:$0x11] }
 0x1f1   :  { %4474 = vmatpush1.bf16.msra.mxu0 %v6323_v44  ;;  %v6372_v44 = vcombine.high %v2256_v32, %v2260_v33 }
 0x1f2   :  { %4638 = vmatpush1.bf16.msra.mxu1 %v6325_v48  ;;  %4475 = vmatprep.subr.bf16.mxu0 %v6332_v49  ;;  %v6371_v48 = vcombine.low %v2256_v32, %v2260_v33  ;;  %v6374_v49 = vcombine.high %v2257_v19, %v2261_v38 }
 0x1f3   :  { %4639 = vmatprep.subr.bf16.mxu1 %v6334_v50  ;;  %v6373_v50 = vcombine.low %v2257_v19, %v2261_v38  ;;  %v1898_v38 = vld [vmem:[%s9413_s4 + $0x150] sm:$0xff] }
 0x1f4   :  { %v4344_v60 = vsel %vm4342_vm0, %v6371_v48, 0 }
 0x1f5   :  { %4476 = vmatpush1.bf16.msra.mxu0 %v6331_v63  ;;  %v5976_v63 = vcombine.high %v1858_v57, %v1862_v10  ;;  %v4350_v0 = vsel %vm4342_vm0, %v6373_v50, 0  ;;  %v1906_v57 = vld [vmem:[%s9413_s4 + $0x190] sm:$0xff] }
 0x1f6   :  { %4640 = vmatpush1.bf16.msra.mxu1 %v6333_v1  ;;  %4477 = vmatprep.subr.bf16.mxu0 %v6340_v54  ;;  %v5978_v1 = vcombine.high %v1859_v11, %v1863_v23  ;;  %v1866_v54 = vld [vmem:[%s9413_s4 + $0x50] sm:$0xff] }
 0x1f7   :  { %4641 = vmatprep.subr.bf16.mxu1 %v6342_v55  ;;  %v1870_v55 = vld [vmem:[%s9413_s4 + $0x70] sm:$0xff] }
 0x1f8   :  { %v5984_v6 = vcombine.high %v1866_v54, %v1870_v55  ;;  %v5983_v30 = vcombine.low %v1866_v54, %v1870_v55  ;;  %v1910_v10 = vld [vmem:[%s9413_s4 + $0x1b0] sm:$0xff]  ;;  %v1915_v55 = vld [vmem:[%s9413_s4 + $0x1d8] sm:$0xff] }
 0x1f9   :  { %4478 = vmatpush1.bf16.msra.mxu0 %v6339_v4  ;;  %v5977_v4 = vcombine.low %v1859_v11, %v1863_v23  ;;  %v1907_v11 = vld [vmem:[%s9413_s4 + $0x198] sm:$0xff]  ;;  %v1918_v54 = vld [vmem:[%s9413_s4 + $0x1f0] sm:$0xff] }
 0x1fa   :  { %4642 = vmatpush1.bf16.msra.mxu1 %v6341_v7  ;;  %4479 = vmatprep.subr.bf16.mxu0 %v6348_v8  ;;  %v1874_v7 = vld [vmem:[%s9413_s4 + $0x90] sm:$0xff]  ;;  %v1911_v23 = vld [vmem:[%s9413_s4 + $0x1b8] sm:$0xff] }
 0x1fb   :  { %4643 = vmatprep.subr.bf16.mxu1 %v6350_v12  ;;  %v1878_v8 = vld [vmem:[%s9413_s4 + $0xb0] sm:$0xff]  ;;  %v5986_v12 = vcombine.high %v1867_v62, %v1871_v2  ;;  %v6023_v62 = vcombine.low %v1906_v57, %v1910_v10  ;;  %v6025_v2 = vcombine.low %v1907_v11, %v1911_v23 }
 0x1fd   :  { %4480 = vmatpush1.bf16.msra.mxu0 %v6347_v5  ;;  %v5992_v5 = vcombine.high %v1874_v7, %v1878_v8 }
 0x1fe   :  { %4644 = vmatpush1.bf16.msra.mxu1 %v6349_v13  ;;  %4490 = vmatprep.subr.bf16.mxu0 %v6356_v16  ;;  %v1882_v13 = vld [vmem:[%s9413_s4 + $0xd0] sm:$0xff] }
 0x1ff   :  { %4654 = vmatprep.subr.bf16.mxu1 %v6358_v17  ;;  %v1886_v16 = vld [vmem:[%s9413_s4 + $0xf0] sm:$0xff]  ;;  %v1883_v17 = vld [vmem:[%s9413_s4 + $0xd8] sm:$0xff] }
 0x200   :  { %4482 = vmatmul.mubr.bf16.vlgmr.msra.gmra.mrb[16].mxu0 %v8506_v28  ;;  %v6000_v15 = vcombine.high %v1882_v13, %v1886_v16  ;;  %v6002_v25 = vcombine.high %v1883_v17, %v1887_v21  ;;  %v6001_v32 = vcombine.low %v1883_v17, %v1887_v21  ;;  %v1935_v17 = vld [vmem:[%s9413_s4 + $0x278] sm:$0xff] }
 0x201   :  { %4646 = vmatmul.mubr.bf16.vlgmr.msra.gmra.mrb[16].mxu1 %v8506_v28  ;;  %4491 = vmatpush1.bf16.msra.mxu0 %v6355_v27  ;;  %v1894_v27 = vld [vmem:[%s9413_s4 + $0x130] sm:$0xff] }
 0x202   :  { %4655 = vmatpush1.bf16.msra.mxu1 %v6357_v58  ;;  %4492 = vmatprep.subr.bf16.mxu0 %v6364_v29  ;;  %v1891_v58 = vld [vmem:[%s9413_s4 + $0x118] sm:$0xff]  ;;  %v6008_v33 = vcombine.high %v1890_v26, %v1894_v27 }
 0x203   :  { %4656 = vmatprep.subr.bf16.mxu1 %v6366_v31  ;;  %4522 = vmatprep.mubr.bf16.mxu0 %v7056_v51  ;;  %v1895_v29 = vld [vmem:[%s9413_s4 + $0x138] sm:$0xff]  ;;  %v5999_v31 = vcombine.low %v1882_v13, %v1886_v16  ;;  %v1934_v13 = vld [vmem:[%s9413_s4 + $0x270] sm:$0xff] }
 0x204   :  { %4686 = vmatprep.mubr.bf16.mxu1 %v7056_v51  ;;  %v6010_v19 = vcombine.high %v1891_v58, %v1895_v29  ;;  %v6009_v48 = vcombine.low %v1891_v58, %v1895_v29  ;;  %v1931_v16 = vld [vmem:[%s9413_s4 + $0x258] sm:$0xff] }
 0x205   :  { %4493 = vmatpush1.bf16.msra.mxu0 %v6363_v40  ;;  %v1902_v40 = vld [vmem:[%s9413_s4 + $0x170] sm:$0xff]  ;;  %v1943_v58 = vld [vmem:[%s9413_s4 + $0x2b8] sm:$0xff] }
 0x206   :  { %4657 = vmatpush1.bf16.msra.mxu1 %v6365_v42  ;;  %6379 = vmatprep.subr.msk.bf16.mxu0 %vm4342_vm0, %v6372_v44  ;;  %v1899_v42 = vld [vmem:[%s9413_s4 + $0x158] sm:$0xff]  ;;  %v6007_v44 = vcombine.low %v1890_v26, %v1894_v27  ;;  %v6015_v59 = vcombine.low %v1898_v38, %v1902_v40  ;;  %v1942_v26 = vld [vmem:[%s9413_s4 + $0x2b0] sm:$0xff] }
 0x207   :  { %6381 = vmatprep.subr.msk.bf16.mxu1 %vm4342_vm0, %v6374_v49  ;;  %v6016_v49 = vcombine.high %v1898_v38, %v1902_v40  ;;  %v6018_v50 = vcombine.high %v1899_v42, %v1903_v43  ;;  %v1939_v27 = vld [vmem:[%s9413_s4 + $0x298] sm:$0xff]  ;;  %v1950_v38 = vld [vmem:[%s9413_s4 + $0x2f0] sm:$0xff] }
 0x208   :  { %v1947_v40 = vld [vmem:[%s9413_s4 + $0x2d8] sm:$0xff] }
 0x209   :  { %4495 = vmatpush1.bf16.msra.mxu0 %v4344_v60  ;;  %v6017_v60 = vcombine.low %v1899_v42, %v1903_v43  ;;  %v1951_v42 = vld [vmem:[%s9413_s4 + $0x2f8] sm:$0xff] }
 0x20a   :  { %4659 = vmatpush1.bf16.msra.mxu1 %v4350_v0  ;;  %4695 = vmatprep.subr.bf16.mxu0 %v5976_v63  ;;  %v6024_v63 = vcombine.high %v1906_v57, %v1910_v10  ;;  %v6026_v0 = vcombine.high %v1907_v11, %v1911_v23  ;;  %v1958_v57 = vld [vmem:[%s9413_s4 + $0x330] sm:$0xff]  ;;  %v1955_v10 = vld [vmem:[%s9413_s4 + $0x318] sm:$0xff] }
 0x20b   :  { %4859 = vmatprep.subr.bf16.mxu1 %v5978_v1  ;;  %v1914_v1 = vld [vmem:[%s9413_s4 + $0x1d0] sm:$0xff]  ;;  %v1959_v11 = vld [vmem:[%s9413_s4 + $0x338] sm:$0xff] }
 0x20c   :  { %6380 = vmatmul.mubr.msk.bf16.vlgmr.msra.gmra.mrb[16].mxu0 %vm4338_vm1, %v8555_v3  ;;  %v6031_v47 = vcombine.low %v1914_v1, %v1918_v54 }
 0x20d   :  { %6382 = vmatmul.mubr.msk.bf16.vlgmr.msra.gmra.mrb[16].mxu1 %vm4338_vm1, %v8555_v3  ;;  %4696 = vmatpush1.bf16.msra.mxu0 %v5975_v61  ;;  %v1919_v61 = vld [vmem:[%s9413_s4 + $0x1f8] sm:$0xff] }
 0x20e   :  { %4727 = vmatprep.mubr.bf16.mxu0 %v8056_v36  ;;  %4860 = vmatpush1.bf16.msra.mxu1 %v5977_v4  ;;  %v6032_v4 = vcombine.high %v1914_v1, %v1918_v54  ;;  %v1966_v1 = vld [vmem:[%s9413_s4 + $0x370] sm:$0xff]  ;;  %v1963_v54 = vld [vmem:[%s9413_s4 + $0x358] sm:$0xff] }
 0x20f   :  { %4891 = vmatprep.mubr.bf16.mxu1 %v8056_v36  ;;  %4697 = vmatprep.subr.bf16.mxu0 %v5984_v6  ;;  %v5991_v36 = vcombine.low %v1874_v7, %v1878_v8  ;;  %v6034_v6 = vcombine.high %v1915_v55, %v1919_v61  ;;  %v1922_v7 = vld [vmem:[%s9413_s4 + $0x210] sm:$0xff] }
 0x210   :  { %4861 = vmatprep.subr.bf16.mxu1 %v5986_v12  ;;  %v1926_v8 = vld [vmem:[%s9413_s4 + $0x230] sm:$0xff]  ;;  %v1923_v12 = vld [vmem:[%s9413_s4 + $0x218] sm:$0xff] }
 0x211   :  { %4698 = vmatpush1.bf16.msra.mxu0 %v5983_v30  ;;  %v6033_v30 = vcombine.low %v1915_v55, %v1919_v61  ;;  %v6039_v21 = vcombine.low %v1922_v7, %v1926_v8  ;;  %v1967_v55 = vld [vmem:[%s9413_s4 + $0x378] sm:$0xff] }
 0x212   :  { %4862 = vmatpush1.bf16.msra.mxu1 %v5985_v14  ;;  %4699 = vmatprep.subr.bf16.mxu0 %v5992_v5  ;;  %v6040_v14 = vcombine.high %v1922_v7, %v1926_v8  ;;  %v6042_v5 = vcombine.high %v1923_v12, %v1927_v9  ;;  %v1974_v7 = vld [vmem:[%s9413_s4 + $0x3b0] sm:$0xff]  ;;  %v1971_v8 = vld [vmem:[%s9413_s4 + $0x398] sm:$0xff] }
 0x213   :  { %4863 = vmatprep.subr.bf16.mxu1 %v5994_v34  ;;  %v1930_v34 = vld [vmem:[%s9413_s4 + $0x250] sm:$0xff] }
 0x214   :  { %v6047_v29 = vcombine.low %v1930_v34, %v1934_v13 }
 0x215   :  { %4700 = vmatpush1.bf16.msra.mxu0 %v5991_v36  ;;  %v6041_v36 = vcombine.low %v1923_v12, %v1927_v9  ;;  %v1975_v12 = vld [vmem:[%s9413_s4 + $0x3b8] sm:$0xff] }
 0x216   :  { %4864 = vmatpush1.bf16.msra.mxu1 %v5993_v22  ;;  %4701 = vmatprep.subr.bf16.mxu0 %v6000_v15  ;;  %v6048_v22 = vcombine.high %v1930_v34, %v1934_v13  ;;  %v6050_v15 = vcombine.high %v1931_v16, %v1935_v17  ;;  %v1982_v34 = vld [vmem:[%s9413_s4 + $0x3f0] sm:$0xff]  ;;  %v1979_v13 = vld [vmem:[%s9413_s4 + $0x3d8] sm:$0xff] }
 0x217   :  { %4865 = vmatprep.subr.bf16.mxu1 %v6002_v25  ;;  %v1938_v25 = vld [vmem:[%s9413_s4 + $0x290] sm:$0xff] }
 0x218   :  { %v6055_v43 = vcombine.low %v1938_v25, %v1942_v26 }
 0x219   :  { %4702 = vmatpush1.bf16.msra.mxu0 %v5999_v31  ;;  %v6049_v31 = vcombine.low %v1931_v16, %v1935_v17  ;;  %v1983_v16 = vld [vmem:[%s9413_s4 + $0x3f8] sm:$0xff] }
 0x21a   :  { %4866 = vmatpush1.bf16.msra.mxu1 %v6001_v32  ;;  %4703 = vmatprep.subr.bf16.mxu0 %v6008_v33  ;;  %v6056_v32 = vcombine.high %v1938_v25, %v1942_v26  ;;  %v6058_v33 = vcombine.high %v1939_v27, %v1943_v58  ;;  %v1990_v25 = vld [vmem:[%s9413_s4 + $0x430] sm:$0xff]  ;;  %v1987_v26 = vld [vmem:[%s9413_s4 + $0x418] sm:$0xff] }
 0x21b   :  { %4867 = vmatprep.subr.bf16.mxu1 %v6010_v19  ;;  %v1946_v19 = vld [vmem:[%s9413_s4 + $0x2d0] sm:$0xff] }
 0x21c   :  { %v6063_v23 = vcombine.low %v1946_v19, %v1950_v38 }
 0x21d   :  { %4704 = vmatpush1.bf16.msra.mxu0 %v6007_v44  ;;  %v6057_v44 = vcombine.low %v1939_v27, %v1943_v58  ;;  %v1991_v27 = vld [vmem:[%s9413_s4 + $0x438] sm:$0xff] }
 0x21e   :  { %4868 = vmatpush1.bf16.msra.mxu1 %v6009_v48  ;;  %4705 = vmatprep.subr.bf16.mxu0 %v6016_v49  ;;  %v6064_v48 = vcombine.high %v1946_v19, %v1950_v38  ;;  %v6066_v49 = vcombine.high %v1947_v40, %v1951_v42  ;;  %v1998_v19 = vld [vmem:[%s9413_s4 + $0x470] sm:$0xff] }
 0x21f   :  { %4869 = vmatprep.subr.bf16.mxu1 %v6018_v50  ;;  %v1954_v50 = vld [vmem:[%s9413_s4 + $0x310] sm:$0xff] }
 0x220   :  { %v6071_v61 = vcombine.low %v1954_v50, %v1958_v57 }
 0x221   :  { %4706 = vmatpush1.bf16.msra.mxu0 %v6015_v59  ;;  %v6065_v59 = vcombine.low %v1947_v40, %v1951_v42  ;;  %v1995_v40 = vld [vmem:[%s9413_s4 + $0x458] sm:$0xff] }
 0x222   :  { %4870 = vmatpush1.bf16.msra.mxu1 %v6017_v60  ;;  %4707 = vmatprep.subr.bf16.mxu0 %v6024_v63  ;;  %v6072_v60 = vcombine.high %v1954_v50, %v1958_v57  ;;  %v6074_v63 = vcombine.high %v1955_v10, %v1959_v11  ;;  %v1999_v42 = vld [vmem:[%s9413_s4 + $0x478] sm:$0xff] }
 0x223   :  { %4871 = vmatprep.subr.bf16.mxu1 %v6026_v0  ;;  %v1962_v0 = vld [vmem:[%s9413_s4 + $0x350] sm:$0xff]  ;;  %v6114_v50 = vcombine.high %v1995_v40, %v1999_v42  ;;  %v2003_v57 = vld [vmem:[%s9413_s4 + $0x498] sm:$0xff] }
 0x224   :  { %v6079_v9 = vcombine.low %v1962_v0, %v1966_v1 }
 0x225   :  { %4708 = vmatpush1.bf16.msra.mxu0 %v6023_v62  ;;  %v6073_v62 = vcombine.low %v1955_v10, %v1959_v11  ;;  %v2007_v10 = vld [vmem:[%s9413_s4 + $0x4b8] sm:$0xff] }
 0x226   :  { %4872 = vmatpush1.bf16.msra.mxu1 %v6025_v2  ;;  %4709 = vmatprep.subr.bf16.mxu0 %v6032_v4  ;;  %v6080_v2 = vcombine.high %v1962_v0, %v1966_v1  ;;  %v6082_v4 = vcombine.high %v1963_v54, %v1967_v55  ;;  %v2014_v0 = vld [vmem:[%s9413_s4 + $0x4f0] sm:$0xff]  ;;  %v2015_v1 = vld [vmem:[%s9413_s4 + $0x4f8] sm:$0xff] }
 0x227   :  { %4873 = vmatprep.subr.bf16.mxu1 %v6034_v6  ;;  %v1970_v6 = vld [vmem:[%s9413_s4 + $0x390] sm:$0xff] }
 0x228   :  { %v6087_v17 = vcombine.low %v1970_v6, %v1974_v7 }
 0x229   :  { %4710 = vmatpush1.bf16.msra.mxu0 %v6031_v47  ;;  %v6081_v47 = vcombine.low %v1963_v54, %v1967_v55  ;;  %v6121_v54 = vcombine.low %v2003_v57, %v2007_v10 }
 0x22a   :  { %4874 = vmatpush1.bf16.msra.mxu1 %v6033_v30  ;;  %4711 = vmatprep.subr.bf16.mxu0 %v6040_v14  ;;  %v6088_v30 = vcombine.high %v1970_v6, %v1974_v7  ;;  %v6090_v14 = vcombine.high %v1971_v8, %v1975_v12  ;;  %v2023_v6 = vld [vmem:[%s9413_s4 + $0x538] sm:$0xff] }
 0x22b   :  { %4875 = vmatprep.subr.bf16.mxu1 %v6042_v5  ;;  %v1978_v5 = vld [vmem:[%s9413_s4 + $0x3d0] sm:$0xff] }
 0x22c   :  { %v6095_v58 = vcombine.low %v1978_v5, %v1982_v34 }
 0x22d   :  { %4712 = vmatpush1.bf16.msra.mxu0 %v6039_v21  ;;  %v6089_v21 = vcombine.low %v1971_v8, %v1975_v12 }
 0x22e   :  { %4876 = vmatpush1.bf16.msra.mxu1 %v6041_v36  ;;  %4713 = vmatprep.subr.bf16.mxu0 %v6048_v22  ;;  %v6096_v36 = vcombine.high %v1978_v5, %v1982_v34  ;;  %v6098_v22 = vcombine.high %v1979_v13, %v1983_v16  ;;  %v2031_v5 = vld [vmem:[%s9413_s4 + $0x578] sm:$0xff] }
 0x22f   :  { %4877 = vmatprep.subr.bf16.mxu1 %v6050_v15  ;;  %v1986_v15 = vld [vmem:[%s9413_s4 + $0x410] sm:$0xff] }
 0x230   :  { %v6103_v38 = vcombine.low %v1986_v15, %v1990_v25 }
 0x231   :  { %4714 = vmatpush1.bf16.msra.mxu0 %v6047_v29  ;;  %v6097_v29 = vcombine.low %v1979_v13, %v1983_v16 }
 0x232   :  { %4878 = vmatpush1.bf16.msra.mxu1 %v6049_v31  ;;  %4715 = vmatprep.subr.bf16.mxu0 %v6056_v32  ;;  %v6104_v31 = vcombine.high %v1986_v15, %v1990_v25  ;;  %v6106_v32 = vcombine.high %v1987_v26, %v1991_v27  ;;  %v2039_v15 = vld [vmem:[%s9413_s4 + $0x5b8] sm:$0xff] }
 0x233   :  { %4879 = vmatprep.subr.bf16.mxu1 %v6058_v33  ;;  %v1994_v33 = vld [vmem:[%s9413_s4 + $0x450] sm:$0xff] }
 0x234   :  { %v6111_v11 = vcombine.low %v1994_v33, %v1998_v19 }
 0x235   :  { %4716 = vmatpush1.bf16.msra.mxu0 %v6055_v43  ;;  %v6105_v43 = vcombine.low %v1987_v26, %v1991_v27 }
 0x236   :  { %4880 = vmatpush1.bf16.msra.mxu1 %v6057_v44  ;;  %4717 = vmatprep.subr.bf16.mxu0 %v6064_v48  ;;  %v6112_v44 = vcombine.high %v1994_v33, %v1998_v19  ;;  %v2002_v48 = vld [vmem:[%s9413_s4 + $0x490] sm:$0xff]  ;;  %v2047_v33 = vld [vmem:[%s9413_s4 + $0x5f8] sm:$0xff] }
 0x237   :  { %4881 = vmatprep.subr.bf16.mxu1 %v6066_v49  ;;  %v2006_v49 = vld [vmem:[%s9413_s4 + $0x4b0] sm:$0xff] }
 0x239   :  { %4718 = vmatpush1.bf16.msra.mxu0 %v6063_v23  ;;  %v6113_v23 = vcombine.low %v1995_v40, %v1999_v42 }
 0x23a   :  { %4882 = vmatpush1.bf16.msra.mxu1 %v6065_v59  ;;  %4719 = vmatprep.subr.bf16.mxu0 %v6072_v60  ;;  %v6120_v59 = vcombine.high %v2002_v48, %v2006_v49  ;;  %v6122_v60 = vcombine.high %v2003_v57, %v2007_v10 }
 0x23b   :  { %4883 = vmatprep.subr.bf16.mxu1 %v6074_v63  ;;  %v2010_v63 = vld [vmem:[%s9413_s4 + $0x4d0] sm:$0xff] }
 0x23c   :  { %v6128_v55 = vcombine.high %v2010_v63, %v2014_v0  ;;  %v6127_v7 = vcombine.low %v2010_v63, %v2014_v0  ;;  %v2063_v63 = vld [vmem:[%s9413_s4 + $0x678] sm:$0xff] }
 0x23d   :  { %4720 = vmatpush1.bf16.msra.mxu0 %v6071_v61 }
 0x23e   :  { %4884 = vmatpush1.bf16.msra.mxu1 %v6073_v62  ;;  %4721 = vmatprep.subr.bf16.mxu0 %v6080_v2  ;;  %v2018_v62 = vld [vmem:[%s9413_s4 + $0x510] sm:$0xff] }
 0x23f   :  { %4885 = vmatprep.subr.bf16.mxu1 %v6082_v4  ;;  %v2022_v2 = vld [vmem:[%s9413_s4 + $0x530] sm:$0xff]  ;;  %v2019_v4 = vld [vmem:[%s9413_s4 + $0x518] sm:$0xff] }
 0x240   :  { %v6136_v12 = vcombine.high %v2018_v62, %v2022_v2  ;;  %v6135_v34 = vcombine.low %v2018_v62, %v2022_v2  ;;  %v6137_v13 = vcombine.low %v2019_v4, %v2023_v6  ;;  %v2071_v62 = vld [vmem:[%s9413_s4 + $0x6b8] sm:$0xff] }
 0x241   :  { %4722 = vmatpush1.bf16.msra.mxu0 %v6079_v9  ;;  %v6138_v9 = vcombine.high %v2019_v4, %v2023_v6 }
 0x242   :  { %4886 = vmatpush1.bf16.msra.mxu1 %v6081_v47  ;;  %4723 = vmatprep.subr.bf16.mxu0 %v6088_v30  ;;  %v2026_v47 = vld [vmem:[%s9413_s4 + $0x550] sm:$0xff] }
 0x243   :  { %4887 = vmatprep.subr.bf16.mxu1 %v6090_v14  ;;  %v2030_v30 = vld [vmem:[%s9413_s4 + $0x570] sm:$0xff]  ;;  %v2027_v14 = vld [vmem:[%s9413_s4 + $0x558] sm:$0xff] }
 0x244   :  { %v6144_v16 = vcombine.high %v2026_v47, %v2030_v30  ;;  %v6143_v25 = vcombine.low %v2026_v47, %v2030_v30  ;;  %v6145_v26 = vcombine.low %v2027_v14, %v2031_v5  ;;  %v2079_v47 = vld [vmem:[%s9413_s4 + $0x6f8] sm:$0xff] }
 0x245   :  { %4724 = vmatpush1.bf16.msra.mxu0 %v6087_v17  ;;  %v6146_v17 = vcombine.high %v2027_v14, %v2031_v5 }
 0x246   :  { %4888 = vmatpush1.bf16.msra.mxu1 %v6089_v21  ;;  %4725 = vmatprep.subr.bf16.mxu0 %v6096_v36  ;;  %v2034_v21 = vld [vmem:[%s9413_s4 + $0x590] sm:$0xff] }
 0x247   :  { %4889 = vmatprep.subr.bf16.mxu1 %v6098_v22  ;;  %v2038_v36 = vld [vmem:[%s9413_s4 + $0x5b0] sm:$0xff]  ;;  %v2035_v22 = vld [vmem:[%s9413_s4 + $0x598] sm:$0xff] }
 0x248   :  { %v6152_v27 = vcombine.high %v2034_v21, %v2038_v36  ;;  %v6151_v19 = vcombine.low %v2034_v21, %v2038_v36  ;;  %v2087_v21 = vld [vmem:[%s9413_s4 + $0x738] sm:$0xff] }
 0x249   :  { %4726 = vmatpush1.bf16.msra.mxu0 %v6095_v58  ;;  %v6154_v58 = vcombine.high %v2035_v22, %v2039_v15 }
 0x24a   :  { %4890 = vmatpush1.bf16.msra.mxu1 %v6097_v29  ;;  %4736 = vmatprep.subr.bf16.mxu0 %v6104_v31  ;;  %v2042_v29 = vld [vmem:[%s9413_s4 + $0x5d0] sm:$0xff] }
 0x24b   :  { %4900 = vmatprep.subr.bf16.mxu1 %v6106_v32  ;;  %v2046_v31 = vld [vmem:[%s9413_s4 + $0x5f0] sm:$0xff]  ;;  %v2043_v32 = vld [vmem:[%s9413_s4 + $0x5d8] sm:$0xff] }
 0x24c   :  { %4728 = vmatmul.mubr.bf16.vlgmr.msra.gmra.mrb[20].mxu0 %v8058_v37  ;;  %v6160_v40 = vcombine.high %v2042_v29, %v2046_v31  ;;  %v6162_v42 = vcombine.high %v2043_v32, %v2047_v33  ;;  %v6161_v57 = vcombine.low %v2043_v32, %v2047_v33 }
 0x24d   :  { %4892 = vmatmul.mubr.bf16.vlgmr.msra.gmra.mrb[20].mxu1 %v8058_v37  ;;  %4737 = vmatpush1.bf16.msra.mxu0 %v6103_v38  ;;  %v2011_v37 = vld [vmem:[%s9413_s4 + $0x4d8] sm:$0xff]  ;;  %v6153_v38 = vcombine.low %v2035_v22, %v2039_v15 }
 0x24e   :  { %4768 = vmatprep.mubr.bf16.mxu0 %v8175_v53  ;;  %4901 = vmatpush1.bf16.msra.mxu1 %v6105_v43  ;;  %v6130_v61 = vcombine.high %v2011_v37, %v2015_v1  ;;  %v6129_v8 = vcombine.low %v2011_v37, %v2015_v1  ;;  %v2050_v43 = vld [vmem:[%s9413_s4 + $0x610] sm:$0xff] }
 0x24f   :  { %4932 = vmatprep.mubr.bf16.mxu1 %v8175_v53  ;;  %4738 = vmatprep.subr.bf16.mxu0 %v6112_v44  ;;  %v6119_v53 = vcombine.low %v2002_v48, %v2006_v49  ;;  %v2054_v44 = vld [vmem:[%s9413_s4 + $0x630] sm:$0xff]  ;;  %v2051_v48 = vld [vmem:[%s9413_s4 + $0x618] sm:$0xff] }
 0x250   :  { %4902 = vmatprep.subr.bf16.mxu1 %v6114_v50  ;;  %v2055_v49 = vld [vmem:[%s9413_s4 + $0x638] sm:$0xff]  ;;  %v6159_v50 = vcombine.low %v2042_v29, %v2046_v31  ;;  %v6168_v10 = vcombine.high %v2050_v43, %v2054_v44  ;;  %v6167_v0 = vcombine.low %v2050_v43, %v2054_v44 }
 0x251   :  { %4739 = vmatpush1.bf16.msra.mxu0 %v6111_v11  ;;  %v6170_v11 = vcombine.high %v2051_v48, %v2055_v49  ;;  %v6169_v37 = vcombine.low %v2051_v48, %v2055_v49  ;;  %v2095_v29 = vld [vmem:[%s9413_s4 + $0x778] sm:$0xff] }
 0x252   :  { %4903 = vmatpush1.bf16.msra.mxu1 %v6113_v23  ;;  %4740 = vmatprep.subr.bf16.mxu0 %v6120_v59  ;;  %v2058_v23 = vld [vmem:[%s9413_s4 + $0x650] sm:$0xff]  ;;  %v2103_v43 = vld [vmem:[%s9413_s4 + $0x7b8] sm:$0xff] }
 0x253   :  { %4904 = vmatprep.subr.bf16.mxu1 %v6122_v60  ;;  %v2062_v59 = vld [vmem:[%s9413_s4 + $0x670] sm:$0xff]  ;;  %v2059_v60 = vld [vmem:[%s9413_s4 + $0x658] sm:$0xff] }
 0x254   :  { %v6176_v1 = vcombine.high %v2058_v23, %v2062_v59  ;;  %v6175_v2 = vcombine.low %v2058_v23, %v2062_v59  ;;  %v6177_v4 = vcombine.low %v2059_v60, %v2063_v63  ;;  %v2111_v23 = vld [vmem:[%s9413_s4 + $0x7f8] sm:$0xff] }
 0x255   :  { %4741 = vmatpush1.bf16.msra.mxu0 %v6119_v53  ;;  %v6178_v53 = vcombine.high %v2059_v60, %v2063_v63 }
 0x256   :  { %4905 = vmatpush1.bf16.msra.mxu1 %v6121_v54  ;;  %4742 = vmatprep.subr.bf16.mxu0 %v6128_v55  ;;  %v2066_v54 = vld [vmem:[%s9413_s4 + $0x690] sm:$0xff] }
 0x257   :  { %4906 = vmatprep.subr.bf16.mxu1 %v6130_v61  ;;  %v2070_v55 = vld [vmem:[%s9413_s4 + $0x6b0] sm:$0xff]  ;;  %v2067_v61 = vld [vmem:[%s9413_s4 + $0x698] sm:$0xff] }
 0x258   :  { %v6184_v6 = vcombine.high %v2066_v54, %v2070_v55  ;;  %v6183_v30 = vcombine.low %v2066_v54, %v2070_v55  ;;  %v6185_v14 = vcombine.low %v2067_v61, %v2071_v62  ;;  %v2119_v54 = vld [vmem:[%s9413_s4 + $0x838] sm:$0xff] }
 0x259   :  { %4743 = vmatpush1.bf16.msra.mxu0 %v6127_v7  ;;  %v6186_v7 = vcombine.high %v2067_v61, %v2071_v62 }
 0x25a   :  { %4907 = vmatpush1.bf16.msra.mxu1 %v6129_v8  ;;  %4744 = vmatprep.subr.bf16.mxu0 %v6136_v12  ;;  %v2074_v8 = vld [vmem:[%s9413_s4 + $0x6d0] sm:$0xff] }
 0x25b   :  { %4908 = vmatprep.subr.bf16.mxu1 %v6138_v9  ;;  %v2078_v12 = vld [vmem:[%s9413_s4 + $0x6f0] sm:$0xff]  ;;  %v2075_v9 = vld [vmem:[%s9413_s4 + $0x6d8] sm:$0xff] }
 0x25c   :  { %v6192_v5 = vcombine.high %v2074_v8, %v2078_v12  ;;  %v6191_v36 = vcombine.low %v2074_v8, %v2078_v12  ;;  %v6193_v22 = vcombine.low %v2075_v9, %v2079_v47  ;;  %v2123_v8 = vld [vmem:[%s9413_s4 + $0x858] sm:$0xff] }
 0x25d   :  { %4745 = vmatpush1.bf16.msra.mxu0 %v6135_v34  ;;  %v6194_v34 = vcombine.high %v2075_v9, %v2079_v47  ;;  %v2127_v12 = vld [vmem:[%s9413_s4 + $0x878] sm:$0xff] }
 0x25e   :  { %4909 = vmatpush1.bf16.msra.mxu1 %v6137_v13  ;;  %4746 = vmatprep.subr.bf16.mxu0 %v6144_v16  ;;  %v2082_v13 = vld [vmem:[%s9413_s4 + $0x710] sm:$0xff] }
 0x25f   :  { %4910 = vmatprep.subr.bf16.mxu1 %v6146_v17  ;;  %v2086_v16 = vld [vmem:[%s9413_s4 + $0x730] sm:$0xff]  ;;  %v2083_v17 = vld [vmem:[%s9413_s4 + $0x718] sm:$0xff] }
 0x260   :  { %v6200_v15 = vcombine.high %v2082_v13, %v2086_v16  ;;  %v6199_v31 = vcombine.low %v2082_v13, %v2086_v16  ;;  %v6201_v32 = vcombine.low %v2083_v17, %v2087_v21  ;;  %v2135_v13 = vld [vmem:[%s9413_s4 + $0x8b8] sm:$0xff] }
 0x261   :  { %4747 = vmatpush1.bf16.msra.mxu0 %v6143_v25  ;;  %v6202_v25 = vcombine.high %v2083_v17, %v2087_v21  ;;  %v6241_v17 = vcombine.low %v2123_v8, %v2127_v12 }
 0x262   :  { %4911 = vmatpush1.bf16.msra.mxu1 %v6145_v26  ;;  %4748 = vmatprep.subr.bf16.mxu0 %v6152_v27  ;;  %v2090_v26 = vld [vmem:[%s9413_s4 + $0x750] sm:$0xff] }
 0x263   :  { %4912 = vmatprep.subr.bf16.mxu1 %v6154_v58  ;;  %v2094_v27 = vld [vmem:[%s9413_s4 + $0x770] sm:$0xff]  ;;  %v2091_v58 = vld [vmem:[%s9413_s4 + $0x758] sm:$0xff] }
 0x264   :  { %v6208_v33 = vcombine.high %v2090_v26, %v2094_v27  ;;  %v6207_v44 = vcombine.low %v2090_v26, %v2094_v27  ;;  %v6209_v48 = vcombine.low %v2091_v58, %v2095_v29 }
 0x265   :  { %4749 = vmatpush1.bf16.msra.mxu0 %v6151_v19  ;;  %v6210_v19 = vcombine.high %v2091_v58, %v2095_v29  ;;  %v2146_v29 = vld [vmem:[%s9413_s4 + $0x910] sm:$0xff] }
 0x266   :  { %4913 = vmatpush1.bf16.msra.mxu1 %v6153_v38  ;;  %4750 = vmatprep.subr.bf16.mxu0 %v6160_v40  ;;  %v2098_v38 = vld [vmem:[%s9413_s4 + $0x790] sm:$0xff] }
 0x267   :  { %4914 = vmatprep.subr.bf16.mxu1 %v6162_v42  ;;  %v2102_v40 = vld [vmem:[%s9413_s4 + $0x7b0] sm:$0xff]  ;;  %v2099_v42 = vld [vmem:[%s9413_s4 + $0x798] sm:$0xff] }
 0x268   :  { %v6216_v49 = vcombine.high %v2098_v38, %v2102_v40  ;;  %v6215_v59 = vcombine.low %v2098_v38, %v2102_v40  ;;  %v6217_v60 = vcombine.low %v2099_v42, %v2103_v43 }
 0x269   :  { %4751 = vmatpush1.bf16.msra.mxu0 %v6159_v50  ;;  %v6218_v50 = vcombine.high %v2099_v42, %v2103_v43  ;;  %v2154_v43 = vld [vmem:[%s9413_s4 + $0x950] sm:$0xff] }
 0x26a   :  { %4915 = vmatpush1.bf16.msra.mxu1 %v6161_v57  ;;  %4752 = vmatprep.subr.bf16.mxu0 %v6168_v10  ;;  %v2106_v57 = vld [vmem:[%s9413_s4 + $0x7d0] sm:$0xff] }
 0x26b   :  { %4916 = vmatprep.subr.bf16.mxu1 %v6170_v11  ;;  %v2110_v10 = vld [vmem:[%s9413_s4 + $0x7f0] sm:$0xff]  ;;  %v2107_v11 = vld [vmem:[%s9413_s4 + $0x7d8] sm:$0xff] }
 0x26c   :  { %v6224_v63 = vcombine.high %v2106_v57, %v2110_v10  ;;  %v6223_v55 = vcombine.low %v2106_v57, %v2110_v10  ;;  %v6225_v61 = vcombine.low %v2107_v11, %v2111_v23 }
 0x26d   :  { %4753 = vmatpush1.bf16.msra.mxu0 %v6167_v0  ;;  %v6226_v0 = vcombine.high %v2107_v11, %v2111_v23  ;;  %v2162_v23 = vld [vmem:[%s9413_s4 + $0x990] sm:$0xff] }
 0x26e   :  { %4917 = vmatpush1.bf16.msra.mxu1 %v6169_v37  ;;  %4754 = vmatprep.subr.bf16.mxu0 %v6176_v1  ;;  %v2114_v37 = vld [vmem:[%s9413_s4 + $0x810] sm:$0xff] }
 0x26f   :  { %4918 = vmatprep.subr.bf16.mxu1 %v6178_v53  ;;  %v2118_v1 = vld [vmem:[%s9413_s4 + $0x830] sm:$0xff]  ;;  %v2115_v53 = vld [vmem:[%s9413_s4 + $0x818] sm:$0xff] }
 0x270   :  { %v6232_v62 = vcombine.high %v2114_v37, %v2118_v1  ;;  %v6233_v9 = vcombine.low %v2115_v53, %v2119_v54 }
 0x271   :  { %4755 = vmatpush1.bf16.msra.mxu0 %v6175_v2  ;;  %v6234_v2 = vcombine.high %v2115_v53, %v2119_v54  ;;  %v2170_v54 = vld [vmem:[%s9413_s4 + $0x9d0] sm:$0xff] }
 0x272   :  { %4919 = vmatpush1.bf16.msra.mxu1 %v6177_v4  ;;  %4756 = vmatprep.subr.bf16.mxu0 %v6184_v6  ;;  %v2122_v4 = vld [vmem:[%s9413_s4 + $0x850] sm:$0xff] }
 0x273   :  { %4920 = vmatprep.subr.bf16.mxu1 %v6186_v7  ;;  %v2126_v6 = vld [vmem:[%s9413_s4 + $0x870] sm:$0xff]  ;;  %v6231_v7 = vcombine.low %v2114_v37, %v2118_v1 }
 0x274   :  { %v6240_v47 = vcombine.high %v2122_v4, %v2126_v6  ;;  %v6239_v16 = vcombine.low %v2122_v4, %v2126_v6 }
 0x275   :  { %4757 = vmatpush1.bf16.msra.mxu0 %v6183_v30  ;;  %v2130_v30 = vld [vmem:[%s9413_s4 + $0x890] sm:$0xff] }
 0x276   :  { %4921 = vmatpush1.bf16.msra.mxu1 %v6185_v14  ;;  %4758 = vmatprep.subr.bf16.mxu0 %v6192_v5  ;;  %v2134_v14 = vld [vmem:[%s9413_s4 + $0x8b0] sm:$0xff]  ;;  %v6242_v5 = vcombine.high %v2123_v8, %v2127_v12 }
 0x277   :  { %4922 = vmatprep.subr.bf16.mxu1 %v6194_v34  ;;  %v2131_v34 = vld [vmem:[%s9413_s4 + $0x898] sm:$0xff]  ;;  %v6248_v21 = vcombine.high %v2130_v30, %v2134_v14  ;;  %v2178_v8 = vld [vmem:[%s9413_s4 + $0xa10] sm:$0xff] }
 0x278   :  { %v6249_v26 = vcombine.low %v2131_v34, %v2135_v13  ;;  %v2182_v12 = vld [vmem:[%s9413_s4 + $0xa30] sm:$0xff] }
 0x279   :  { %4759 = vmatpush1.bf16.msra.mxu0 %v6191_v36  ;;  %v6250_v36 = vcombine.high %v2131_v34, %v2135_v13  ;;  %v2186_v13 = vld [vmem:[%s9413_s4 + $0xa50] sm:$0xff] }
 0x27a   :  { %4923 = vmatpush1.bf16.msra.mxu1 %v6193_v22  ;;  %4760 = vmatprep.subr.bf16.mxu0 %v6200_v15  ;;  %v2138_v22 = vld [vmem:[%s9413_s4 + $0x8d0] sm:$0xff] }
 0x27b   :  { %4924 = vmatprep.subr.bf16.mxu1 %v6202_v25  ;;  %v2142_v15 = vld [vmem:[%s9413_s4 + $0x8f0] sm:$0xff]  ;;  %v2143_v25 = vld [vmem:[%s9413_s4 + $0x8f8] sm:$0xff] }
 0x27c   :  { %v6256_v27 = vcombine.high %v2138_v22, %v2142_v15 }
 0x27d   :  { %4761 = vmatpush1.bf16.msra.mxu0 %v6199_v31  ;;  %v2150_v31 = vld [vmem:[%s9413_s4 + $0x930] sm:$0xff] }
 0x27e   :  { %4925 = vmatpush1.bf16.msra.mxu1 %v6201_v32  ;;  %4762 = vmatprep.subr.bf16.mxu0 %v6208_v33  ;;  %v2147_v32 = vld [vmem:[%s9413_s4 + $0x918] sm:$0xff]  ;;  %v6264_v40 = vcombine.high %v2146_v29, %v2150_v31 }
 0x27f   :  { %4926 = vmatprep.subr.bf16.mxu1 %v6210_v19  ;;  %v2151_v33 = vld [vmem:[%s9413_s4 + $0x938] sm:$0xff]  ;;  %v6255_v19 = vcombine.low %v2138_v22, %v2142_v15 }
 0x280   :  { %v6266_v42 = vcombine.high %v2147_v32, %v2151_v33  ;;  %v6265_v57 = vcombine.low %v2147_v32, %v2151_v33  ;;  %v2202_v33 = vld [vmem:[%s9413_s4 + $0xad0] sm:$0xff] }
 0x281   :  { %4763 = vmatpush1.bf16.msra.mxu0 %v6207_v44  ;;  %v2158_v44 = vld [vmem:[%s9413_s4 + $0x970] sm:$0xff] }
 0x282   :  { %4927 = vmatpush1.bf16.msra.mxu1 %v6209_v48  ;;  %4764 = vmatprep.subr.bf16.mxu0 %v6216_v49  ;;  %v2155_v48 = vld [vmem:[%s9413_s4 + $0x958] sm:$0xff]  ;;  %v6272_v10 = vcombine.high %v2154_v43, %v2158_v44 }
 0x283   :  { %4928 = vmatprep.subr.bf16.mxu1 %v6218_v50  ;;  %v2159_v49 = vld [vmem:[%s9413_s4 + $0x978] sm:$0xff]  ;;  %v6263_v50 = vcombine.low %v2146_v29, %v2150_v31 }
 0x284   :  { %v6274_v11 = vcombine.high %v2155_v48, %v2159_v49  ;;  %v6273_v37 = vcombine.low %v2155_v48, %v2159_v49  ;;  %v2210_v49 = vld [vmem:[%s9413_s4 + $0xb10] sm:$0xff] }
 0x285   :  { %4765 = vmatpush1.bf16.msra.mxu0 %v6215_v59  ;;  %v2166_v59 = vld [vmem:[%s9413_s4 + $0x9b0] sm:$0xff] }
 0x286   :  { %4929 = vmatpush1.bf16.msra.mxu1 %v6217_v60  ;;  %4766 = vmatprep.subr.bf16.mxu0 %v6224_v63  ;;  %v2163_v60 = vld [vmem:[%s9413_s4 + $0x998] sm:$0xff]  ;;  %v6280_v1 = vcombine.high %v2162_v23, %v2166_v59 }
 0x287   :  { %4930 = vmatprep.subr.bf16.mxu1 %v6226_v0  ;;  %v2167_v63 = vld [vmem:[%s9413_s4 + $0x9b8] sm:$0xff]  ;;  %v6271_v0 = vcombine.low %v2154_v43, %v2158_v44 }
 0x288   :  { %v6282_v53 = vcombine.high %v2163_v60, %v2167_v63  ;;  %v6281_v4 = vcombine.low %v2163_v60, %v2167_v63  ;;  %v2218_v63 = vld [vmem:[%s9413_s4 + $0xb50] sm:$0xff] }
 0x289   :  { %4767 = vmatpush1.bf16.msra.mxu0 %v6223_v55  ;;  %v2174_v55 = vld [vmem:[%s9413_s4 + $0x9f0] sm:$0xff] }
 0x28a   :  { %4931 = vmatpush1.bf16.msra.mxu1 %v6225_v61  ;;  %4777 = vmatprep.subr.bf16.mxu0 %v6232_v62  ;;  %v2171_v61 = vld [vmem:[%s9413_s4 + $0x9d8] sm:$0xff]  ;;  %v6288_v6 = vcombine.high %v2170_v54, %v2174_v55 }
 0x28b   :  { %4941 = vmatprep.subr.bf16.mxu1 %v6234_v2  ;;  %v2175_v62 = vld [vmem:[%s9413_s4 + $0x9f8] sm:$0xff]  ;;  %v6279_v2 = vcombine.low %v2162_v23, %v2166_v59 }
 0x28c   :  { %4769 = vmatmul.mubr.bf16.vlgmr.msra.gmra.mrb[20].mxu0 %v8297_v39 }
 0x28d   :  { %4933 = vmatmul.mubr.bf16.vlgmr.msra.gmra.mrb[20].mxu1 %v8297_v39  ;;  %4778 = vmatpush1.bf16.msra.mxu0 %v6231_v7  ;;  %v2139_v39 = vld [vmem:[%s9413_s4 + $0x8d8] sm:$0xff]  ;;  %v6290_v7 = vcombine.high %v2171_v61, %v2175_v62 }
 0x28e   :  { %4809 = vmatprep.mubr.bf16.mxu0 %v8295_v35  ;;  %4942 = vmatpush1.bf16.msra.mxu1 %v6233_v9  ;;  %v6258_v58 = vcombine.high %v2139_v39, %v2143_v25  ;;  %v6257_v38 = vcombine.low %v2139_v39, %v2143_v25  ;;  %v2179_v9 = vld [vmem:[%s9413_s4 + $0xa18] sm:$0xff]  ;;  %v2194_v25 = vld [vmem:[%s9413_s4 + $0xa90] sm:$0xff] }
 0x28f   :  { %4973 = vmatprep.mubr.bf16.mxu1 %v8295_v35  ;;  %4779 = vmatprep.subr.bf16.mxu0 %v6240_v47  ;;  %v6247_v35 = vcombine.low %v2130_v30, %v2134_v14  ;;  %v2183_v47 = vld [vmem:[%s9413_s4 + $0xa38] sm:$0xff]  ;;  %v6287_v30 = vcombine.low %v2170_v54, %v2174_v55  ;;  %v6289_v14 = vcombine.low %v2171_v61, %v2175_v62  ;;  %v2226_v62 = vld [vmem:[%s9413_s4 + $0xb90] sm:$0xff] }
 0x290   :  { %4943 = vmatprep.subr.bf16.mxu1 %v6242_v5  ;;  %v6296_v5 = vcombine.high %v2178_v8, %v2182_v12  ;;  %v6298_v34 = vcombine.high %v2179_v9, %v2183_v47  ;;  %v6297_v22 = vcombine.low %v2179_v9, %v2183_v47  ;;  %v2234_v47 = vld [vmem:[%s9413_s4 + $0xbd0] sm:$0xff] }
 0x291   :  { %4780 = vmatpush1.bf16.msra.mxu0 %v6239_v16  ;;  %v2190_v16 = vld [vmem:[%s9413_s4 + $0xa70] sm:$0xff] }
 0x292   :  { %4944 = vmatpush1.bf16.msra.mxu1 %v6241_v17  ;;  %4781 = vmatprep.subr.bf16.mxu0 %v6248_v21  ;;  %v2187_v17 = vld [vmem:[%s9413_s4 + $0xa58] sm:$0xff]  ;;  %v6304_v15 = vcombine.high %v2186_v13, %v2190_v16 }
 0x293   :  { %4945 = vmatprep.subr.bf16.mxu1 %v6250_v36  ;;  %v2191_v21 = vld [vmem:[%s9413_s4 + $0xa78] sm:$0xff]  ;;  %v6295_v36 = vcombine.low %v2178_v8, %v2182_v12 }
 0x294   :  { %v6306_v39 = vcombine.high %v2187_v17, %v2191_v21  ;;  %v6305_v29 = vcombine.low %v2187_v17, %v2191_v21  ;;  %v2242_v21 = vld [vmem:[%s9413_s4 + $0xc10] sm:$0xff] }
 0x295   :  { %4782 = vmatpush1.bf16.msra.mxu0 %v6247_v35  ;;  %v2198_v35 = vld [vmem:[%s9413_s4 + $0xab0] sm:$0xff] }
 0x296   :  { %4946 = vmatpush1.bf16.msra.mxu1 %v6249_v26  ;;  %4783 = vmatprep.subr.bf16.mxu0 %v6256_v27  ;;  %v2195_v26 = vld [vmem:[%s9413_s4 + $0xa98] sm:$0xff]  ;;  %v6312_v31 = vcombine.high %v2194_v25, %v2198_v35 }
 0x297   :  { %4947 = vmatprep.subr.bf16.mxu1 %v6258_v58  ;;  %v2199_v27 = vld [vmem:[%s9413_s4 + $0xab8] sm:$0xff]  ;;  %v6303_v58 = vcombine.low %v2186_v13, %v2190_v16 }
 0x298   :  { %v6314_v32 = vcombine.high %v2195_v26, %v2199_v27  ;;  %v6313_v43 = vcombine.low %v2195_v26, %v2199_v27  ;;  %v2250_v27 = vld [vmem:[%s9413_s4 + $0xc50] sm:$0xff] }
 0x299   :  { %4784 = vmatpush1.bf16.msra.mxu0 %v6255_v19  ;;  %v2206_v19 = vld [vmem:[%s9413_s4 + $0xaf0] sm:$0xff] }
 0x29a   :  { %4948 = vmatpush1.bf16.msra.mxu1 %v6257_v38  ;;  %4785 = vmatprep.subr.bf16.mxu0 %v6264_v40  ;;  %v2203_v38 = vld [vmem:[%s9413_s4 + $0xad8] sm:$0xff]  ;;  %v6320_v44 = vcombine.high %v2202_v33, %v2206_v19 }
 0x29b   :  { %4949 = vmatprep.subr.bf16.mxu1 %v6266_v42  ;;  %v2207_v40 = vld [vmem:[%s9413_s4 + $0xaf8] sm:$0xff]  ;;  %v6311_v42 = vcombine.low %v2194_v25, %v2198_v35 }
 0x29c   :  { %v6322_v48 = vcombine.high %v2203_v38, %v2207_v40  ;;  %v6321_v23 = vcombine.low %v2203_v38, %v2207_v40  ;;  %v2258_v40 = vld [vmem:[%s9413_s4 + $0xc90] sm:$0xff] }
 0x29d   :  { %4786 = vmatpush1.bf16.msra.mxu0 %v6263_v50  ;;  %v2214_v50 = vld [vmem:[%s9413_s4 + $0xb30] sm:$0xff] }
 0x29e   :  { %4950 = vmatpush1.bf16.msra.mxu1 %v6265_v57  ;;  %4787 = vmatprep.subr.bf16.mxu0 %v6272_v10  ;;  %v2211_v57 = vld [vmem:[%s9413_s4 + $0xb18] sm:$0xff]  ;;  %v6328_v59 = vcombine.high %v2210_v49, %v2214_v50 }
 0x29f   :  { %4951 = vmatprep.subr.bf16.mxu1 %v6274_v11  ;;  %v2215_v10 = vld [vmem:[%s9413_s4 + $0xb38] sm:$0xff]  ;;  %v6319_v11 = vcombine.low %v2202_v33, %v2206_v19 }
 0x2a0   :  { %v6330_v60 = vcombine.high %v2211_v57, %v2215_v10  ;;  %v6329_v54 = vcombine.low %v2211_v57, %v2215_v10 }
 0x2a1   :  { %4788 = vmatpush1.bf16.msra.mxu0 %v6271_v0  ;;  %v2222_v0 = vld [vmem:[%s9413_s4 + $0xb70] sm:$0xff] }
 0x2a2   :  { %4952 = vmatpush1.bf16.msra.mxu1 %v6273_v37  ;;  %4789 = vmatprep.subr.bf16.mxu0 %v6280_v1  ;;  %v2219_v37 = vld [vmem:[%s9413_s4 + $0xb58] sm:$0xff]  ;;  %v6336_v55 = vcombine.high %v2218_v63, %v2222_v0 }
 0x2a3   :  { %4953 = vmatprep.subr.bf16.mxu1 %v6282_v53  ;;  %v2223_v1 = vld [vmem:[%s9413_s4 + $0xb78] sm:$0xff]  ;;  %v6327_v53 = vcombine.low %v2210_v49, %v2214_v50 }
 0x2a4   :  { %v6338_v61 = vcombine.high %v2219_v37, %v2223_v1  ;;  %v6337_v8 = vcombine.low %v2219_v37, %v2223_v1  ;;  %v6968_v37 = vld [vmem:[%s9415_s6 + $0xc8] sm:$0xff]  }
 0x2a5   :  { %4790 = vmatpush1.bf16.msra.mxu0 %v6279_v2  ;;  %v2230_v2 = vld [vmem:[%s9413_s4 + $0xbb0] sm:$0xff]  ;;  %v6969_v1 = vld [vmem:[%s9415_s6 + $0x8] sm:$0xff]  }
 0x2a6   :  { %4954 = vmatpush1.bf16.msra.mxu1 %v6281_v4  ;;  %4791 = vmatprep.subr.bf16.mxu0 %v6288_v6  ;;  %v2227_v4 = vld [vmem:[%s9413_s4 + $0xb98] sm:$0xff]  ;;  %v6344_v12 = vcombine.high %v2226_v62, %v2230_v2 }
 0x2a7   :  { %4955 = vmatprep.subr.bf16.mxu1 %v6290_v7  ;;  %v2231_v6 = vld [vmem:[%s9413_s4 + $0xbb8] sm:$0xff]  ;;  %v6335_v7 = vcombine.low %v2218_v63, %v2222_v0  ;;  %v6966_v63 = vld [vmem:[%s9415_s6 + $0x80] sm:$0xff]   ;;  %v6967_v0 = vld [vmem:[%s9415_s6 + $0x48] sm:$0xff]  }
 0x2a8   :  { %v6346_v9 = vcombine.high %v2227_v4, %v2231_v6  ;;  %v6345_v13 = vcombine.low %v2227_v4, %v2231_v6  ;;  %v6974_v4 = vld [vmem:[%s9415_s6 + $0x90] sm:$0xff]   ;;  %v6975_v6 = vld [vmem:[%s9415_s6 + $0x58] sm:$0xff]  }
 0x2a9   :  { %4792 = vmatpush1.bf16.msra.mxu0 %v6287_v30  ;;  %v2238_v30 = vld [vmem:[%s9413_s4 + $0xbf0] sm:$0xff] }
 0x2aa   :  { %4956 = vmatpush1.bf16.msra.mxu1 %v6289_v14  ;;  %4793 = vmatprep.subr.bf16.mxu0 %v6296_v5  ;;  %v2235_v14 = vld [vmem:[%s9413_s4 + $0xbd8] sm:$0xff]  ;;  %v6352_v16 = vcombine.high %v2234_v47, %v2238_v30 }
 0x2ab   :  { %4957 = vmatprep.subr.bf16.mxu1 %v6298_v34  ;;  %v2239_v5 = vld [vmem:[%s9413_s4 + $0xbf8] sm:$0xff]  ;;  %v6343_v34 = vcombine.low %v2226_v62, %v2230_v2  ;;  %v6973_v62 = vld [vmem:[%s9415_s6 + $0x10] sm:$0xff]  }
 0x2ac   :  { %v6354_v17 = vcombine.high %v2235_v14, %v2239_v5  ;;  %v6353_v25 = vcombine.low %v2235_v14, %v2239_v5 }
 0x2ad   :  { %4794 = vmatpush1.bf16.msra.mxu0 %v6295_v36  ;;  %v2246_v36 = vld [vmem:[%s9413_s4 + $0xc30] sm:$0xff] }
 0x2ae   :  { %4958 = vmatpush1.bf16.msra.mxu1 %v6297_v22  ;;  %4795 = vmatprep.subr.bf16.mxu0 %v6304_v15  ;;  %v2243_v22 = vld [vmem:[%s9413_s4 + $0xc18] sm:$0xff]  ;;  %v6360_v35 = vcombine.high %v2242_v21, %v2246_v36 }
 0x2af   :  { %4959 = vmatprep.subr.bf16.mxu1 %v6306_v39  ;;  %v2247_v15 = vld [vmem:[%s9413_s4 + $0xc38] sm:$0xff]  ;;  %v6351_v39 = vcombine.low %v2234_v47, %v2238_v30 }
 0x2b0   :  { %v6362_v26 = vcombine.high %v2243_v22, %v2247_v15  ;;  %v6361_v33 = vcombine.low %v2243_v22, %v2247_v15  ;;  %v6977_v30 = vld [vmem:[%s9415_s6 + $0x18] sm:$0xff]  }
 0x2b1   :  { %4796 = vmatpush1.bf16.msra.mxu0 %v6303_v58  ;;  %v2254_v58 = vld [vmem:[%s9413_s4 + $0xc70] sm:$0xff] }
 0x2b2   :  { %4960 = vmatpush1.bf16.msra.mxu1 %v6305_v29  ;;  %4797 = vmatprep.subr.bf16.mxu0 %v6312_v31  ;;  %v2251_v29 = vld [vmem:[%s9413_s4 + $0xc58] sm:$0xff]  ;;  %v6368_v19 = vcombine.high %v2250_v27, %v2254_v58 }
 0x2b3   :  { %4961 = vmatprep.subr.bf16.mxu1 %v6314_v32  ;;  %v2255_v31 = vld [vmem:[%s9413_s4 + $0xc78] sm:$0xff]  ;;  %v6359_v32 = vcombine.low %v2242_v21, %v2246_v36  ;;  %v6980_v36 = vld [vmem:[%s9415_s6 + $0xe0] sm:$0xff]  }
 0x2b4   :  { %v6370_v38 = vcombine.high %v2251_v29, %v2255_v31  ;;  %v6369_v49 = vcombine.low %v2251_v29, %v2255_v31  ;;  %v6986_v31 = vld [vmem:[%s9415_s6 + $0xa8] sm:$0xff]  }
 0x2b5   :  { %4798 = vmatpush1.bf16.msra.mxu0 %v6311_v42  ;;  %v2262_v42 = vld [vmem:[%s9413_s4 + $0xcb0] sm:$0x11] }
 0x2b6   :  { %4962 = vmatpush1.bf16.msra.mxu1 %v6313_v43  ;;  %4799 = vmatprep.subr.bf16.mxu0 %v6320_v44  ;;  %v2259_v43 = vld [vmem:[%s9413_s4 + $0xc98] sm:$0xff]  ;;  %v6376_v50 = vcombine.high %v2258_v40, %v2262_v42  ;;  %v6375_v57 = vcombine.low %v2258_v40, %v2262_v42  ;;  %v6990_v40 = vld [vmem:[%s9415_s6 + $0xb0] sm:$0xff]  }
 0x2b7   :  { %4963 = vmatprep.subr.bf16.mxu1 %v6322_v48  ;;  %v2263_v44 = vld [vmem:[%s9413_s4 + $0xcb8] sm:$0x11]  ;;  %v6367_v48 = vcombine.low %v2250_v27, %v2254_v58  ;;  %v6984_v27 = vld [vmem:[%s9415_s6 + $0xe8] sm:$0xff]  }
 0x2b8   :  { %v6378_v10 = vcombine.high %v2259_v43, %v2263_v44  ;;  %v6985_v58 = vld [vmem:[%s9415_s6 + $0x28] sm:$0xff]  }
 0x2b9   :  { %4800 = vmatpush1.bf16.msra.mxu0 %v6319_v11  ;;  %v6377_v11 = vcombine.low %v2259_v43, %v2263_v44  ;;  %v6992_v43 = vld [vmem:[%s9415_s6 + $0xf8] sm:$0xff]  }
 0x2ba   :  { %4964 = vmatpush1.bf16.msra.mxu1 %v6321_v23  ;;  %4801 = vmatprep.subr.bf16.mxu0 %v6328_v59  ;;  %v6963_v23 = vld [vmem:[%s9415_s6 + $0x40] sm:$0xff]   ;;  %v6993_v44 = vld [vmem:[%s9415_s6 + $0x38] sm:$0xff]  }
 0x2bb   :  { %4965 = vmatprep.subr.bf16.mxu1 %v6330_v60  ;;  %v4362_v59 = vsel %vm4342_vm0, %v6377_v11, 0  ;;  %v6964_v60 = vld [vmem:[%s9415_s6 + $0xc0] sm:$0xff]  }
 0x2bc   :  { %v6997_v11 = vld [vmem:[%s9415_s6 + $0x100] sm:$0xff]  }
 0x2bd   :  { %4802 = vmatpush1.bf16.msra.mxu0 %v6327_v53  ;;  %v6970_v53 = vld [vmem:[%s9415_s6 + $0x88] sm:$0xff]  }
 0x2be   :  { %4966 = vmatpush1.bf16.msra.mxu1 %v6329_v54  ;;  %4803 = vmatprep.subr.bf16.mxu0 %v6336_v55  ;;  %v9198_v54 = vld [vmem:[%s9414_s5] sm:$0xff]  ;;  %v6972_v55 = vld [vmem:[%s9415_s6 + $0xd0] sm:$0xff]  }
 0x2bf   :  { %4967 = vmatprep.subr.bf16.mxu1 %v6338_v61  ;;  %v2273_v61 = vrot.slane %v9198_v54, %v1806_v20  ;;  %v2281_v2 = vrot.slane %v9198_v54, %v1814_v24  ;;  %v6976_v20 = vld [vmem:[%s9415_s6 + $0xd8] sm:$0xff]   ;;  %v2269_v29 = vrot.slane %v9198_v54, %v1802_v18  ;;  %v6989_v18 = vld [vmem:[%s9415_s6 + $0x30] sm:$0xff]  }
 0x2c1   :  { %4804 = vmatpush1.bf16.msra.mxu0 %v6335_v7 }
 0x2c2   :  { %4968 = vmatpush1.bf16.msra.mxu1 %v6337_v8  ;;  %4805 = vmatprep.subr.bf16.mxu0 %v6344_v12 }
 0x2c3   :  { %4969 = vmatprep.subr.bf16.mxu1 %v6346_v9 }
 0x2c5   :  { %4806 = vmatpush1.bf16.msra.mxu0 %v6343_v34 }
 0x2c6   :  { %4970 = vmatpush1.bf16.msra.mxu1 %v6345_v13  ;;  %4807 = vmatprep.subr.bf16.mxu0 %v6352_v16  ;;  %v6978_v13 = vld [vmem:[%s9415_s6 + $0x98] sm:$0xff]   ;;  %v6979_v16 = vld [vmem:[%s9415_s6 + $0x60] sm:$0xff]  }
 0x2c7   :  { %4971 = vmatprep.subr.bf16.mxu1 %v6354_v17 }
 0x2c9   :  { %4808 = vmatpush1.bf16.msra.mxu0 %v6351_v39  ;;  %v6981_v39 = vld [vmem:[%s9415_s6 + $0x20] sm:$0xff]  }
 0x2ca   :  { %4972 = vmatpush1.bf16.msra.mxu1 %v6353_v25  ;;  %4818 = vmatprep.subr.bf16.mxu0 %v6360_v35  ;;  %v6982_v35 = vld [vmem:[%s9415_s6 + $0xa0] sm:$0xff]  }
 0x2cb   :  { %4982 = vmatprep.subr.bf16.mxu1 %v6362_v26  ;;  %v6983_v26 = vld [vmem:[%s9415_s6 + $0x68] sm:$0xff]  }
 0x2cc   :  { %4810 = vmatmul.mubr.bf16.vlgmr.msra.gmra.mrb[20].mxu0 %v8506_v28 }
 0x2cd   :  { %4974 = vmatmul.mubr.bf16.vlgmr.msra.gmra.mrb[20].mxu1 %v8506_v28  ;;  %4819 = vmatpush1.bf16.msra.mxu0 %v6359_v32  ;;  %v4356_v28 = vsel %vm4342_vm0, %v6375_v57, 0  ;;  %v6987_v32 = vld [vmem:[%s9415_s6 + $0x70] sm:$0xff]  }
 0x2ce   :  { %4983 = vmatpush1.bf16.msra.mxu1 %v6361_v33  ;;  %4820 = vmatprep.subr.bf16.mxu0 %v6368_v19  ;;  %v2277_v33 = vrot.slane %v9198_v54, %v1810_v41  ;;  %v6988_v19 = vld [vmem:[%s9415_s6 + $0xf0] sm:$0xff]   ;;  %v6991_v41 = vld [vmem:[%s9415_s6 + $0x78] sm:$0xff]  }
 0x2cf   :  { %4984 = vmatprep.subr.bf16.mxu1 %v6370_v38  ;;  %4850 = vmatprep.mubr.bf16.mxu0 %v7056_v51 }
 0x2d0   :  { %5014 = vmatprep.mubr.bf16.mxu1 %v7056_v51  ;;  %v6965_v51 = vld [vmem:[%s9415_s6] sm:$0xff]  }
 0x2d1   :  { %4821 = vmatpush1.bf16.msra.mxu0 %v6367_v48 }
 0x2d2   :  { %4985 = vmatpush1.bf16.msra.mxu1 %v6369_v49  ;;  %6383 = vmatprep.subr.msk.bf16.mxu0 %vm4342_vm0, %v6376_v50  ;;  %v6994_v49 = vld [vmem:[%s9415_s6 + $0xb8] sm:$0xff]   ;;  %v6995_v50 = vld [vmem:[%s9415_s6 + $0x140] sm:$0xff]  }
 0x2d3   :  { %6385 = vmatprep.subr.msk.bf16.mxu1 %vm4342_vm0, %v6378_v10  ;;  %v6996_v10 = vld [vmem:[%s9415_s6 + $0x1c0] sm:$0xff]  }
 0x2d5   :  { %4823 = vmatpush1.bf16.msra.mxu0 %v4356_v28 }
 0x2d6   :  { %4987 = vmatpush1.bf16.msra.mxu1 %v4362_v59  ;;  %6496 = vmatprep.subr.bf16.mxu0 %v6963_v23  ;;  %v6998_v23 = vld [vmem:[%s9415_s6 + $0x180] sm:$0xff]   ;;  %v6999_v59 = vld [vmem:[%s9415_s6 + $0x148] sm:$0xff]  }
 0x2d7   :  { %6518 = vmatprep.subr.bf16.mxu1 %v6964_v60 }
 0x2d8   :  { %6384 = vmatmul.mubr.msk.bf16.vlgmr.msra.gmra.mrb[20].mxu0 %vm4338_vm1, %v8555_v3 }
 0x2d9   :  { %6386 = vmatmul.mubr.msk.bf16.vlgmr.msra.gmra.mrb[20].mxu1 %vm4338_vm1, %v8555_v3  ;;  %6497 = vmatpush3.bf16.msra.mxu0 %v6965_v51  ;;  %v6971_v3 = vld [vmem:[%s9415_s6 + $0x50] sm:$0xff]   ;;  %v7000_v51 = vld [vmem:[%s9415_s6 + $0x1c8] sm:$0xff]  }
 0x2da   :  { %6519 = vmatpush3.bf16.msra.mxu1 %v6966_v63  ;;  %6498 = vmatprep.subr.bf16.mxu0 %v6967_v0  ;;  %v7001_v63 = vld [vmem:[%s9415_s6 + $0x108] sm:$0xff]  }
 0x2db   :  { %6520 = vmatprep.subr.bf16.mxu1 %v6968_v37  ;;  %v7002_v0 = vld [vmem:[%s9415_s6 + $0x188] sm:$0xff]   ;;  %v7003_v37 = vld [vmem:[%s9415_s6 + $0x150] sm:$0xff]  }
 0x2dd   :  { %6499 = vmatpush3.bf16.msra.mxu0 %v6969_v1  ;;  %v7004_v1 = vld [vmem:[%s9415_s6 + $0x1d0] sm:$0xff]  }
 0x2de   :  { %6521 = vmatpush3.bf16.msra.mxu1 %v6970_v53  ;;  %6500 = vmatprep.subr.bf16.mxu0 %v6971_v3  ;;  %v7005_v53 = vld [vmem:[%s9415_s6 + $0x110] sm:$0xff]  }
 0x2df   :  { %v4524_v7 = vpop.f32.mrb[16].mxu0  ;;  %6522 = vmatprep.subr.bf16.mxu1 %v6972_v55  ;;  %v7006_v3 = vld [vmem:[%s9415_s6 + $0x190] sm:$0xff]   ;;  %v7007_v55 = vld [vmem:[%s9415_s6 + $0x158] sm:$0xff]  }
 0x2e0   :  { %v4688_v8 = vpop.f32.mrb[16].mxu1  ;;  %v4526_v12 = vpop.f32.mrb[17].mxu0  ;;  %v6584_v38 = vadd.f32 %v4524_v7, %v2269_v29  ;;  %v7013_v7 = vld [vmem:[%s9415_s6 + $0x120] sm:$0xff]  }
 0x2e1   :  { %v6585_v9 = vadd.f32 %v4526_v12, %v2273_v61  ;;  %v4690_v47 = vpop.f32.mrb[17].mxu1  ;;  %v4528_v24 = vpop.f32.mrb[18].mxu0  ;;  %6501 = vmatpush3.bf16.msra.mxu0 %v6973_v62  ;;  %v6586_v42 = vadd.f32 %v4688_v8, %v2277_v33  ;;  %v7008_v61 = vld [vmem:[%s9415_s6 + $0x1d8] sm:$0xff]   ;;  %v7015_v8 = vld [vmem:[%s9415_s6 + $0x168] sm:$0xff]  }
 0x2e2   :  { %v6587_v14 = vadd.f32 %v4690_v47, %v2281_v2  ;;  %v4692_v5 = vpop.f32.mrb[18].mxu1  ;;  %6523 = vmatpush3.bf16.msra.mxu1 %v6974_v4  ;;  %v4529_v34 = vpop.f32.mrb[19].mxu0  ;;  %6502 = vmatprep.subr.bf16.mxu0 %v6975_v6  ;;  %v5023_v48 = vmax.f32 %v6584_v38, 0.0  ;;  %v7009_v62 = vld [vmem:[%s9415_s6 + $0x118] sm:$0xff]   ;;  %v7011_v4 = vld [vmem:[%s9415_s6 + $0x160] sm:$0xff]   ;;  %v7016_v12 = vld [vmem:[%s9415_s6 + $0x1e8] sm:$0xff]  }
 0x2e3   :  { %v5024_v17 = vmax.f32 %v6585_v9, 0.0  ;;  %v4693_v21 = vpop.f32.mrb[19].mxu1  ;;  %6524 = vmatprep.subr.bf16.mxu1 %v6976_v20  ;;  %v5025_v57 = vmax.f32 %v6586_v42, 0.0  ;;  %v7010_v2 = vld [vmem:[%s9415_s6 + $0x198] sm:$0xff]   ;;  %v7012_v6 = vld [vmem:[%s9415_s6 + $0x1e0] sm:$0xff]   ;;  %v7017_v9 = vld [vmem:[%s9415_s6 + $0x128] sm:$0xff]  }
 0x2e4   :  { %v5026_v22 = vmax.f32 %v6587_v14, 0.0  ;;  %v5031_v28 = vpack.c.bf16 %v5023_v48, %v5023_v48  ;;  %v7014_v20 = vld [vmem:[%s9415_s6 + $0x1a0] sm:$0xff]   ;;  %v7018_v47 = vld [vmem:[%s9415_s6 + $0x1a8] sm:$0xff]   ;;  %v7019_v24 = vld [vmem:[%s9415_s6 + $0x170] sm:$0xff]   ;;  %v2296_v21 = vsub.s32 7, %v7229_v46 }
 0x2e5   :  { %v5032_v15 = vpack.c.bf16 %v5024_v17, %v5024_v17  ;;  %6503 = vmatpush3.bf16.msra.mxu0 %v6977_v30  ;;  %v5033_v60 = vpack.c.bf16 %v5025_v57, %v5025_v57  ;;  %v7020_v30 = vld [vmem:[%s9415_s6 + $0x1f0] sm:$0xff]   ;;  %v7023_v34 = vld [vmem:[%s9415_s6 + $0x178] sm:$0xff]   ;;  %v6387_v48 = vld [vmem:[%s9416_s7] ss:$0 sm:$0xff]  ;;  %s7057_s7 = smov [#allocation2]  }
 0x2e6   :  { %v5034_v25 = vpack.c.bf16 %v5026_v22, %v5026_v22  ;;  %6525 = vmatpush3.bf16.msra.mxu1 %v6978_v13  ;;  %6504 = vmatprep.subr.bf16.mxu0 %v6979_v16  ;;  %v7021_v14 = vld [vmem:[%s9415_s6 + $0x130] sm:$0xff]   ;;  %v7024_v13 = vld [vmem:[%s9415_s6 + $0x1f8] sm:$0xff]   ;;  %v2293_v22 = vrot.slane %v9198_v54, %v1826_v56  ;;  %s5738_s21 = sshll.u32 %s7057_s7, 4  ;;  %s5739_s21 = int_to_ptr.vmem [resolvable:$true] %s5738_s21 }
 0x2e7   :  { %5590 = vmatprep.mubr.bf16.mxu0 %v5032_v15  ;;  %6526 = vmatprep.subr.bf16.mxu1 %v6980_v36  ;;  %v7022_v5 = vld [vmem:[%s9415_s6 + $0x1b0] sm:$0xff]   ;;  %v7025_v16 = vld [vmem:[%s9415_s6 + $0x138] sm:$0xff]   ;;  %v2285_v36 = vrot.slane %v9198_v54, %v1818_v45  ;;  %v2289_v15 = vrot.slane %v9198_v54, %v1822_v52  ;;  %s7031_s22 = scalar_lea.vmem %s5739_s21, 32  ;;  %p7036_p1 = scmp.lt.s32.totalorder %s5739_s21, %s5739_s21 }
 0x2e8   :  { %5630 = vmatprep.mubr.bf16.mxu1 %v5034_v25  ;;  %v7026_v17 = vld [vmem:[%s9415_s6 + $0x1b8] sm:$0xff]   ;;  %p7032_p0 = scmp.ne.s32.totalorder %s5739_s21, %s7031_s22  ;;  %p7037_p2 = scmp.lt.s32.totalorder %s7031_s22, %s7031_s22 }
 0x2e9   :  { %6505 = vmatpush3.bf16.msra.mxu0 %v6981_v39  ;;  %v2297_v39 = vrot.slane %v9198_v54, %v2296_v21 }
 0x2ea   :  { %6527 = vmatpush3.bf16.msra.mxu1 %v6982_v35  ;;  %6506 = vmatprep.subr.bf16.mxu0 %v6983_v26  ;;  %p7038_p3 = por %p7037_p2, %p7036_p1 }
 0x2eb   :  { %6528 = vmatprep.subr.bf16.mxu1 %v6984_v27 }
 0x2ec   :  { %p7039_p4 = pnand %p7038_p3, %p7032_p0 }
 0x2ed   :  { %6507 = vmatpush3.bf16.msra.mxu0 %v6985_v58 }
 0x2ee   :  { %6529 = vmatpush3.bf16.msra.mxu1 %v6986_v31  ;;  %6508 = vmatprep.subr.bf16.mxu0 %v6987_v32 }
 0x2ef   :  { %6530 = vmatprep.subr.bf16.mxu1 %v6988_v19 }
 0x2f1   :  { %6509 = vmatpush3.bf16.msra.mxu0 %v6989_v18 }
 0x2f2   :  { %6531 = vmatpush3.bf16.msra.mxu1 %v6990_v40  ;;  %6510 = vmatprep.subr.bf16.mxu0 %v6991_v41 }
 0x2f3   :  { %6532 = vmatprep.subr.bf16.mxu1 %v6992_v43 }
 0x2f5   :  { %6511 = vmatpush3.bf16.msra.mxu0 %v6993_v44 }
 0x2f6   :  { %6533 = vmatpush3.bf16.msra.mxu1 %v6994_v49  ;;  %6540 = vmatprep.subr.bf16.mxu0 %v6995_v50 }
 0x2f7   :  { %6562 = vmatprep.subr.bf16.mxu1 %v6996_v10 }
 0x2f8   :  { %5591 = vmatmul.mubr.bf16.vlgmr.msra.gmra.mrb[24].mxu0 %v5031_v28 }
 0x2f9   :  { %5631 = vmatmul.mubr.bf16.vlgmr.msra.gmra.mrb[24].mxu1 %v5033_v60  ;;  %6541 = vmatpush3.bf16.msra.mxu0 %v6997_v11 }
 0x2fa   :  { %6563 = vmatpush3.bf16.msra.mxu1 %v6998_v23  ;;  %6542 = vmatprep.subr.bf16.mxu0 %v6999_v59 }
 0x2fb   :  { %6564 = vmatprep.subr.bf16.mxu1 %v7000_v51 }
 0x2fd   :  { %6543 = vmatpush3.bf16.msra.mxu0 %v7001_v63 }
 0x2fe   :  { %6565 = vmatpush3.bf16.msra.mxu1 %v7002_v0  ;;  %6544 = vmatprep.subr.bf16.mxu0 %v7003_v37 }
 0x2ff   :  { %6566 = vmatprep.subr.bf16.mxu1 %v7004_v1 }
 0x301   :  { %6545 = vmatpush3.bf16.msra.mxu0 %v7005_v53 }
 0x302   :  { %6567 = vmatpush3.bf16.msra.mxu1 %v7006_v3  ;;  %6546 = vmatprep.subr.bf16.mxu0 %v7007_v55 }
 0x303   :  { %6568 = vmatprep.subr.bf16.mxu1 %v7008_v61 }
 0x305   :  { %6547 = vmatpush3.bf16.msra.mxu0 %v7009_v62 }
 0x306   :  { %6569 = vmatpush3.bf16.msra.mxu1 %v7010_v2  ;;  %6548 = vmatprep.subr.bf16.mxu0 %v7011_v4 }
 0x307   :  { %6570 = vmatprep.subr.bf16.mxu1 %v7012_v6 }
 0x309   :  { %6549 = vmatpush3.bf16.msra.mxu0 %v7013_v7 }
 0x30a   :  { %6571 = vmatpush3.bf16.msra.mxu1 %v7014_v20  ;;  %6550 = vmatprep.subr.bf16.mxu0 %v7015_v8 }
 0x30b   :  { %6572 = vmatprep.subr.bf16.mxu1 %v7016_v12 }
 0x30d   :  { %6551 = vmatpush3.bf16.msra.mxu0 %v7017_v9 }
 0x30e   :  { %6573 = vmatpush3.bf16.msra.mxu1 %v7018_v47  ;;  %6552 = vmatprep.subr.bf16.mxu0 %v7019_v24 }
 0x30f   :  { %6574 = vmatprep.subr.bf16.mxu1 %v7020_v30 }
 0x311   :  { %6553 = vmatpush3.bf16.msra.mxu0 %v7021_v14 }
 0x312   :  { %6575 = vmatpush3.bf16.msra.mxu1 %v7022_v5  ;;  %6554 = vmatprep.subr.bf16.mxu0 %v7023_v34 }
 0x313   :  { %6576 = vmatprep.subr.bf16.mxu1 %v7024_v13 }
 0x315   :  { %6555 = vmatpush3.bf16.msra.mxu0 %v7025_v16 }
 0x316   :  { %6577 = vmatpush3.bf16.msra.mxu1 %v7026_v17 }
 0x3ab   :  { %v4852_v25 = vpop.f32.mrb[20].mxu0 }
 0x3ac   :  { %v6588_v35 = vadd.f32 %v4852_v25, %v2285_v36  ;;  %v5016_v26 = vpop.f32.mrb[20].mxu1  ;;  %v4854_v27 = vpop.f32.mrb[21].mxu0 }
 0x3ad   :  { %v6590_v58 = vadd.f32 %v5016_v26, %v2293_v22  ;;  %v6589_v29 = vadd.f32 %v4854_v27, %v2289_v15  ;;  %v5018_v31 = vpop.f32.mrb[21].mxu1  ;;  %v4856_v32 = vpop.f32.mrb[22].mxu0 }
 0x3ae   :  { %v5027_v33 = vmax.f32 %v6588_v35, 0.0  ;;  %v6591_v45 = vadd.f32 %v5018_v31, %v2297_v39  ;;  %v5020_v19 = vpop.f32.mrb[22].mxu1  ;;  %v4857_v18 = vpop.f32.mrb[23].mxu0 }
 0x3af   :  { %v5029_v38 = vmax.f32 %v6590_v58, 0.0  ;;  %v5028_v56 = vmax.f32 %v6589_v29, 0.0  ;;  %v5021_v40 = vpop.f32.mrb[23].mxu1 }
 0x3b0   :  { %v5030_v46 = vmax.f32 %v6591_v45, 0.0  ;;  %v5035_v52 = vpack.c.bf16 %v5027_v33, %v5027_v33 }
 0x3b1   :  { %v5036_v41 = vpack.c.bf16 %v5028_v56, %v5028_v56  ;;  %v5037_v54 = vpack.c.bf16 %v5029_v38, %v5029_v38 }
 0x3b2   :  { %v5038_v42 = vpack.c.bf16 %v5030_v46, %v5030_v46 }
 0x3b3   :  { %5670 = vmatprep.mubr.bf16.mxu0 %v5036_v41 }
 0x3b4   :  { %5710 = vmatprep.mubr.bf16.mxu1 %v5038_v42  ;;  %5671 = vmatmul.mubr.bf16.vlgmr.msra.gmra.mrb[28].mxu0 %v5035_v52 }
 0x3b5   :  { %5711 = vmatmul.mubr.bf16.vlgmr.msra.gmra.mrb[28].mxu1 %v5037_v54 }
 0x3cb   :  { %v6512_v43 = vpop.f32.mrb[24].mxu0 }
 0x3cc   :  { %v6534_v44 = vpop.f32.mrb[24].mxu1  ;;  %v6513_v49 = vpop.f32.mrb[25].mxu0 }
 0x3cd   :  { %v6514_v50 = vadd.f32 %v6513_v49, %v6512_v43  ;;  %v6535_v57 = vpop.f32.mrb[25].mxu1  ;;  %v6515_v10 = vpop.f32.mrb[26].mxu0 }
 0x3ce   :  { %v6536_v11 = vadd.f32 %v6535_v57, %v6534_v44  ;;  %v6537_v28 = vpop.f32.mrb[26].mxu1  ;;  %v6516_v23 = vpop.f32.mrb[27].mxu0 }
 0x3cf   :  { %v5593_v59 = vadd.f32 %v6514_v50, %v6387_v48  ;;  %v6538_v60 = vpop.f32.mrb[27].mxu1 }
 0x3d1   :  { %v5633_v51 = vadd.f32 %v6536_v11, %v5593_v59 }
 0x487   :  { %v6556_v63 = vpop.f32.mrb[28].mxu0 }
 0x488   :  { %v6578_v0 = vpop.f32.mrb[28].mxu1  ;;  %v6557_v37 = vpop.f32.mrb[29].mxu0 }
 0x489   :  { %v6558_v1 = vadd.f32 %v6557_v37, %v6556_v63  ;;  %v6579_v53 = vpop.f32.mrb[29].mxu1  ;;  %v6559_v3 = vpop.f32.mrb[30].mxu0 }
 0x48a   :  { %v6580_v55 = vadd.f32 %v6579_v53, %v6578_v0  ;;  %v6581_v61 = vpop.f32.mrb[30].mxu1  ;;  %v6560_v62 = vpop.f32.mrb[31].mxu0 }
 0x48b   :  { %v5673_v2 = vadd.f32 %v6558_v1, %v5633_v51  ;;  %v6582_v4 = vpop.f32.mrb[31].mxu1 }
 0x48d   :  { %v5713_v6 = vadd.f32 %v6580_v55, %v5673_v2 }
 0x48f   :  { %v5719_v7 = vsel %vm5718_vm2, %v5713_v6, -inf }
 0x490   :  { %5720 = vmax.xlane.f32.xlu0 %v5719_v7 }
 0x51d   :  { %v5721_v20 = vpop.xlane.xlu0 %5720 }
 0x51e   :  { %v5722_v8 = vsub.f32 %v5713_v6, %v5721_v20 }
 0x520   :  { %v5723_v12 = vmul.f32 1.442695, %v5722_v8 }
 0x522   :  { %7027 = vpow2.f32 %v5723_v12 }
 0x52c   :  { %v7028_v9 = vpop.eup %7027 }
 0x52d   :  { %v5725_v47 = vsel %vm5718_vm2, %v7028_v9, 0.0 }
 0x52e   :  { %5726 = vadd.xlane.f32.xlu0 %v5725_v47 }
 0x5bb   :  { %v5727_v24 = vpop.xlane.xlu0 %5726 }
 0x5bc   :  { %7029 = vlog2.f32 %v5727_v24 }
 0x5c6   :  { %v7030_v30 = vpop.eup %7029 }
 0x5c7   :  { %v5729_v14 = vmul.f32 0.6931472, %v7030_v30 }
 0x5c9   :  { %v5730_v5 = vsub.f32 %v5722_v8, %v5729_v14 }
 0x5cb   :  { %5731 = vst.msk [vmem:[#allocation2] sm:$0x3] %vm5718_vm2, %v5730_v5 }
 0x5cc   :  { %7042 = shalt.err (!%p7039_p4)
}
 0x5cd   :  { %s7043_s3 = scalar_lea.hbm %s9417_s8, 32 }
 0x5ce   :  { %p7044_p5 = scmp.ne.s32.totalorder %s9417_s8, %s7043_s3  ;;  %p7047_p6 = scmp.lt.u32.totalorder %s7043_s3, %s9417_s8 }
 0x5d0   :  { %p7049_p7 = pnand %p7047_p6, %p7044_p5 }
 0x5d2   :  { %7052 = shalt.err (!%p7049_p7)
}
 0x5d3   :  { %5741 = dma.vmem_to_hbm [thread:$0]  %s5739_s21, 32, %s9417_s8, [#allocation3]  }
 0x5d4   :  { %7053 = dma.done.wait [#allocation3], 32  }
 0x5d5   :  { %7054 = vsyncadd [#allocation3], 4294967264 }
 0x5d6   :  { %5745 = vsyncpa [#allocation3], 1 }

</bundles_post_ra>
